<compile_context>
chip_gen: v7x
topology: tpu7x:2x2x1
jax: 0.10.0
libtpu: 0.0.40
codegen_flags: <defaults>
</compile_context>

<pallas_src>
import jax
import jax.numpy as jnp
import numpy as np
from jax import lax
from jax.experimental import pallas as pl
from jax.experimental.pallas import tpu as pltpu

RATES = (1, 2, 3, 4)
KSIZE = 3
NTAPS = KSIZE * KSIZE
PAD = max(RATES)            # 4: covers every dilated tap offset


def ran_kernel(w_ref, b_ref, x_ref, out_ref):
    """Collapsed RAN forward for one batch element.

    w_ref : SMEM (4*9*Cin,)        effective per-(rate,tap,channel) weights
    b_ref : SMEM (1,)              effective bias (aspp biases folded in)
    x_ref : VMEM (1, Cin, Hp, Wp)  zero-padded activation (Hp=H+8, Wp=W+8)
    out   : VMEM (1, H, W)         sigmoid(interior) of the convsig output
    """
    _, cin, hp, wp = x_ref.shape
    _, h, w = out_ref.shape
    pad = (hp - h) // 2

    # Accumulate in f32 on the VPU: one scalar-broadcast FMA per (tap, channel).
    s = jnp.full((h, w), b_ref[0], jnp.float32)
    for c in range(cin):
        xc = x_ref[0, c]                              # (Hp, Wp) load once
        for k, r in enumerate(RATES):
            for ky in range(KSIZE):
                for kx in range(KSIZE):
                    idx = k * NTAPS + ky * KSIZE + kx
                    dy = (ky - 1) * r + pad
                    dx = (kx - 1) * r + pad
                    s = s + xc[dy:dy + h, dx:dx + w] * w_ref[idx * cin + c]

    out_ref[0] = jax.nn.sigmoid(s)


def ran_forward(x_nchw, params):
    aspp_w, aspp_b, wsig, bsig = params   # (4,Cout,Cin,3,3),(4,Cout),(1,4Cout,1,1),(1,)
    n, cin, h, w = x_nchw.shape
    cout = aspp_w.shape[1]
    hp, wp = h + 2 * PAD, w + 2 * PAD

    # ---- glue: collapse ASPP weights/biases through the 1x1 convsig ----
    wsig_blocks = wsig.reshape(4, cout)                               # [k, o]
    # w_eff[k, ky, kx, c] = sum_o W_k[o, c, ky, kx] * wsig[k, o]
    w_eff = jnp.einsum('kocyx,ko->kyxc', aspp_w, wsig_blocks)          # (4,3,3,Cin)
    w_eff_flat = w_eff.reshape(-1).astype(jnp.float32)                 # (4*9*Cin,)
    b_eff = (jnp.sum(aspp_b * wsig_blocks) + bsig[0]).reshape(1).astype(jnp.float32)

    # ---- glue: zero-pad once (covers all four dilation rates) ----
    xp = jnp.pad(x_nchw, ((0, 0), (0, 0), (PAD, PAD), (PAD, PAD)))     # (N,Cin,Hp,Wp)

    interior = pl.pallas_call(
        ran_kernel,
        out_shape=jax.ShapeDtypeStruct((n, h, w), jnp.float32),
        grid=(n,),
        in_specs=[
            pl.BlockSpec(memory_space=pltpu.MemorySpace.SMEM),          # w_eff_flat
            pl.BlockSpec(memory_space=pltpu.MemorySpace.SMEM),          # b_eff
            pl.BlockSpec((1, cin, hp, wp), lambda i: (i, 0, 0, 0)),     # padded x
        ],
        out_specs=pl.BlockSpec((1, h, w), lambda i: (i, 0, 0)),
        compiler_params=pltpu.CompilerParams(
            dimension_semantics=("parallel",),
            vmem_limit_bytes=32 * 1024 * 1024),
    )(w_eff_flat, b_eff, xp)

    # ---- glue: place interior into the (H+2, W+2) convsig output ----
    # convsig is a 1x1 conv with padding=1 over the (zero-padded) feature map,
    # so the 1-pixel border is exactly sigmoid(convsig bias).
    border = jax.nn.sigmoid(bsig[0])
    out = jnp.full((n, 1, h + 2, w + 2), border, jnp.float32)
    out = out.at[:, 0, 1:h + 1, 1:w + 1].set(interior)
    return out


def ref_forward(x, params):
    """Pure-JAX reference (matches the PyTorch module semantics)."""
    aspp_w, aspp_b, wsig, bsig = params
    feats = []
    for k, r in enumerate(RATES):
        y = lax.conv_general_dilated(
            x, aspp_w[k], window_strides=(1, 1),
            padding=[(r, r), (r, r)], rhs_dilation=(r, r),
            dimension_numbers=("NCHW", "OIHW", "NCHW"))
        feats.append(y + aspp_b[k][None, :, None, None])
    fm = jnp.concatenate(feats, axis=1)
    z = lax.conv_general_dilated(
        fm, wsig, window_strides=(1, 1), padding=[(1, 1), (1, 1)],
        dimension_numbers=("NCHW", "OIHW", "NCHW"))
    return jax.nn.sigmoid(z + bsig[0])


def init_params(key, in_channels, out_channels):
    """Deterministic PyTorch-style (kaiming-uniform-ish bound) init."""
    keys = jax.random.split(key, 10)
    bound = 1.0 / np.sqrt(in_channels * KSIZE * KSIZE)
    aspp_w = jnp.stack([
        jax.random.uniform(keys[k], (out_channels, in_channels, KSIZE, KSIZE),
                           jnp.float32, -bound, bound) for k in range(4)])
    aspp_b = jnp.stack([
        jax.random.uniform(keys[4 + k], (out_channels,),
                           jnp.float32, -bound, bound) for k in range(4)])
    bs = 1.0 / np.sqrt(4 * out_channels)
    wsig = jax.random.uniform(keys[8], (1, 4 * out_channels, 1, 1),
                              jnp.float32, -bs, bs)
    bsig = jax.random.uniform(keys[9], (1,), jnp.float32, -bs, bs)
    return aspp_w, aspp_b, wsig, bsig


if __name__ == "__main__":
    key = jax.random.PRNGKey(0)
    kx, kp = jax.random.split(key)
    N, CIN, COUT, H, W = 2, 4, 8, 16, 16
    x = jax.random.normal(kx, (N, CIN, H, W), jnp.float32)
    params = init_params(kp, CIN, COUT)

    out = ran_forward(x, params)
    out = jax.block_until_ready(out)

    ref = ref_forward(x, params)
    np.testing.assert_allclose(np.asarray(out), np.asarray(ref),
                               rtol=1e-5, atol=2e-5)
    assert out.shape == (N, 1, H + 2, W + 2)
    print("KERNEL_OK")
</pallas_src>

<mosaic_0001>
module attributes {stable_mosaic.version = 11 : i64} {
  func.func @ran_kernel(%arg0: i32, %arg1: memref<144xf32, #tpu.memory_space<smem>>, %arg2: memref<1xf32, #tpu.memory_space<smem>>, %arg3: memref<1x4x24x24xf32, #tpu.memory_space<vmem>>, %arg4: memref<1x16x16xf32, #tpu.memory_space<vmem>>) attributes {dimension_semantics = [#tpu.dimension_semantics<parallel>], iteration_bounds = array<i64: 2>, scalar_prefetch = 0 : i64, scratch_operands = 0 : i64, tpu.core_type = #tpu.core_type<tc>, window_params = [{transform_indices = @transform_0, window_bounds = array<i64: 144>}, {transform_indices = @transform_1, window_bounds = array<i64: 1>}, {transform_indices = @transform_2, window_bounds = array<i64: 1, 4, 24, 24>}, {transform_indices = @transform_3, window_bounds = array<i64: 1, 16, 16>}]} {
    %c0 = arith.constant 0 : index
    %0 = memref.load %arg2[%c0] : memref<1xf32, #tpu.memory_space<smem>>
    %1 = vector.broadcast %0 : f32 to vector<16x16xf32>
    %c0_0 = arith.constant 0 : index
    %c0_1 = arith.constant 0 : index
    %c0_2 = arith.constant 0 : index
    %c0_3 = arith.constant 0 : index
    %2 = vector.load %arg3[%c0_0, %c0_1, %c0_2, %c0_3] : memref<1x4x24x24xf32, #tpu.memory_space<vmem>>, vector<1x1x24x24xf32>
    %3 = vector.shape_cast %2 : vector<1x1x24x24xf32> to vector<24x24xf32>
    %4 = vector.extract_strided_slice %3 {offsets = [3, 3], sizes = [16, 16], strides = [1, 1]} : vector<24x24xf32> to vector<16x16xf32>
    %c0_4 = arith.constant 0 : index
    %5 = memref.load %arg1[%c0_4] : memref<144xf32, #tpu.memory_space<smem>>
    %6 = vector.broadcast %5 : f32 to vector<16x16xf32>
    %7 = arith.mulf %4, %6 : vector<16x16xf32>
    %8 = arith.addf %1, %7 : vector<16x16xf32>
    %9 = vector.extract_strided_slice %3 {offsets = [3, 4], sizes = [16, 16], strides = [1, 1]} : vector<24x24xf32> to vector<16x16xf32>
    %c4 = arith.constant 4 : index
    %10 = memref.load %arg1[%c4] : memref<144xf32, #tpu.memory_space<smem>>
    %11 = vector.broadcast %10 : f32 to vector<16x16xf32>
    %12 = arith.mulf %9, %11 : vector<16x16xf32>
    %13 = arith.addf %8, %12 : vector<16x16xf32>
    %14 = vector.extract_strided_slice %3 {offsets = [3, 5], sizes = [16, 16], strides = [1, 1]} : vector<24x24xf32> to vector<16x16xf32>
    %c8 = arith.constant 8 : index
    %15 = memref.load %arg1[%c8] : memref<144xf32, #tpu.memory_space<smem>>
    %16 = vector.broadcast %15 : f32 to vector<16x16xf32>
    %17 = arith.mulf %14, %16 : vector<16x16xf32>
    %18 = arith.addf %13, %17 : vector<16x16xf32>
    %19 = vector.extract_strided_slice %3 {offsets = [4, 3], sizes = [16, 16], strides = [1, 1]} : vector<24x24xf32> to vector<16x16xf32>
    %c12 = arith.constant 12 : index
    %20 = memref.load %arg1[%c12] : memref<144xf32, #tpu.memory_space<smem>>
    %21 = vector.broadcast %20 : f32 to vector<16x16xf32>
    %22 = arith.mulf %19, %21 : vector<16x16xf32>
    %23 = arith.addf %18, %22 : vector<16x16xf32>
    %24 = vector.extract_strided_slice %3 {offsets = [4, 4], sizes = [16, 16], strides = [1, 1]} : vector<24x24xf32> to vector<16x16xf32>
    %c16 = arith.constant 16 : index
    %25 = memref.load %arg1[%c16] : memref<144xf32, #tpu.memory_space<smem>>
    %26 = vector.broadcast %25 : f32 to vector<16x16xf32>
    %27 = arith.mulf %24, %26 : vector<16x16xf32>
    %28 = arith.addf %23, %27 : vector<16x16xf32>
    %29 = vector.extract_strided_slice %3 {offsets = [4, 5], sizes = [16, 16], strides = [1, 1]} : vector<24x24xf32> to vector<16x16xf32>
    %c20 = arith.constant 20 : index
    %30 = memref.load %arg1[%c20] : memref<144xf32, #tpu.memory_space<smem>>
    %31 = vector.broadcast %30 : f32 to vector<16x16xf32>
    %32 = arith.mulf %29, %31 : vector<16x16xf32>
    %33 = arith.addf %28, %32 : vector<16x16xf32>
    %34 = vector.extract_strided_slice %3 {offsets = [5, 3], sizes = [16, 16], strides = [1, 1]} : vector<24x24xf32> to vector<16x16xf32>
    %c24 = arith.constant 24 : index
    %35 = memref.load %arg1[%c24] : memref<144xf32, #tpu.memory_space<smem>>
    %36 = vector.broadcast %35 : f32 to vector<16x16xf32>
    %37 = arith.mulf %34, %36 : vector<16x16xf32>
    %38 = arith.addf %33, %37 : vector<16x16xf32>
    %39 = vector.extract_strided_slice %3 {offsets = [5, 4], sizes = [16, 16], strides = [1, 1]} : vector<24x24xf32> to vector<16x16xf32>
    %c28 = arith.constant 28 : index
    %40 = memref.load %arg1[%c28] : memref<144xf32, #tpu.memory_space<smem>>
    %41 = vector.broadcast %40 : f32 to vector<16x16xf32>
    %42 = arith.mulf %39, %41 : vector<16x16xf32>
    %43 = arith.addf %38, %42 : vector<16x16xf32>
    %44 = vector.extract_strided_slice %3 {offsets = [5, 5], sizes = [16, 16], strides = [1, 1]} : vector<24x24xf32> to vector<16x16xf32>
    %c32 = arith.constant 32 : index
    %45 = memref.load %arg1[%c32] : memref<144xf32, #tpu.memory_space<smem>>
    %46 = vector.broadcast %45 : f32 to vector<16x16xf32>
    %47 = arith.mulf %44, %46 : vector<16x16xf32>
    %48 = arith.addf %43, %47 : vector<16x16xf32>
    %49 = vector.extract_strided_slice %3 {offsets = [2, 2], sizes = [16, 16], strides = [1, 1]} : vector<24x24xf32> to vector<16x16xf32>
    %c36 = arith.constant 36 : index
    %50 = memref.load %arg1[%c36] : memref<144xf32, #tpu.memory_space<smem>>
    %51 = vector.broadcast %50 : f32 to vector<16x16xf32>
    %52 = arith.mulf %49, %51 : vector<16x16xf32>
    %53 = arith.addf %48, %52 : vector<16x16xf32>
    %54 = vector.extract_strided_slice %3 {offsets = [2, 4], sizes = [16, 16], strides = [1, 1]} : vector<24x24xf32> to vector<16x16xf32>
    %c40 = arith.constant 40 : index
    %55 = memref.load %arg1[%c40] : memref<144xf32, #tpu.memory_space<smem>>
    %56 = vector.broadcast %55 : f32 to vector<16x16xf32>
    %57 = arith.mulf %54, %56 : vector<16x16xf32>
    %58 = arith.addf %53, %57 : vector<16x16xf32>
    %59 = vector.extract_strided_slice %3 {offsets = [2, 6], sizes = [16, 16], strides = [1, 1]} : vector<24x24xf32> to vector<16x16xf32>
    %c44 = arith.constant 44 : index
    %60 = memref.load %arg1[%c44] : memref<144xf32, #tpu.memory_space<smem>>
    %61 = vector.broadcast %60 : f32 to vector<16x16xf32>
    %62 = arith.mulf %59, %61 : vector<16x16xf32>
    %63 = arith.addf %58, %62 : vector<16x16xf32>
    %64 = vector.extract_strided_slice %3 {offsets = [4, 2], sizes = [16, 16], strides = [1, 1]} : vector<24x24xf32> to vector<16x16xf32>
    %c48 = arith.constant 48 : index
    %65 = memref.load %arg1[%c48] : memref<144xf32, #tpu.memory_space<smem>>
    %66 = vector.broadcast %65 : f32 to vector<16x16xf32>
    %67 = arith.mulf %64, %66 : vector<16x16xf32>
    %68 = arith.addf %63, %67 : vector<16x16xf32>
    %69 = vector.extract_strided_slice %3 {offsets = [4, 4], sizes = [16, 16], strides = [1, 1]} : vector<24x24xf32> to vector<16x16xf32>
    %c52 = arith.constant 52 : index
    %70 = memref.load %arg1[%c52] : memref<144xf32, #tpu.memory_space<smem>>
    %71 = vector.broadcast %70 : f32 to vector<16x16xf32>
    %72 = arith.mulf %69, %71 : vector<16x16xf32>
    %73 = arith.addf %68, %72 : vector<16x16xf32>
    %74 = vector.extract_strided_slice %3 {offsets = [4, 6], sizes = [16, 16], strides = [1, 1]} : vector<24x24xf32> to vector<16x16xf32>
    %c56 = arith.constant 56 : index
    %75 = memref.load %arg1[%c56] : memref<144xf32, #tpu.memory_space<smem>>
    %76 = vector.broadcast %75 : f32 to vector<16x16xf32>
    %77 = arith.mulf %74, %76 : vector<16x16xf32>
    %78 = arith.addf %73, %77 : vector<16x16xf32>
    %79 = vector.extract_strided_slice %3 {offsets = [6, 2], sizes = [16, 16], strides = [1, 1]} : vector<24x24xf32> to vector<16x16xf32>
    %c60 = arith.constant 60 : index
    %80 = memref.load %arg1[%c60] : memref<144xf32, #tpu.memory_space<smem>>
    %81 = vector.broadcast %80 : f32 to vector<16x16xf32>
    %82 = arith.mulf %79, %81 : vector<16x16xf32>
    %83 = arith.addf %78, %82 : vector<16x16xf32>
    %84 = vector.extract_strided_slice %3 {offsets = [6, 4], sizes = [16, 16], strides = [1, 1]} : vector<24x24xf32> to vector<16x16xf32>
    %c64 = arith.constant 64 : index
    %85 = memref.load %arg1[%c64] : memref<144xf32, #tpu.memory_space<smem>>
    %86 = vector.broadcast %85 : f32 to vector<16x16xf32>
    %87 = arith.mulf %84, %86 : vector<16x16xf32>
    %88 = arith.addf %83, %87 : vector<16x16xf32>
    %89 = vector.extract_strided_slice %3 {offsets = [6, 6], sizes = [16, 16], strides = [1, 1]} : vector<24x24xf32> to vector<16x16xf32>
    %c68 = arith.constant 68 : index
    %90 = memref.load %arg1[%c68] : memref<144xf32, #tpu.memory_space<smem>>
    %91 = vector.broadcast %90 : f32 to vector<16x16xf32>
    %92 = arith.mulf %89, %91 : vector<16x16xf32>
    %93 = arith.addf %88, %92 : vector<16x16xf32>
    %94 = vector.extract_strided_slice %3 {offsets = [1, 1], sizes = [16, 16], strides = [1, 1]} : vector<24x24xf32> to vector<16x16xf32>
    %c72 = arith.constant 72 : index
    %95 = memref.load %arg1[%c72] : memref<144xf32, #tpu.memory_space<smem>>
    %96 = vector.broadcast %95 : f32 to vector<16x16xf32>
    %97 = arith.mulf %94, %96 : vector<16x16xf32>
    %98 = arith.addf %93, %97 : vector<16x16xf32>
    %99 = vector.extract_strided_slice %3 {offsets = [1, 4], sizes = [16, 16], strides = [1, 1]} : vector<24x24xf32> to vector<16x16xf32>
    %c76 = arith.constant 76 : index
    %100 = memref.load %arg1[%c76] : memref<144xf32, #tpu.memory_space<smem>>
    %101 = vector.broadcast %100 : f32 to vector<16x16xf32>
    %102 = arith.mulf %99, %101 : vector<16x16xf32>
    %103 = arith.addf %98, %102 : vector<16x16xf32>
    %104 = vector.extract_strided_slice %3 {offsets = [1, 7], sizes = [16, 16], strides = [1, 1]} : vector<24x24xf32> to vector<16x16xf32>
    %c80 = arith.constant 80 : index
    %105 = memref.load %arg1[%c80] : memref<144xf32, #tpu.memory_space<smem>>
    %106 = vector.broadcast %105 : f32 to vector<16x16xf32>
    %107 = arith.mulf %104, %106 : vector<16x16xf32>
    %108 = arith.addf %103, %107 : vector<16x16xf32>
    %109 = vector.extract_strided_slice %3 {offsets = [4, 1], sizes = [16, 16], strides = [1, 1]} : vector<24x24xf32> to vector<16x16xf32>
    %c84 = arith.constant 84 : index
    %110 = memref.load %arg1[%c84] : memref<144xf32, #tpu.memory_space<smem>>
    %111 = vector.broadcast %110 : f32 to vector<16x16xf32>
    %112 = arith.mulf %109, %111 : vector<16x16xf32>
    %113 = arith.addf %108, %112 : vector<16x16xf32>
    %114 = vector.extract_strided_slice %3 {offsets = [4, 4], sizes = [16, 16], strides = [1, 1]} : vector<24x24xf32> to vector<16x16xf32>
    %c88 = arith.constant 88 : index
    %115 = memref.load %arg1[%c88] : memref<144xf32, #tpu.memory_space<smem>>
    %116 = vector.broadcast %115 : f32 to vector<16x16xf32>
    %117 = arith.mulf %114, %116 : vector<16x16xf32>
    %118 = arith.addf %113, %117 : vector<16x16xf32>
    %119 = vector.extract_strided_slice %3 {offsets = [4, 7], sizes = [16, 16], strides = [1, 1]} : vector<24x24xf32> to vector<16x16xf32>
    %c92 = arith.constant 92 : index
    %120 = memref.load %arg1[%c92] : memref<144xf32, #tpu.memory_space<smem>>
    %121 = vector.broadcast %120 : f32 to vector<16x16xf32>
    %122 = arith.mulf %119, %121 : vector<16x16xf32>
    %123 = arith.addf %118, %122 : vector<16x16xf32>
    %124 = vector.extract_strided_slice %3 {offsets = [7, 1], sizes = [16, 16], strides = [1, 1]} : vector<24x24xf32> to vector<16x16xf32>
    %c96 = arith.constant 96 : index
    %125 = memref.load %arg1[%c96] : memref<144xf32, #tpu.memory_space<smem>>
    %126 = vector.broadcast %125 : f32 to vector<16x16xf32>
    %127 = arith.mulf %124, %126 : vector<16x16xf32>
    %128 = arith.addf %123, %127 : vector<16x16xf32>
    %129 = vector.extract_strided_slice %3 {offsets = [7, 4], sizes = [16, 16], strides = [1, 1]} : vector<24x24xf32> to vector<16x16xf32>
    %c100 = arith.constant 100 : index
    %130 = memref.load %arg1[%c100] : memref<144xf32, #tpu.memory_space<smem>>
    %131 = vector.broadcast %130 : f32 to vector<16x16xf32>
    %132 = arith.mulf %129, %131 : vector<16x16xf32>
    %133 = arith.addf %128, %132 : vector<16x16xf32>
    %134 = vector.extract_strided_slice %3 {offsets = [7, 7], sizes = [16, 16], strides = [1, 1]} : vector<24x24xf32> to vector<16x16xf32>
    %c104 = arith.constant 104 : index
    %135 = memref.load %arg1[%c104] : memref<144xf32, #tpu.memory_space<smem>>
    %136 = vector.broadcast %135 : f32 to vector<16x16xf32>
    %137 = arith.mulf %134, %136 : vector<16x16xf32>
    %138 = arith.addf %133, %137 : vector<16x16xf32>
    %139 = vector.extract_strided_slice %3 {offsets = [0, 0], sizes = [16, 16], strides = [1, 1]} : vector<24x24xf32> to vector<16x16xf32>
    %c108 = arith.constant 108 : index
    %140 = memref.load %arg1[%c108] : memref<144xf32, #tpu.memory_space<smem>>
    %141 = vector.broadcast %140 : f32 to vector<16x16xf32>
    %142 = arith.mulf %139, %141 : vector<16x16xf32>
    %143 = arith.addf %138, %142 : vector<16x16xf32>
    %144 = vector.extract_strided_slice %3 {offsets = [0, 4], sizes = [16, 16], strides = [1, 1]} : vector<24x24xf32> to vector<16x16xf32>
    %c112 = arith.constant 112 : index
    %145 = memref.load %arg1[%c112] : memref<144xf32, #tpu.memory_space<smem>>
    %146 = vector.broadcast %145 : f32 to vector<16x16xf32>
    %147 = arith.mulf %144, %146 : vector<16x16xf32>
    %148 = arith.addf %143, %147 : vector<16x16xf32>
    %149 = vector.extract_strided_slice %3 {offsets = [0, 8], sizes = [16, 16], strides = [1, 1]} : vector<24x24xf32> to vector<16x16xf32>
    %c116 = arith.constant 116 : index
    %150 = memref.load %arg1[%c116] : memref<144xf32, #tpu.memory_space<smem>>
    %151 = vector.broadcast %150 : f32 to vector<16x16xf32>
    %152 = arith.mulf %149, %151 : vector<16x16xf32>
    %153 = arith.addf %148, %152 : vector<16x16xf32>
    %154 = vector.extract_strided_slice %3 {offsets = [4, 0], sizes = [16, 16], strides = [1, 1]} : vector<24x24xf32> to vector<16x16xf32>
    %c120 = arith.constant 120 : index
    %155 = memref.load %arg1[%c120] : memref<144xf32, #tpu.memory_space<smem>>
    %156 = vector.broadcast %155 : f32 to vector<16x16xf32>
    %157 = arith.mulf %154, %156 : vector<16x16xf32>
    %158 = arith.addf %153, %157 : vector<16x16xf32>
    %159 = vector.extract_strided_slice %3 {offsets = [4, 4], sizes = [16, 16], strides = [1, 1]} : vector<24x24xf32> to vector<16x16xf32>
    %c124 = arith.constant 124 : index
    %160 = memref.load %arg1[%c124] : memref<144xf32, #tpu.memory_space<smem>>
    %161 = vector.broadcast %160 : f32 to vector<16x16xf32>
    %162 = arith.mulf %159, %161 : vector<16x16xf32>
    %163 = arith.addf %158, %162 : vector<16x16xf32>
    %164 = vector.extract_strided_slice %3 {offsets = [4, 8], sizes = [16, 16], strides = [1, 1]} : vector<24x24xf32> to vector<16x16xf32>
    %c128 = arith.constant 128 : index
    %165 = memref.load %arg1[%c128] : memref<144xf32, #tpu.memory_space<smem>>
    %166 = vector.broadcast %165 : f32 to vector<16x16xf32>
    %167 = arith.mulf %164, %166 : vector<16x16xf32>
    %168 = arith.addf %163, %167 : vector<16x16xf32>
    %169 = vector.extract_strided_slice %3 {offsets = [8, 0], sizes = [16, 16], strides = [1, 1]} : vector<24x24xf32> to vector<16x16xf32>
    %c132 = arith.constant 132 : index
    %170 = memref.load %arg1[%c132] : memref<144xf32, #tpu.memory_space<smem>>
    %171 = vector.broadcast %170 : f32 to vector<16x16xf32>
    %172 = arith.mulf %169, %171 : vector<16x16xf32>
    %173 = arith.addf %168, %172 : vector<16x16xf32>
    %174 = vector.extract_strided_slice %3 {offsets = [8, 4], sizes = [16, 16], strides = [1, 1]} : vector<24x24xf32> to vector<16x16xf32>
    %c136 = arith.constant 136 : index
    %175 = memref.load %arg1[%c136] : memref<144xf32, #tpu.memory_space<smem>>
    %176 = vector.broadcast %175 : f32 to vector<16x16xf32>
    %177 = arith.mulf %174, %176 : vector<16x16xf32>
    %178 = arith.addf %173, %177 : vector<16x16xf32>
    %179 = vector.extract_strided_slice %3 {offsets = [8, 8], sizes = [16, 16], strides = [1, 1]} : vector<24x24xf32> to vector<16x16xf32>
    %c140 = arith.constant 140 : index
    %180 = memref.load %arg1[%c140] : memref<144xf32, #tpu.memory_space<smem>>
    %181 = vector.broadcast %180 : f32 to vector<16x16xf32>
    %182 = arith.mulf %179, %181 : vector<16x16xf32>
    %183 = arith.addf %178, %182 : vector<16x16xf32>
    %c0_5 = arith.constant 0 : index
    %c1 = arith.constant 1 : index
    %c0_6 = arith.constant 0 : index
    %c0_7 = arith.constant 0 : index
    %184 = vector.load %arg3[%c0_5, %c1, %c0_6, %c0_7] : memref<1x4x24x24xf32, #tpu.memory_space<vmem>>, vector<1x1x24x24xf32>
    %185 = vector.shape_cast %184 : vector<1x1x24x24xf32> to vector<24x24xf32>
    %186 = vector.extract_strided_slice %185 {offsets = [3, 3], sizes = [16, 16], strides = [1, 1]} : vector<24x24xf32> to vector<16x16xf32>
    %c1_8 = arith.constant 1 : index
    %187 = memref.load %arg1[%c1_8] : memref<144xf32, #tpu.memory_space<smem>>
    %188 = vector.broadcast %187 : f32 to vector<16x16xf32>
    %189 = arith.mulf %186, %188 : vector<16x16xf32>
    %190 = arith.addf %183, %189 : vector<16x16xf32>
    %191 = vector.extract_strided_slice %185 {offsets = [3, 4], sizes = [16, 16], strides = [1, 1]} : vector<24x24xf32> to vector<16x16xf32>
    %c5 = arith.constant 5 : index
    %192 = memref.load %arg1[%c5] : memref<144xf32, #tpu.memory_space<smem>>
    %193 = vector.broadcast %192 : f32 to vector<16x16xf32>
    %194 = arith.mulf %191, %193 : vector<16x16xf32>
    %195 = arith.addf %190, %194 : vector<16x16xf32>
    %196 = vector.extract_strided_slice %185 {offsets = [3, 5], sizes = [16, 16], strides = [1, 1]} : vector<24x24xf32> to vector<16x16xf32>
    %c9 = arith.constant 9 : index
    %197 = memref.load %arg1[%c9] : memref<144xf32, #tpu.memory_space<smem>>
    %198 = vector.broadcast %197 : f32 to vector<16x16xf32>
    %199 = arith.mulf %196, %198 : vector<16x16xf32>
    %200 = arith.addf %195, %199 : vector<16x16xf32>
    %201 = vector.extract_strided_slice %185 {offsets = [4, 3], sizes = [16, 16], strides = [1, 1]} : vector<24x24xf32> to vector<16x16xf32>
    %c13 = arith.constant 13 : index
    %202 = memref.load %arg1[%c13] : memref<144xf32, #tpu.memory_space<smem>>
    %203 = vector.broadcast %202 : f32 to vector<16x16xf32>
    %204 = arith.mulf %201, %203 : vector<16x16xf32>
    %205 = arith.addf %200, %204 : vector<16x16xf32>
    %206 = vector.extract_strided_slice %185 {offsets = [4, 4], sizes = [16, 16], strides = [1, 1]} : vector<24x24xf32> to vector<16x16xf32>
    %c17 = arith.constant 17 : index
    %207 = memref.load %arg1[%c17] : memref<144xf32, #tpu.memory_space<smem>>
    %208 = vector.broadcast %207 : f32 to vector<16x16xf32>
    %209 = arith.mulf %206, %208 : vector<16x16xf32>
    %210 = arith.addf %205, %209 : vector<16x16xf32>
    %211 = vector.extract_strided_slice %185 {offsets = [4, 5], sizes = [16, 16], strides = [1, 1]} : vector<24x24xf32> to vector<16x16xf32>
    %c21 = arith.constant 21 : index
    %212 = memref.load %arg1[%c21] : memref<144xf32, #tpu.memory_space<smem>>
    %213 = vector.broadcast %212 : f32 to vector<16x16xf32>
    %214 = arith.mulf %211, %213 : vector<16x16xf32>
    %215 = arith.addf %210, %214 : vector<16x16xf32>
    %216 = vector.extract_strided_slice %185 {offsets = [5, 3], sizes = [16, 16], strides = [1, 1]} : vector<24x24xf32> to vector<16x16xf32>
    %c25 = arith.constant 25 : index
    %217 = memref.load %arg1[%c25] : memref<144xf32, #tpu.memory_space<smem>>
    %218 = vector.broadcast %217 : f32 to vector<16x16xf32>
    %219 = arith.mulf %216, %218 : vector<16x16xf32>
    %220 = arith.addf %215, %219 : vector<16x16xf32>
    %221 = vector.extract_strided_slice %185 {offsets = [5, 4], sizes = [16, 16], strides = [1, 1]} : vector<24x24xf32> to vector<16x16xf32>
    %c29 = arith.constant 29 : index
    %222 = memref.load %arg1[%c29] : memref<144xf32, #tpu.memory_space<smem>>
    %223 = vector.broadcast %222 : f32 to vector<16x16xf32>
    %224 = arith.mulf %221, %223 : vector<16x16xf32>
    %225 = arith.addf %220, %224 : vector<16x16xf32>
    %226 = vector.extract_strided_slice %185 {offsets = [5, 5], sizes = [16, 16], strides = [1, 1]} : vector<24x24xf32> to vector<16x16xf32>
    %c33 = arith.constant 33 : index
    %227 = memref.load %arg1[%c33] : memref<144xf32, #tpu.memory_space<smem>>
    %228 = vector.broadcast %227 : f32 to vector<16x16xf32>
    %229 = arith.mulf %226, %228 : vector<16x16xf32>
    %230 = arith.addf %225, %229 : vector<16x16xf32>
    %231 = vector.extract_strided_slice %185 {offsets = [2, 2], sizes = [16, 16], strides = [1, 1]} : vector<24x24xf32> to vector<16x16xf32>
    %c37 = arith.constant 37 : index
    %232 = memref.load %arg1[%c37] : memref<144xf32, #tpu.memory_space<smem>>
    %233 = vector.broadcast %232 : f32 to vector<16x16xf32>
    %234 = arith.mulf %231, %233 : vector<16x16xf32>
    %235 = arith.addf %230, %234 : vector<16x16xf32>
    %236 = vector.extract_strided_slice %185 {offsets = [2, 4], sizes = [16, 16], strides = [1, 1]} : vector<24x24xf32> to vector<16x16xf32>
    %c41 = arith.constant 41 : index
    %237 = memref.load %arg1[%c41] : memref<144xf32, #tpu.memory_space<smem>>
    %238 = vector.broadcast %237 : f32 to vector<16x16xf32>
    %239 = arith.mulf %236, %238 : vector<16x16xf32>
    %240 = arith.addf %235, %239 : vector<16x16xf32>
    %241 = vector.extract_strided_slice %185 {offsets = [2, 6], sizes = [16, 16], strides = [1, 1]} : vector<24x24xf32> to vector<16x16xf32>
    %c45 = arith.constant 45 : index
    %242 = memref.load %arg1[%c45] : memref<144xf32, #tpu.memory_space<smem>>
    %243 = vector.broadcast %242 : f32 to vector<16x16xf32>
    %244 = arith.mulf %241, %243 : vector<16x16xf32>
    %245 = arith.addf %240, %244 : vector<16x16xf32>
    %246 = vector.extract_strided_slice %185 {offsets = [4, 2], sizes = [16, 16], strides = [1, 1]} : vector<24x24xf32> to vector<16x16xf32>
    %c49 = arith.constant 49 : index
    %247 = memref.load %arg1[%c49] : memref<144xf32, #tpu.memory_space<smem>>
    %248 = vector.broadcast %247 : f32 to vector<16x16xf32>
    %249 = arith.mulf %246, %248 : vector<16x16xf32>
    %250 = arith.addf %245, %249 : vector<16x16xf32>
    %251 = vector.extract_strided_slice %185 {offsets = [4, 4], sizes = [16, 16], strides = [1, 1]} : vector<24x24xf32> to vector<16x16xf32>
    %c53 = arith.constant 53 : index
    %252 = memref.load %arg1[%c53] : memref<144xf32, #tpu.memory_space<smem>>
    %253 = vector.broadcast %252 : f32 to vector<16x16xf32>
    %254 = arith.mulf %251, %253 : vector<16x16xf32>
    %255 = arith.addf %250, %254 : vector<16x16xf32>
    %256 = vector.extract_strided_slice %185 {offsets = [4, 6], sizes = [16, 16], strides = [1, 1]} : vector<24x24xf32> to vector<16x16xf32>
    %c57 = arith.constant 57 : index
    %257 = memref.load %arg1[%c57] : memref<144xf32, #tpu.memory_space<smem>>
    %258 = vector.broadcast %257 : f32 to vector<16x16xf32>
    %259 = arith.mulf %256, %258 : vector<16x16xf32>
    %260 = arith.addf %255, %259 : vector<16x16xf32>
    %261 = vector.extract_strided_slice %185 {offsets = [6, 2], sizes = [16, 16], strides = [1, 1]} : vector<24x24xf32> to vector<16x16xf32>
    %c61 = arith.constant 61 : index
    %262 = memref.load %arg1[%c61] : memref<144xf32, #tpu.memory_space<smem>>
    %263 = vector.broadcast %262 : f32 to vector<16x16xf32>
    %264 = arith.mulf %261, %263 : vector<16x16xf32>
    %265 = arith.addf %260, %264 : vector<16x16xf32>
    %266 = vector.extract_strided_slice %185 {offsets = [6, 4], sizes = [16, 16], strides = [1, 1]} : vector<24x24xf32> to vector<16x16xf32>
    %c65 = arith.constant 65 : index
    %267 = memref.load %arg1[%c65] : memref<144xf32, #tpu.memory_space<smem>>
    %268 = vector.broadcast %267 : f32 to vector<16x16xf32>
    %269 = arith.mulf %266, %268 : vector<16x16xf32>
    %270 = arith.addf %265, %269 : vector<16x16xf32>
    %271 = vector.extract_strided_slice %185 {offsets = [6, 6], sizes = [16, 16], strides = [1, 1]} : vector<24x24xf32> to vector<16x16xf32>
    %c69 = arith.constant 69 : index
    %272 = memref.load %arg1[%c69] : memref<144xf32, #tpu.memory_space<smem>>
    %273 = vector.broadcast %272 : f32 to vector<16x16xf32>
    %274 = arith.mulf %271, %273 : vector<16x16xf32>
    %275 = arith.addf %270, %274 : vector<16x16xf32>
    %276 = vector.extract_strided_slice %185 {offsets = [1, 1], sizes = [16, 16], strides = [1, 1]} : vector<24x24xf32> to vector<16x16xf32>
    %c73 = arith.constant 73 : index
    %277 = memref.load %arg1[%c73] : memref<144xf32, #tpu.memory_space<smem>>
    %278 = vector.broadcast %277 : f32 to vector<16x16xf32>
    %279 = arith.mulf %276, %278 : vector<16x16xf32>
    %280 = arith.addf %275, %279 : vector<16x16xf32>
    %281 = vector.extract_strided_slice %185 {offsets = [1, 4], sizes = [16, 16], strides = [1, 1]} : vector<24x24xf32> to vector<16x16xf32>
    %c77 = arith.constant 77 : index
    %282 = memref.load %arg1[%c77] : memref<144xf32, #tpu.memory_space<smem>>
    %283 = vector.broadcast %282 : f32 to vector<16x16xf32>
    %284 = arith.mulf %281, %283 : vector<16x16xf32>
    %285 = arith.addf %280, %284 : vector<16x16xf32>
    %286 = vector.extract_strided_slice %185 {offsets = [1, 7], sizes = [16, 16], strides = [1, 1]} : vector<24x24xf32> to vector<16x16xf32>
    %c81 = arith.constant 81 : index
    %287 = memref.load %arg1[%c81] : memref<144xf32, #tpu.memory_space<smem>>
    %288 = vector.broadcast %287 : f32 to vector<16x16xf32>
    %289 = arith.mulf %286, %288 : vector<16x16xf32>
    %290 = arith.addf %285, %289 : vector<16x16xf32>
    %291 = vector.extract_strided_slice %185 {offsets = [4, 1], sizes = [16, 16], strides = [1, 1]} : vector<24x24xf32> to vector<16x16xf32>
    %c85 = arith.constant 85 : index
    %292 = memref.load %arg1[%c85] : memref<144xf32, #tpu.memory_space<smem>>
    %293 = vector.broadcast %292 : f32 to vector<16x16xf32>
    %294 = arith.mulf %291, %293 : vector<16x16xf32>
    %295 = arith.addf %290, %294 : vector<16x16xf32>
    %296 = vector.extract_strided_slice %185 {offsets = [4, 4], sizes = [16, 16], strides = [1, 1]} : vector<24x24xf32> to vector<16x16xf32>
    %c89 = arith.constant 89 : index
    %297 = memref.load %arg1[%c89] : memref<144xf32, #tpu.memory_space<smem>>
    %298 = vector.broadcast %297 : f32 to vector<16x16xf32>
    %299 = arith.mulf %296, %298 : vector<16x16xf32>
    %300 = arith.addf %295, %299 : vector<16x16xf32>
    %301 = vector.extract_strided_slice %185 {offsets = [4, 7], sizes = [16, 16], strides = [1, 1]} : vector<24x24xf32> to vector<16x16xf32>
    %c93 = arith.constant 93 : index
    %302 = memref.load %arg1[%c93] : memref<144xf32, #tpu.memory_space<smem>>
    %303 = vector.broadcast %302 : f32 to vector<16x16xf32>
    %304 = arith.mulf %301, %303 : vector<16x16xf32>
    %305 = arith.addf %300, %304 : vector<16x16xf32>
    %306 = vector.extract_strided_slice %185 {offsets = [7, 1], sizes = [16, 16], strides = [1, 1]} : vector<24x24xf32> to vector<16x16xf32>
    %c97 = arith.constant 97 : index
    %307 = memref.load %arg1[%c97] : memref<144xf32, #tpu.memory_space<smem>>
    %308 = vector.broadcast %307 : f32 to vector<16x16xf32>
    %309 = arith.mulf %306, %308 : vector<16x16xf32>
    %310 = arith.addf %305, %309 : vector<16x16xf32>
    %311 = vector.extract_strided_slice %185 {offsets = [7, 4], sizes = [16, 16], strides = [1, 1]} : vector<24x24xf32> to vector<16x16xf32>
    %c101 = arith.constant 101 : index
    %312 = memref.load %arg1[%c101] : memref<144xf32, #tpu.memory_space<smem>>
    %313 = vector.broadcast %312 : f32 to vector<16x16xf32>
    %314 = arith.mulf %311, %313 : vector<16x16xf32>
    %315 = arith.addf %310, %314 : vector<16x16xf32>
    %316 = vector.extract_strided_slice %185 {offsets = [7, 7], sizes = [16, 16], strides = [1, 1]} : vector<24x24xf32> to vector<16x16xf32>
    %c105 = arith.constant 105 : index
    %317 = memref.load %arg1[%c105] : memref<144xf32, #tpu.memory_space<smem>>
    %318 = vector.broadcast %317 : f32 to vector<16x16xf32>
    %319 = arith.mulf %316, %318 : vector<16x16xf32>
    %320 = arith.addf %315, %319 : vector<16x16xf32>
    %321 = vector.extract_strided_slice %185 {offsets = [0, 0], sizes = [16, 16], strides = [1, 1]} : vector<24x24xf32> to vector<16x16xf32>
    %c109 = arith.constant 109 : index
    %322 = memref.load %arg1[%c109] : memref<144xf32, #tpu.memory_space<smem>>
    %323 = vector.broadcast %322 : f32 to vector<16x16xf32>
    %324 = arith.mulf %321, %323 : vector<16x16xf32>
    %325 = arith.addf %320, %324 : vector<16x16xf32>
    %326 = vector.extract_strided_slice %185 {offsets = [0, 4], sizes = [16, 16], strides = [1, 1]} : vector<24x24xf32> to vector<16x16xf32>
    %c113 = arith.constant 113 : index
    %327 = memref.load %arg1[%c113] : memref<144xf32, #tpu.memory_space<smem>>
    %328 = vector.broadcast %327 : f32 to vector<16x16xf32>
    %329 = arith.mulf %326, %328 : vector<16x16xf32>
    %330 = arith.addf %325, %329 : vector<16x16xf32>
    %331 = vector.extract_strided_slice %185 {offsets = [0, 8], sizes = [16, 16], strides = [1, 1]} : vector<24x24xf32> to vector<16x16xf32>
    %c117 = arith.constant 117 : index
    %332 = memref.load %arg1[%c117] : memref<144xf32, #tpu.memory_space<smem>>
    %333 = vector.broadcast %332 : f32 to vector<16x16xf32>
    %334 = arith.mulf %331, %333 : vector<16x16xf32>
    %335 = arith.addf %330, %334 : vector<16x16xf32>
    %336 = vector.extract_strided_slice %185 {offsets = [4, 0], sizes = [16, 16], strides = [1, 1]} : vector<24x24xf32> to vector<16x16xf32>
    %c121 = arith.constant 121 : index
    %337 = memref.load %arg1[%c121] : memref<144xf32, #tpu.memory_space<smem>>
    %338 = vector.broadcast %337 : f32 to vector<16x16xf32>
    %339 = arith.mulf %336, %338 : vector<16x16xf32>
    %340 = arith.addf %335, %339 : vector<16x16xf32>
    %341 = vector.extract_strided_slice %185 {offsets = [4, 4], sizes = [16, 16], strides = [1, 1]} : vector<24x24xf32> to vector<16x16xf32>
    %c125 = arith.constant 125 : index
    %342 = memref.load %arg1[%c125] : memref<144xf32, #tpu.memory_space<smem>>
    %343 = vector.broadcast %342 : f32 to vector<16x16xf32>
    %344 = arith.mulf %341, %343 : vector<16x16xf32>
    %345 = arith.addf %340, %344 : vector<16x16xf32>
    %346 = vector.extract_strided_slice %185 {offsets = [4, 8], sizes = [16, 16], strides = [1, 1]} : vector<24x24xf32> to vector<16x16xf32>
    %c129 = arith.constant 129 : index
    %347 = memref.load %arg1[%c129] : memref<144xf32, #tpu.memory_space<smem>>
    %348 = vector.broadcast %347 : f32 to vector<16x16xf32>
    %349 = arith.mulf %346, %348 : vector<16x16xf32>
    %350 = arith.addf %345, %349 : vector<16x16xf32>
    %351 = vector.extract_strided_slice %185 {offsets = [8, 0], sizes = [16, 16], strides = [1, 1]} : vector<24x24xf32> to vector<16x16xf32>
    %c133 = arith.constant 133 : index
    %352 = memref.load %arg1[%c133] : memref<144xf32, #tpu.memory_space<smem>>
    %353 = vector.broadcast %352 : f32 to vector<16x16xf32>
    %354 = arith.mulf %351, %353 : vector<16x16xf32>
    %355 = arith.addf %350, %354 : vector<16x16xf32>
    %356 = vector.extract_strided_slice %185 {offsets = [8, 4], sizes = [16, 16], strides = [1, 1]} : vector<24x24xf32> to vector<16x16xf32>
    %c137 = arith.constant 137 : index
    %357 = memref.load %arg1[%c137] : memref<144xf32, #tpu.memory_space<smem>>
    %358 = vector.broadcast %357 : f32 to vector<16x16xf32>
    %359 = arith.mulf %356, %358 : vector<16x16xf32>
    %360 = arith.addf %355, %359 : vector<16x16xf32>
    %361 = vector.extract_strided_slice %185 {offsets = [8, 8], sizes = [16, 16], strides = [1, 1]} : vector<24x24xf32> to vector<16x16xf32>
    %c141 = arith.constant 141 : index
    %362 = memref.load %arg1[%c141] : memref<144xf32, #tpu.memory_space<smem>>
    %363 = vector.broadcast %362 : f32 to vector<16x16xf32>
    %364 = arith.mulf %361, %363 : vector<16x16xf32>
    %365 = arith.addf %360, %364 : vector<16x16xf32>
    %c0_9 = arith.constant 0 : index
    %c2 = arith.constant 2 : index
    %c0_10 = arith.constant 0 : index
    %c0_11 = arith.constant 0 : index
    %366 = vector.load %arg3[%c0_9, %c2, %c0_10, %c0_11] : memref<1x4x24x24xf32, #tpu.memory_space<vmem>>, vector<1x1x24x24xf32>
    %367 = vector.shape_cast %366 : vector<1x1x24x24xf32> to vector<24x24xf32>
    %368 = vector.extract_strided_slice %367 {offsets = [3, 3], sizes = [16, 16], strides = [1, 1]} : vector<24x24xf32> to vector<16x16xf32>
    %c2_12 = arith.constant 2 : index
    %369 = memref.load %arg1[%c2_12] : memref<144xf32, #tpu.memory_space<smem>>
    %370 = vector.broadcast %369 : f32 to vector<16x16xf32>
    %371 = arith.mulf %368, %370 : vector<16x16xf32>
    %372 = arith.addf %365, %371 : vector<16x16xf32>
    %373 = vector.extract_strided_slice %367 {offsets = [3, 4], sizes = [16, 16], strides = [1, 1]} : vector<24x24xf32> to vector<16x16xf32>
    %c6 = arith.constant 6 : index
    %374 = memref.load %arg1[%c6] : memref<144xf32, #tpu.memory_space<smem>>
    %375 = vector.broadcast %374 : f32 to vector<16x16xf32>
    %376 = arith.mulf %373, %375 : vector<16x16xf32>
    %377 = arith.addf %372, %376 : vector<16x16xf32>
    %378 = vector.extract_strided_slice %367 {offsets = [3, 5], sizes = [16, 16], strides = [1, 1]} : vector<24x24xf32> to vector<16x16xf32>
    %c10 = arith.constant 10 : index
    %379 = memref.load %arg1[%c10] : memref<144xf32, #tpu.memory_space<smem>>
    %380 = vector.broadcast %379 : f32 to vector<16x16xf32>
    %381 = arith.mulf %378, %380 : vector<16x16xf32>
    %382 = arith.addf %377, %381 : vector<16x16xf32>
    %383 = vector.extract_strided_slice %367 {offsets = [4, 3], sizes = [16, 16], strides = [1, 1]} : vector<24x24xf32> to vector<16x16xf32>
    %c14 = arith.constant 14 : index
    %384 = memref.load %arg1[%c14] : memref<144xf32, #tpu.memory_space<smem>>
    %385 = vector.broadcast %384 : f32 to vector<16x16xf32>
    %386 = arith.mulf %383, %385 : vector<16x16xf32>
    %387 = arith.addf %382, %386 : vector<16x16xf32>
    %388 = vector.extract_strided_slice %367 {offsets = [4, 4], sizes = [16, 16], strides = [1, 1]} : vector<24x24xf32> to vector<16x16xf32>
    %c18 = arith.constant 18 : index
    %389 = memref.load %arg1[%c18] : memref<144xf32, #tpu.memory_space<smem>>
    %390 = vector.broadcast %389 : f32 to vector<16x16xf32>
    %391 = arith.mulf %388, %390 : vector<16x16xf32>
    %392 = arith.addf %387, %391 : vector<16x16xf32>
    %393 = vector.extract_strided_slice %367 {offsets = [4, 5], sizes = [16, 16], strides = [1, 1]} : vector<24x24xf32> to vector<16x16xf32>
    %c22 = arith.constant 22 : index
    %394 = memref.load %arg1[%c22] : memref<144xf32, #tpu.memory_space<smem>>
    %395 = vector.broadcast %394 : f32 to vector<16x16xf32>
    %396 = arith.mulf %393, %395 : vector<16x16xf32>
    %397 = arith.addf %392, %396 : vector<16x16xf32>
    %398 = vector.extract_strided_slice %367 {offsets = [5, 3], sizes = [16, 16], strides = [1, 1]} : vector<24x24xf32> to vector<16x16xf32>
    %c26 = arith.constant 26 : index
    %399 = memref.load %arg1[%c26] : memref<144xf32, #tpu.memory_space<smem>>
    %400 = vector.broadcast %399 : f32 to vector<16x16xf32>
    %401 = arith.mulf %398, %400 : vector<16x16xf32>
    %402 = arith.addf %397, %401 : vector<16x16xf32>
    %403 = vector.extract_strided_slice %367 {offsets = [5, 4], sizes = [16, 16], strides = [1, 1]} : vector<24x24xf32> to vector<16x16xf32>
    %c30 = arith.constant 30 : index
    %404 = memref.load %arg1[%c30] : memref<144xf32, #tpu.memory_space<smem>>
    %405 = vector.broadcast %404 : f32 to vector<16x16xf32>
    %406 = arith.mulf %403, %405 : vector<16x16xf32>
    %407 = arith.addf %402, %406 : vector<16x16xf32>
    %408 = vector.extract_strided_slice %367 {offsets = [5, 5], sizes = [16, 16], strides = [1, 1]} : vector<24x24xf32> to vector<16x16xf32>
    %c34 = arith.constant 34 : index
    %409 = memref.load %arg1[%c34] : memref<144xf32, #tpu.memory_space<smem>>
    %410 = vector.broadcast %409 : f32 to vector<16x16xf32>
    %411 = arith.mulf %408, %410 : vector<16x16xf32>
    %412 = arith.addf %407, %411 : vector<16x16xf32>
    %413 = vector.extract_strided_slice %367 {offsets = [2, 2], sizes = [16, 16], strides = [1, 1]} : vector<24x24xf32> to vector<16x16xf32>
    %c38 = arith.constant 38 : index
    %414 = memref.load %arg1[%c38] : memref<144xf32, #tpu.memory_space<smem>>
    %415 = vector.broadcast %414 : f32 to vector<16x16xf32>
    %416 = arith.mulf %413, %415 : vector<16x16xf32>
    %417 = arith.addf %412, %416 : vector<16x16xf32>
    %418 = vector.extract_strided_slice %367 {offsets = [2, 4], sizes = [16, 16], strides = [1, 1]} : vector<24x24xf32> to vector<16x16xf32>
    %c42 = arith.constant 42 : index
    %419 = memref.load %arg1[%c42] : memref<144xf32, #tpu.memory_space<smem>>
    %420 = vector.broadcast %419 : f32 to vector<16x16xf32>
    %421 = arith.mulf %418, %420 : vector<16x16xf32>
    %422 = arith.addf %417, %421 : vector<16x16xf32>
    %423 = vector.extract_strided_slice %367 {offsets = [2, 6], sizes = [16, 16], strides = [1, 1]} : vector<24x24xf32> to vector<16x16xf32>
    %c46 = arith.constant 46 : index
    %424 = memref.load %arg1[%c46] : memref<144xf32, #tpu.memory_space<smem>>
    %425 = vector.broadcast %424 : f32 to vector<16x16xf32>
    %426 = arith.mulf %423, %425 : vector<16x16xf32>
    %427 = arith.addf %422, %426 : vector<16x16xf32>
    %428 = vector.extract_strided_slice %367 {offsets = [4, 2], sizes = [16, 16], strides = [1, 1]} : vector<24x24xf32> to vector<16x16xf32>
    %c50 = arith.constant 50 : index
    %429 = memref.load %arg1[%c50] : memref<144xf32, #tpu.memory_space<smem>>
    %430 = vector.broadcast %429 : f32 to vector<16x16xf32>
    %431 = arith.mulf %428, %430 : vector<16x16xf32>
    %432 = arith.addf %427, %431 : vector<16x16xf32>
    %433 = vector.extract_strided_slice %367 {offsets = [4, 4], sizes = [16, 16], strides = [1, 1]} : vector<24x24xf32> to vector<16x16xf32>
    %c54 = arith.constant 54 : index
    %434 = memref.load %arg1[%c54] : memref<144xf32, #tpu.memory_space<smem>>
    %435 = vector.broadcast %434 : f32 to vector<16x16xf32>
    %436 = arith.mulf %433, %435 : vector<16x16xf32>
    %437 = arith.addf %432, %436 : vector<16x16xf32>
    %438 = vector.extract_strided_slice %367 {offsets = [4, 6], sizes = [16, 16], strides = [1, 1]} : vector<24x24xf32> to vector<16x16xf32>
    %c58 = arith.constant 58 : index
    %439 = memref.load %arg1[%c58] : memref<144xf32, #tpu.memory_space<smem>>
    %440 = vector.broadcast %439 : f32 to vector<16x16xf32>
    %441 = arith.mulf %438, %440 : vector<16x16xf32>
    %442 = arith.addf %437, %441 : vector<16x16xf32>
    %443 = vector.extract_strided_slice %367 {offsets = [6, 2], sizes = [16, 16], strides = [1, 1]} : vector<24x24xf32> to vector<16x16xf32>
    %c62 = arith.constant 62 : index
    %444 = memref.load %arg1[%c62] : memref<144xf32, #tpu.memory_space<smem>>
    %445 = vector.broadcast %444 : f32 to vector<16x16xf32>
    %446 = arith.mulf %443, %445 : vector<16x16xf32>
    %447 = arith.addf %442, %446 : vector<16x16xf32>
    %448 = vector.extract_strided_slice %367 {offsets = [6, 4], sizes = [16, 16], strides = [1, 1]} : vector<24x24xf32> to vector<16x16xf32>
    %c66 = arith.constant 66 : index
    %449 = memref.load %arg1[%c66] : memref<144xf32, #tpu.memory_space<smem>>
    %450 = vector.broadcast %449 : f32 to vector<16x16xf32>
    %451 = arith.mulf %448, %450 : vector<16x16xf32>
    %452 = arith.addf %447, %451 : vector<16x16xf32>
    %453 = vector.extract_strided_slice %367 {offsets = [6, 6], sizes = [16, 16], strides = [1, 1]} : vector<24x24xf32> to vector<16x16xf32>
    %c70 = arith.constant 70 : index
    %454 = memref.load %arg1[%c70] : memref<144xf32, #tpu.memory_space<smem>>
    %455 = vector.broadcast %454 : f32 to vector<16x16xf32>
    %456 = arith.mulf %453, %455 : vector<16x16xf32>
    %457 = arith.addf %452, %456 : vector<16x16xf32>
    %458 = vector.extract_strided_slice %367 {offsets = [1, 1], sizes = [16, 16], strides = [1, 1]} : vector<24x24xf32> to vector<16x16xf32>
    %c74 = arith.constant 74 : index
    %459 = memref.load %arg1[%c74] : memref<144xf32, #tpu.memory_space<smem>>
    %460 = vector.broadcast %459 : f32 to vector<16x16xf32>
    %461 = arith.mulf %458, %460 : vector<16x16xf32>
    %462 = arith.addf %457, %461 : vector<16x16xf32>
    %463 = vector.extract_strided_slice %367 {offsets = [1, 4], sizes = [16, 16], strides = [1, 1]} : vector<24x24xf32> to vector<16x16xf32>
    %c78 = arith.constant 78 : index
    %464 = memref.load %arg1[%c78] : memref<144xf32, #tpu.memory_space<smem>>
    %465 = vector.broadcast %464 : f32 to vector<16x16xf32>
    %466 = arith.mulf %463, %465 : vector<16x16xf32>
    %467 = arith.addf %462, %466 : vector<16x16xf32>
    %468 = vector.extract_strided_slice %367 {offsets = [1, 7], sizes = [16, 16], strides = [1, 1]} : vector<24x24xf32> to vector<16x16xf32>
    %c82 = arith.constant 82 : index
    %469 = memref.load %arg1[%c82] : memref<144xf32, #tpu.memory_space<smem>>
    %470 = vector.broadcast %469 : f32 to vector<16x16xf32>
    %471 = arith.mulf %468, %470 : vector<16x16xf32>
    %472 = arith.addf %467, %471 : vector<16x16xf32>
    %473 = vector.extract_strided_slice %367 {offsets = [4, 1], sizes = [16, 16], strides = [1, 1]} : vector<24x24xf32> to vector<16x16xf32>
    %c86 = arith.constant 86 : index
    %474 = memref.load %arg1[%c86] : memref<144xf32, #tpu.memory_space<smem>>
    %475 = vector.broadcast %474 : f32 to vector<16x16xf32>
    %476 = arith.mulf %473, %475 : vector<16x16xf32>
    %477 = arith.addf %472, %476 : vector<16x16xf32>
    %478 = vector.extract_strided_slice %367 {offsets = [4, 4], sizes = [16, 16], strides = [1, 1]} : vector<24x24xf32> to vector<16x16xf32>
    %c90 = arith.constant 90 : index
    %479 = memref.load %arg1[%c90] : memref<144xf32, #tpu.memory_space<smem>>
    %480 = vector.broadcast %479 : f32 to vector<16x16xf32>
    %481 = arith.mulf %478, %480 : vector<16x16xf32>
    %482 = arith.addf %477, %481 : vector<16x16xf32>
    %483 = vector.extract_strided_slice %367 {offsets = [4, 7], sizes = [16, 16], strides = [1, 1]} : vector<24x24xf32> to vector<16x16xf32>
    %c94 = arith.constant 94 : index
    %484 = memref.load %arg1[%c94] : memref<144xf32, #tpu.memory_space<smem>>
    %485 = vector.broadcast %484 : f32 to vector<16x16xf32>
    %486 = arith.mulf %483, %485 : vector<16x16xf32>
    %487 = arith.addf %482, %486 : vector<16x16xf32>
    %488 = vector.extract_strided_slice %367 {offsets = [7, 1], sizes = [16, 16], strides = [1, 1]} : vector<24x24xf32> to vector<16x16xf32>
    %c98 = arith.constant 98 : index
    %489 = memref.load %arg1[%c98] : memref<144xf32, #tpu.memory_space<smem>>
    %490 = vector.broadcast %489 : f32 to vector<16x16xf32>
    %491 = arith.mulf %488, %490 : vector<16x16xf32>
    %492 = arith.addf %487, %491 : vector<16x16xf32>
    %493 = vector.extract_strided_slice %367 {offsets = [7, 4], sizes = [16, 16], strides = [1, 1]} : vector<24x24xf32> to vector<16x16xf32>
    %c102 = arith.constant 102 : index
    %494 = memref.load %arg1[%c102] : memref<144xf32, #tpu.memory_space<smem>>
    %495 = vector.broadcast %494 : f32 to vector<16x16xf32>
    %496 = arith.mulf %493, %495 : vector<16x16xf32>
    %497 = arith.addf %492, %496 : vector<16x16xf32>
    %498 = vector.extract_strided_slice %367 {offsets = [7, 7], sizes = [16, 16], strides = [1, 1]} : vector<24x24xf32> to vector<16x16xf32>
    %c106 = arith.constant 106 : index
    %499 = memref.load %arg1[%c106] : memref<144xf32, #tpu.memory_space<smem>>
    %500 = vector.broadcast %499 : f32 to vector<16x16xf32>
    %501 = arith.mulf %498, %500 : vector<16x16xf32>
    %502 = arith.addf %497, %501 : vector<16x16xf32>
    %503 = vector.extract_strided_slice %367 {offsets = [0, 0], sizes = [16, 16], strides = [1, 1]} : vector<24x24xf32> to vector<16x16xf32>
    %c110 = arith.constant 110 : index
    %504 = memref.load %arg1[%c110] : memref<144xf32, #tpu.memory_space<smem>>
    %505 = vector.broadcast %504 : f32 to vector<16x16xf32>
    %506 = arith.mulf %503, %505 : vector<16x16xf32>
    %507 = arith.addf %502, %506 : vector<16x16xf32>
    %508 = vector.extract_strided_slice %367 {offsets = [0, 4], sizes = [16, 16], strides = [1, 1]} : vector<24x24xf32> to vector<16x16xf32>
    %c114 = arith.constant 114 : index
    %509 = memref.load %arg1[%c114] : memref<144xf32, #tpu.memory_space<smem>>
    %510 = vector.broadcast %509 : f32 to vector<16x16xf32>
    %511 = arith.mulf %508, %510 : vector<16x16xf32>
    %512 = arith.addf %507, %511 : vector<16x16xf32>
    %513 = vector.extract_strided_slice %367 {offsets = [0, 8], sizes = [16, 16], strides = [1, 1]} : vector<24x24xf32> to vector<16x16xf32>
    %c118 = arith.constant 118 : index
    %514 = memref.load %arg1[%c118] : memref<144xf32, #tpu.memory_space<smem>>
    %515 = vector.broadcast %514 : f32 to vector<16x16xf32>
    %516 = arith.mulf %513, %515 : vector<16x16xf32>
    %517 = arith.addf %512, %516 : vector<16x16xf32>
    %518 = vector.extract_strided_slice %367 {offsets = [4, 0], sizes = [16, 16], strides = [1, 1]} : vector<24x24xf32> to vector<16x16xf32>
    %c122 = arith.constant 122 : index
    %519 = memref.load %arg1[%c122] : memref<144xf32, #tpu.memory_space<smem>>
    %520 = vector.broadcast %519 : f32 to vector<16x16xf32>
    %521 = arith.mulf %518, %520 : vector<16x16xf32>
    %522 = arith.addf %517, %521 : vector<16x16xf32>
    %523 = vector.extract_strided_slice %367 {offsets = [4, 4], sizes = [16, 16], strides = [1, 1]} : vector<24x24xf32> to vector<16x16xf32>
    %c126 = arith.constant 126 : index
    %524 = memref.load %arg1[%c126] : memref<144xf32, #tpu.memory_space<smem>>
    %525 = vector.broadcast %524 : f32 to vector<16x16xf32>
    %526 = arith.mulf %523, %525 : vector<16x16xf32>
    %527 = arith.addf %522, %526 : vector<16x16xf32>
    %528 = vector.extract_strided_slice %367 {offsets = [4, 8], sizes = [16, 16], strides = [1, 1]} : vector<24x24xf32> to vector<16x16xf32>
    %c130 = arith.constant 130 : index
    %529 = memref.load %arg1[%c130] : memref<144xf32, #tpu.memory_space<smem>>
    %530 = vector.broadcast %529 : f32 to vector<16x16xf32>
    %531 = arith.mulf %528, %530 : vector<16x16xf32>
    %532 = arith.addf %527, %531 : vector<16x16xf32>
    %533 = vector.extract_strided_slice %367 {offsets = [8, 0], sizes = [16, 16], strides = [1, 1]} : vector<24x24xf32> to vector<16x16xf32>
    %c134 = arith.constant 134 : index
    %534 = memref.load %arg1[%c134] : memref<144xf32, #tpu.memory_space<smem>>
    %535 = vector.broadcast %534 : f32 to vector<16x16xf32>
    %536 = arith.mulf %533, %535 : vector<16x16xf32>
    %537 = arith.addf %532, %536 : vector<16x16xf32>
    %538 = vector.extract_strided_slice %367 {offsets = [8, 4], sizes = [16, 16], strides = [1, 1]} : vector<24x24xf32> to vector<16x16xf32>
    %c138 = arith.constant 138 : index
    %539 = memref.load %arg1[%c138] : memref<144xf32, #tpu.memory_space<smem>>
    %540 = vector.broadcast %539 : f32 to vector<16x16xf32>
    %541 = arith.mulf %538, %540 : vector<16x16xf32>
    %542 = arith.addf %537, %541 : vector<16x16xf32>
    %543 = vector.extract_strided_slice %367 {offsets = [8, 8], sizes = [16, 16], strides = [1, 1]} : vector<24x24xf32> to vector<16x16xf32>
    %c142 = arith.constant 142 : index
    %544 = memref.load %arg1[%c142] : memref<144xf32, #tpu.memory_space<smem>>
    %545 = vector.broadcast %544 : f32 to vector<16x16xf32>
    %546 = arith.mulf %543, %545 : vector<16x16xf32>
    %547 = arith.addf %542, %546 : vector<16x16xf32>
    %c0_13 = arith.constant 0 : index
    %c3 = arith.constant 3 : index
    %c0_14 = arith.constant 0 : index
    %c0_15 = arith.constant 0 : index
    %548 = vector.load %arg3[%c0_13, %c3, %c0_14, %c0_15] : memref<1x4x24x24xf32, #tpu.memory_space<vmem>>, vector<1x1x24x24xf32>
    %549 = vector.shape_cast %548 : vector<1x1x24x24xf32> to vector<24x24xf32>
    %550 = vector.extract_strided_slice %549 {offsets = [3, 3], sizes = [16, 16], strides = [1, 1]} : vector<24x24xf32> to vector<16x16xf32>
    %c3_16 = arith.constant 3 : index
    %551 = memref.load %arg1[%c3_16] : memref<144xf32, #tpu.memory_space<smem>>
    %552 = vector.broadcast %551 : f32 to vector<16x16xf32>
    %553 = arith.mulf %550, %552 : vector<16x16xf32>
    %554 = arith.addf %547, %553 : vector<16x16xf32>
    %555 = vector.extract_strided_slice %549 {offsets = [3, 4], sizes = [16, 16], strides = [1, 1]} : vector<24x24xf32> to vector<16x16xf32>
    %c7 = arith.constant 7 : index
    %556 = memref.load %arg1[%c7] : memref<144xf32, #tpu.memory_space<smem>>
    %557 = vector.broadcast %556 : f32 to vector<16x16xf32>
    %558 = arith.mulf %555, %557 : vector<16x16xf32>
    %559 = arith.addf %554, %558 : vector<16x16xf32>
    %560 = vector.extract_strided_slice %549 {offsets = [3, 5], sizes = [16, 16], strides = [1, 1]} : vector<24x24xf32> to vector<16x16xf32>
    %c11 = arith.constant 11 : index
    %561 = memref.load %arg1[%c11] : memref<144xf32, #tpu.memory_space<smem>>
    %562 = vector.broadcast %561 : f32 to vector<16x16xf32>
    %563 = arith.mulf %560, %562 : vector<16x16xf32>
    %564 = arith.addf %559, %563 : vector<16x16xf32>
    %565 = vector.extract_strided_slice %549 {offsets = [4, 3], sizes = [16, 16], strides = [1, 1]} : vector<24x24xf32> to vector<16x16xf32>
    %c15 = arith.constant 15 : index
    %566 = memref.load %arg1[%c15] : memref<144xf32, #tpu.memory_space<smem>>
    %567 = vector.broadcast %566 : f32 to vector<16x16xf32>
    %568 = arith.mulf %565, %567 : vector<16x16xf32>
    %569 = arith.addf %564, %568 : vector<16x16xf32>
    %570 = vector.extract_strided_slice %549 {offsets = [4, 4], sizes = [16, 16], strides = [1, 1]} : vector<24x24xf32> to vector<16x16xf32>
    %c19 = arith.constant 19 : index
    %571 = memref.load %arg1[%c19] : memref<144xf32, #tpu.memory_space<smem>>
    %572 = vector.broadcast %571 : f32 to vector<16x16xf32>
    %573 = arith.mulf %570, %572 : vector<16x16xf32>
    %574 = arith.addf %569, %573 : vector<16x16xf32>
    %575 = vector.extract_strided_slice %549 {offsets = [4, 5], sizes = [16, 16], strides = [1, 1]} : vector<24x24xf32> to vector<16x16xf32>
    %c23 = arith.constant 23 : index
    %576 = memref.load %arg1[%c23] : memref<144xf32, #tpu.memory_space<smem>>
    %577 = vector.broadcast %576 : f32 to vector<16x16xf32>
    %578 = arith.mulf %575, %577 : vector<16x16xf32>
    %579 = arith.addf %574, %578 : vector<16x16xf32>
    %580 = vector.extract_strided_slice %549 {offsets = [5, 3], sizes = [16, 16], strides = [1, 1]} : vector<24x24xf32> to vector<16x16xf32>
    %c27 = arith.constant 27 : index
    %581 = memref.load %arg1[%c27] : memref<144xf32, #tpu.memory_space<smem>>
    %582 = vector.broadcast %581 : f32 to vector<16x16xf32>
    %583 = arith.mulf %580, %582 : vector<16x16xf32>
    %584 = arith.addf %579, %583 : vector<16x16xf32>
    %585 = vector.extract_strided_slice %549 {offsets = [5, 4], sizes = [16, 16], strides = [1, 1]} : vector<24x24xf32> to vector<16x16xf32>
    %c31 = arith.constant 31 : index
    %586 = memref.load %arg1[%c31] : memref<144xf32, #tpu.memory_space<smem>>
    %587 = vector.broadcast %586 : f32 to vector<16x16xf32>
    %588 = arith.mulf %585, %587 : vector<16x16xf32>
    %589 = arith.addf %584, %588 : vector<16x16xf32>
    %590 = vector.extract_strided_slice %549 {offsets = [5, 5], sizes = [16, 16], strides = [1, 1]} : vector<24x24xf32> to vector<16x16xf32>
    %c35 = arith.constant 35 : index
    %591 = memref.load %arg1[%c35] : memref<144xf32, #tpu.memory_space<smem>>
    %592 = vector.broadcast %591 : f32 to vector<16x16xf32>
    %593 = arith.mulf %590, %592 : vector<16x16xf32>
    %594 = arith.addf %589, %593 : vector<16x16xf32>
    %595 = vector.extract_strided_slice %549 {offsets = [2, 2], sizes = [16, 16], strides = [1, 1]} : vector<24x24xf32> to vector<16x16xf32>
    %c39 = arith.constant 39 : index
    %596 = memref.load %arg1[%c39] : memref<144xf32, #tpu.memory_space<smem>>
    %597 = vector.broadcast %596 : f32 to vector<16x16xf32>
    %598 = arith.mulf %595, %597 : vector<16x16xf32>
    %599 = arith.addf %594, %598 : vector<16x16xf32>
    %600 = vector.extract_strided_slice %549 {offsets = [2, 4], sizes = [16, 16], strides = [1, 1]} : vector<24x24xf32> to vector<16x16xf32>
    %c43 = arith.constant 43 : index
    %601 = memref.load %arg1[%c43] : memref<144xf32, #tpu.memory_space<smem>>
    %602 = vector.broadcast %601 : f32 to vector<16x16xf32>
    %603 = arith.mulf %600, %602 : vector<16x16xf32>
    %604 = arith.addf %599, %603 : vector<16x16xf32>
    %605 = vector.extract_strided_slice %549 {offsets = [2, 6], sizes = [16, 16], strides = [1, 1]} : vector<24x24xf32> to vector<16x16xf32>
    %c47 = arith.constant 47 : index
    %606 = memref.load %arg1[%c47] : memref<144xf32, #tpu.memory_space<smem>>
    %607 = vector.broadcast %606 : f32 to vector<16x16xf32>
    %608 = arith.mulf %605, %607 : vector<16x16xf32>
    %609 = arith.addf %604, %608 : vector<16x16xf32>
    %610 = vector.extract_strided_slice %549 {offsets = [4, 2], sizes = [16, 16], strides = [1, 1]} : vector<24x24xf32> to vector<16x16xf32>
    %c51 = arith.constant 51 : index
    %611 = memref.load %arg1[%c51] : memref<144xf32, #tpu.memory_space<smem>>
    %612 = vector.broadcast %611 : f32 to vector<16x16xf32>
    %613 = arith.mulf %610, %612 : vector<16x16xf32>
    %614 = arith.addf %609, %613 : vector<16x16xf32>
    %615 = vector.extract_strided_slice %549 {offsets = [4, 4], sizes = [16, 16], strides = [1, 1]} : vector<24x24xf32> to vector<16x16xf32>
    %c55 = arith.constant 55 : index
    %616 = memref.load %arg1[%c55] : memref<144xf32, #tpu.memory_space<smem>>
    %617 = vector.broadcast %616 : f32 to vector<16x16xf32>
    %618 = arith.mulf %615, %617 : vector<16x16xf32>
    %619 = arith.addf %614, %618 : vector<16x16xf32>
    %620 = vector.extract_strided_slice %549 {offsets = [4, 6], sizes = [16, 16], strides = [1, 1]} : vector<24x24xf32> to vector<16x16xf32>
    %c59 = arith.constant 59 : index
    %621 = memref.load %arg1[%c59] : memref<144xf32, #tpu.memory_space<smem>>
    %622 = vector.broadcast %621 : f32 to vector<16x16xf32>
    %623 = arith.mulf %620, %622 : vector<16x16xf32>
    %624 = arith.addf %619, %623 : vector<16x16xf32>
    %625 = vector.extract_strided_slice %549 {offsets = [6, 2], sizes = [16, 16], strides = [1, 1]} : vector<24x24xf32> to vector<16x16xf32>
    %c63 = arith.constant 63 : index
    %626 = memref.load %arg1[%c63] : memref<144xf32, #tpu.memory_space<smem>>
    %627 = vector.broadcast %626 : f32 to vector<16x16xf32>
    %628 = arith.mulf %625, %627 : vector<16x16xf32>
    %629 = arith.addf %624, %628 : vector<16x16xf32>
    %630 = vector.extract_strided_slice %549 {offsets = [6, 4], sizes = [16, 16], strides = [1, 1]} : vector<24x24xf32> to vector<16x16xf32>
    %c67 = arith.constant 67 : index
    %631 = memref.load %arg1[%c67] : memref<144xf32, #tpu.memory_space<smem>>
    %632 = vector.broadcast %631 : f32 to vector<16x16xf32>
    %633 = arith.mulf %630, %632 : vector<16x16xf32>
    %634 = arith.addf %629, %633 : vector<16x16xf32>
    %635 = vector.extract_strided_slice %549 {offsets = [6, 6], sizes = [16, 16], strides = [1, 1]} : vector<24x24xf32> to vector<16x16xf32>
    %c71 = arith.constant 71 : index
    %636 = memref.load %arg1[%c71] : memref<144xf32, #tpu.memory_space<smem>>
    %637 = vector.broadcast %636 : f32 to vector<16x16xf32>
    %638 = arith.mulf %635, %637 : vector<16x16xf32>
    %639 = arith.addf %634, %638 : vector<16x16xf32>
    %640 = vector.extract_strided_slice %549 {offsets = [1, 1], sizes = [16, 16], strides = [1, 1]} : vector<24x24xf32> to vector<16x16xf32>
    %c75 = arith.constant 75 : index
    %641 = memref.load %arg1[%c75] : memref<144xf32, #tpu.memory_space<smem>>
    %642 = vector.broadcast %641 : f32 to vector<16x16xf32>
    %643 = arith.mulf %640, %642 : vector<16x16xf32>
    %644 = arith.addf %639, %643 : vector<16x16xf32>
    %645 = vector.extract_strided_slice %549 {offsets = [1, 4], sizes = [16, 16], strides = [1, 1]} : vector<24x24xf32> to vector<16x16xf32>
    %c79 = arith.constant 79 : index
    %646 = memref.load %arg1[%c79] : memref<144xf32, #tpu.memory_space<smem>>
    %647 = vector.broadcast %646 : f32 to vector<16x16xf32>
    %648 = arith.mulf %645, %647 : vector<16x16xf32>
    %649 = arith.addf %644, %648 : vector<16x16xf32>
    %650 = vector.extract_strided_slice %549 {offsets = [1, 7], sizes = [16, 16], strides = [1, 1]} : vector<24x24xf32> to vector<16x16xf32>
    %c83 = arith.constant 83 : index
    %651 = memref.load %arg1[%c83] : memref<144xf32, #tpu.memory_space<smem>>
    %652 = vector.broadcast %651 : f32 to vector<16x16xf32>
    %653 = arith.mulf %650, %652 : vector<16x16xf32>
    %654 = arith.addf %649, %653 : vector<16x16xf32>
    %655 = vector.extract_strided_slice %549 {offsets = [4, 1], sizes = [16, 16], strides = [1, 1]} : vector<24x24xf32> to vector<16x16xf32>
    %c87 = arith.constant 87 : index
    %656 = memref.load %arg1[%c87] : memref<144xf32, #tpu.memory_space<smem>>
    %657 = vector.broadcast %656 : f32 to vector<16x16xf32>
    %658 = arith.mulf %655, %657 : vector<16x16xf32>
    %659 = arith.addf %654, %658 : vector<16x16xf32>
    %660 = vector.extract_strided_slice %549 {offsets = [4, 4], sizes = [16, 16], strides = [1, 1]} : vector<24x24xf32> to vector<16x16xf32>
    %c91 = arith.constant 91 : index
    %661 = memref.load %arg1[%c91] : memref<144xf32, #tpu.memory_space<smem>>
    %662 = vector.broadcast %661 : f32 to vector<16x16xf32>
    %663 = arith.mulf %660, %662 : vector<16x16xf32>
    %664 = arith.addf %659, %663 : vector<16x16xf32>
    %665 = vector.extract_strided_slice %549 {offsets = [4, 7], sizes = [16, 16], strides = [1, 1]} : vector<24x24xf32> to vector<16x16xf32>
    %c95 = arith.constant 95 : index
    %666 = memref.load %arg1[%c95] : memref<144xf32, #tpu.memory_space<smem>>
    %667 = vector.broadcast %666 : f32 to vector<16x16xf32>
    %668 = arith.mulf %665, %667 : vector<16x16xf32>
    %669 = arith.addf %664, %668 : vector<16x16xf32>
    %670 = vector.extract_strided_slice %549 {offsets = [7, 1], sizes = [16, 16], strides = [1, 1]} : vector<24x24xf32> to vector<16x16xf32>
    %c99 = arith.constant 99 : index
    %671 = memref.load %arg1[%c99] : memref<144xf32, #tpu.memory_space<smem>>
    %672 = vector.broadcast %671 : f32 to vector<16x16xf32>
    %673 = arith.mulf %670, %672 : vector<16x16xf32>
    %674 = arith.addf %669, %673 : vector<16x16xf32>
    %675 = vector.extract_strided_slice %549 {offsets = [7, 4], sizes = [16, 16], strides = [1, 1]} : vector<24x24xf32> to vector<16x16xf32>
    %c103 = arith.constant 103 : index
    %676 = memref.load %arg1[%c103] : memref<144xf32, #tpu.memory_space<smem>>
    %677 = vector.broadcast %676 : f32 to vector<16x16xf32>
    %678 = arith.mulf %675, %677 : vector<16x16xf32>
    %679 = arith.addf %674, %678 : vector<16x16xf32>
    %680 = vector.extract_strided_slice %549 {offsets = [7, 7], sizes = [16, 16], strides = [1, 1]} : vector<24x24xf32> to vector<16x16xf32>
    %c107 = arith.constant 107 : index
    %681 = memref.load %arg1[%c107] : memref<144xf32, #tpu.memory_space<smem>>
    %682 = vector.broadcast %681 : f32 to vector<16x16xf32>
    %683 = arith.mulf %680, %682 : vector<16x16xf32>
    %684 = arith.addf %679, %683 : vector<16x16xf32>
    %685 = vector.extract_strided_slice %549 {offsets = [0, 0], sizes = [16, 16], strides = [1, 1]} : vector<24x24xf32> to vector<16x16xf32>
    %c111 = arith.constant 111 : index
    %686 = memref.load %arg1[%c111] : memref<144xf32, #tpu.memory_space<smem>>
    %687 = vector.broadcast %686 : f32 to vector<16x16xf32>
    %688 = arith.mulf %685, %687 : vector<16x16xf32>
    %689 = arith.addf %684, %688 : vector<16x16xf32>
    %690 = vector.extract_strided_slice %549 {offsets = [0, 4], sizes = [16, 16], strides = [1, 1]} : vector<24x24xf32> to vector<16x16xf32>
    %c115 = arith.constant 115 : index
    %691 = memref.load %arg1[%c115] : memref<144xf32, #tpu.memory_space<smem>>
    %692 = vector.broadcast %691 : f32 to vector<16x16xf32>
    %693 = arith.mulf %690, %692 : vector<16x16xf32>
    %694 = arith.addf %689, %693 : vector<16x16xf32>
    %695 = vector.extract_strided_slice %549 {offsets = [0, 8], sizes = [16, 16], strides = [1, 1]} : vector<24x24xf32> to vector<16x16xf32>
    %c119 = arith.constant 119 : index
    %696 = memref.load %arg1[%c119] : memref<144xf32, #tpu.memory_space<smem>>
    %697 = vector.broadcast %696 : f32 to vector<16x16xf32>
    %698 = arith.mulf %695, %697 : vector<16x16xf32>
    %699 = arith.addf %694, %698 : vector<16x16xf32>
    %700 = vector.extract_strided_slice %549 {offsets = [4, 0], sizes = [16, 16], strides = [1, 1]} : vector<24x24xf32> to vector<16x16xf32>
    %c123 = arith.constant 123 : index
    %701 = memref.load %arg1[%c123] : memref<144xf32, #tpu.memory_space<smem>>
    %702 = vector.broadcast %701 : f32 to vector<16x16xf32>
    %703 = arith.mulf %700, %702 : vector<16x16xf32>
    %704 = arith.addf %699, %703 : vector<16x16xf32>
    %705 = vector.extract_strided_slice %549 {offsets = [4, 4], sizes = [16, 16], strides = [1, 1]} : vector<24x24xf32> to vector<16x16xf32>
    %c127 = arith.constant 127 : index
    %706 = memref.load %arg1[%c127] : memref<144xf32, #tpu.memory_space<smem>>
    %707 = vector.broadcast %706 : f32 to vector<16x16xf32>
    %708 = arith.mulf %705, %707 : vector<16x16xf32>
    %709 = arith.addf %704, %708 : vector<16x16xf32>
    %710 = vector.extract_strided_slice %549 {offsets = [4, 8], sizes = [16, 16], strides = [1, 1]} : vector<24x24xf32> to vector<16x16xf32>
    %c131 = arith.constant 131 : index
    %711 = memref.load %arg1[%c131] : memref<144xf32, #tpu.memory_space<smem>>
    %712 = vector.broadcast %711 : f32 to vector<16x16xf32>
    %713 = arith.mulf %710, %712 : vector<16x16xf32>
    %714 = arith.addf %709, %713 : vector<16x16xf32>
    %715 = vector.extract_strided_slice %549 {offsets = [8, 0], sizes = [16, 16], strides = [1, 1]} : vector<24x24xf32> to vector<16x16xf32>
    %c135 = arith.constant 135 : index
    %716 = memref.load %arg1[%c135] : memref<144xf32, #tpu.memory_space<smem>>
    %717 = vector.broadcast %716 : f32 to vector<16x16xf32>
    %718 = arith.mulf %715, %717 : vector<16x16xf32>
    %719 = arith.addf %714, %718 : vector<16x16xf32>
    %720 = vector.extract_strided_slice %549 {offsets = [8, 4], sizes = [16, 16], strides = [1, 1]} : vector<24x24xf32> to vector<16x16xf32>
    %c139 = arith.constant 139 : index
    %721 = memref.load %arg1[%c139] : memref<144xf32, #tpu.memory_space<smem>>
    %722 = vector.broadcast %721 : f32 to vector<16x16xf32>
    %723 = arith.mulf %720, %722 : vector<16x16xf32>
    %724 = arith.addf %719, %723 : vector<16x16xf32>
    %725 = vector.extract_strided_slice %549 {offsets = [8, 8], sizes = [16, 16], strides = [1, 1]} : vector<24x24xf32> to vector<16x16xf32>
    %c143 = arith.constant 143 : index
    %726 = memref.load %arg1[%c143] : memref<144xf32, #tpu.memory_space<smem>>
    %727 = vector.broadcast %726 : f32 to vector<16x16xf32>
    %728 = arith.mulf %725, %727 : vector<16x16xf32>
    %729 = arith.addf %724, %728 : vector<16x16xf32>
    %730 = arith.negf %729 : vector<16x16xf32>
    %731 = math.exp %730 : vector<16x16xf32>
    %cst = arith.constant 1.000000e+00 : f32
    %732 = vector.broadcast %cst : f32 to vector<16x16xf32>
    %733 = arith.addf %732, %731 : vector<16x16xf32>
    %734 = arith.divf %732, %733 : vector<16x16xf32>
    %c0_17 = arith.constant 0 : index
    %c0_18 = arith.constant 0 : index
    %c0_19 = arith.constant 0 : index
    %735 = vector.load %arg4[%c0_17, %c0_18, %c0_19] : memref<1x16x16xf32, #tpu.memory_space<vmem>>, vector<1x16x16xf32>
    %736 = vector.shape_cast %735 : vector<1x16x16xf32> to vector<16x16xf32>
    %737 = vector.shape_cast %734 : vector<16x16xf32> to vector<1x16x16xf32>
    tpu.vector_store %arg4[%c0_17, %c0_18, %c0_19], %737 {strides = array<i32>} : memref<1x16x16xf32, #tpu.memory_space<vmem>>, vector<1x16x16xf32>,
    return
  }
  func.func @transform_0(%arg0: i32) -> i32 {
    %c0_i32 = arith.constant 0 : i32
    %c0_i32_0 = arith.constant 0 : i32
    return %c0_i32 : i32
  }
  func.func @transform_1(%arg0: i32) -> i32 {
    %c0_i32 = arith.constant 0 : i32
    %c0_i32_0 = arith.constant 0 : i32
    return %c0_i32 : i32
  }
  func.func @transform_2(%arg0: i32) -> (i32, i32, i32, i32) {
    %c0_i32 = arith.constant 0 : i32
    %c0_i32_0 = arith.constant 0 : i32
    %c0_i32_1 = arith.constant 0 : i32
    %c0_i32_2 = arith.constant 0 : i32
    return %arg0, %c0_i32, %c0_i32_0, %c0_i32_1 : i32, i32, i32, i32
  }
  func.func @transform_3(%arg0: i32) -> (i32, i32, i32) {
    %c0_i32 = arith.constant 0 : i32
    %c0_i32_0 = arith.constant 0 : i32
    %c0_i32_1 = arith.constant 0 : i32
    return %arg0, %c0_i32, %c0_i32_0 : i32, i32, i32
  }
}

</mosaic_0001>

<bundles_post_ra>
// kernel: tpu_custom_call.1
= control target key start
LH: loop header
LB: loop body
LE: loop exit
PB: predicated region body
PF: predicated region fallthrough
CT: control target
= control target key end

     0   :  { %s6488_s0 = inlined_call_operand.vmem [shape: f32[144], index: 0, kind: input, shape index: {}]   ;;  %s6489_s1 = inlined_call_operand.<no memory space> [shape: f32[1], index: 1, kind: input, shape index: {}]   ;;  %s6490_s2 = inlined_call_operand.hbm [shape: f32[2,4,24,24], index: 2, kind: input, shape index: {}]   ;;  %s6491_s3 = inlined_call_operand.hbm [shape: f32[2,16,16], index: 3, kind: output, shape index: {}]  }
   0x1   :  { %8 = sst [smem:[#allocation2]] %s6489_s1 }
   0x2   :  { %9 = vsyncpa [#allocation6], 0 }
   0x3   :  { %10 = vsyncpa [#allocation4], 0 }
   0x4   :  { %12 = vsyncpa [#allocation4 + $0x1], 0 }
   0x5   :  { %13 = vsyncpa [#allocation5], 0 }
   0x6   :  { %15 = vsyncpa [#allocation5 + $0x1], 0  ;;  %s4131_s14 = smov 0   ;;  %s4133_s15 = smov 0  }
   0x7   :  { %s4135_s16 = smov 0   ;;  %s4137_s17 = smov 0  }
   0x8 LB: > { %s4152_s1 = sadd.s32 4294967295, %s4091_s17   ;;  %s3711_s18 = sadd.s32 4294967294, %s4091_s17   ;;  %s4091_s17 = sphi %s4137_s17, %s6875_s17   ;;  %s4087_s16 = sphi %s4135_s16, %s6874_s16   ;;  %s4083_s15 = sphi %s4133_s15, %s6873_s15   ;;  %s4079_s14 = sphi %s4131_s14, %s6872_s14  }
   0x9   : > { %s4156_s19 = sadd.s32 1, %s4091_s17   ;;  %s70_s20 = sadd.s32 1, %s4087_s16 }
   0xa   : > { %s67_s21 = ssub.s32 %s4091_s17, %s4156_s19  ;;  %p77_p0 = scmp.ne.s32.totalorder %s4087_s16, %s4083_s15 }
   0xb   : > { %p68_p1 = scmp.eq.s32.totalorder %s67_s21, 0  ;;  %p78_p2 = scmp.eq.s32.totalorder %s4091_s17, 0 }
   0xc   : > { %p83_p3 = scmp.ne.s32.totalorder %s4083_s15, %s4079_s14  ;;  %p6493_p4 = scmp.eq.s32.totalorder %s4152_s1, 0 }
   0xd   : > { %s4168_s22 = scalar_select %p68_p1, %s4087_s16, %s70_s20  }
   0xe   : > { %p4170_p5 = por %p78_p2, %p77_p0  ;;  %p4176_p6 = por %p6493_p4, %p83_p3 }
   0xf   : > { %p107_p7 = scmp.eq.s32.totalorder %s4152_s1, 1  ;;  %p113_p8 = scmp.eq.s32.totalorder %s3711_s18, 1 }
  0x10   : > { %s6497_s24 = scalar_select %p4176_p6, 1, 0 }
  0x11   : > { %p3712_p9 = scmp.ge.s32.totalorder %s4091_s17, 1  ;;  %p120_p10 = scmp.lt.s32.totalorder %s4091_s17, 3 }
  0x12   : > { %p4183_p11 = por %p107_p7, %p77_p0  ;;  %p4187_p12 = por %p113_p8, %p83_p3 }
  0x13   : > { %p4191_p13 = pnand %p3712_p9, %p120_p10  ;;  %s133_s30 = sshll.u32 %s6488_s0, 4  ;;  %s134_s30 = int_to_ptr.vmem [resolvable:$true] %s133_s30 }
  0x14   : > { %s6498_s25 = scalar_select %p4183_p11, 1, 0 }
  0x15   : > { %s6499_s26 = scalar_select %p4187_p12, 1, 0 }
  0x16   : > { %p3891_p1 = pneg %p4191_p13  ;;  %p3904_p2 = scmp.lt.s32.totalorder %s4091_s17, 2 }
  0x17   : > { %s147_s5 = sand.u32 1, %s4087_s16   ;;  %s3976_s8 = scalar_lea.vmem %s134_s30, 32 }
  0x18   : > { %p4204_p7 = pnand %p3891_p1, %p6493_p4  ;;  %p4211_p3 = pnand %p3904_p2, %p4170_p5 }
  0x19   : > { %s3880_s7 = smul.u32 96, %s147_s5  ;;  %p3977_p8 = scmp.ne.s32.totalorder %s134_s30, %s3976_s8 }
  0x1a   : > { %p3978_p9 = pneg %p4204_p7  ;;  %p3984_p12 = scmp.lt.s32.totalorder %s134_s30, %s134_s30 }
  0x1b   : > { %p3985_p11 = scmp.lt.s32.totalorder %s3976_s8, %s3976_s8 }
  0x1c   : > { %p3979_p10 = pnand %p3978_p9, %p3977_p8 }
  0x1d   : > { %p3986_p1 = por %p3985_p11, %p3984_p12 }
  0x1e   : > { %p3980_p0 = pneg %p3979_p10 }
  0x20   : > { %p3987_p4 = pnand %p3986_p1, %p3980_p0 }
  0x22   : > { %3990 = shalt.err (!%p3987_p4)
}
  0x23   : > { %s4093_s9 = smov [#allocation3]   ;;  %s3881_s10 = smul.u32 1536, %s4091_s17 }
  0x24   : > { %3894 = dma.vmem_to_smem (!%p4204_p7), %s134_s30, 32, %s4093_s9, [#allocation6]  }
  0x25   : > { %s151_s11 = scalar_lea.vmem [#allocation7], %s3880_s7  ;;  %s4225_s20 = scalar_lea.hbm %s6490_s2, %s3881_s10 }
  0x26   : > { %s158_s12 = sshll.u32 %s151_s11, 4  ;;  %s4227_s21 = scalar_lea.sflag [#allocation4], %s147_s5  ;;  %s4220_s12 = int_to_ptr.vmem [resolvable:$true] %s158_s12 }
  0x27   : > { %s3991_s23 = scalar_lea.hbm %s4225_s20, 1536  ;;  %p3993_p5 = pneg %p4211_p3 }
  0x28   : > { %p3992_p4 = scmp.ne.s32.totalorder %s4225_s20, %s3991_s23  ;;  %s3996_s30 = scalar_lea.hbm %s6490_s2, 3072 }
  0x29   : > { %p3997_p0 = scmp.lt.u32.totalorder %s4225_s20, %s6490_s2  ;;  %p3998_p2 = scmp.lt.u32.totalorder %s3996_s30, %s3991_s23 }
  0x2a   : > { %p3994_p11 = pnand %p3993_p5, %p3992_p4  ;;  %p4000_p8 = scmp.lt.u32.totalorder %s3991_s23, %s4225_s20 }
  0x2b   : > { %p3999_p7 = por %p3998_p2, %p3997_p0 }
  0x2c   : > { %p3995_p12 = pneg %p3994_p11 }
  0x2d   : > { %p4001_p9 = por %p4000_p8, %p3999_p7 }
  0x2f   : > { %p4002_p10 = pnand %p4001_p9, %p3995_p12 }
  0x31   : > { %4005 = shalt.err (!%p4002_p10)
}
  0x32   : > { %s4006_s5 = scalar_lea.vmem %s4220_s12, 1536  ;;  %s4094_s8 = smov [#allocation7]  }
  0x33   : > { %p4007_p1 = scmp.ne.s32.totalorder %s4220_s12, %s4006_s5  ;;  %s4011_s9 = sshll.u32 %s4094_s8, 4  ;;  %s4012_s9 = int_to_ptr.vmem [resolvable:$false] %s4011_s9 }
  0x34   : > { %s4013_s10 = scalar_lea.vmem %s4012_s9, 3072  ;;  %p4014_p6 = scmp.lt.s32.totalorder %s4220_s12, %s4012_s9 }
  0x35   : > { %p4009_p4 = pnand %p4007_p1, %p3993_p5  ;;  %p4015_p0 = scmp.lt.s32.totalorder %s4013_s10, %s4006_s5 }
  0x37   : > { %p4010_p11 = pneg %p4009_p4  ;;  %p4016_p2 = por %p4015_p0, %p4014_p6 }
  0x39   : > { %p4017_p7 = pnand %p4016_p2, %p4010_p11 }
  0x3b   : > { %4020 = shalt.err (!%p4017_p7)
}
  0x3c   : > { %s4095_s11 = smov 128   ;;  %s4096_s13 = smov 8  }
  0x3d   : > { %3898 = dma.hbm_to_vmem [thread:$0]  (!%p4211_p3), %s4225_s20, 1536, %s4220_s12, %s4227_s21, %s4095_s11, %s4095_s11, %s4096_s13  }
  0x3e   : > { %170 = sbr.rel (%p4191_p13) target bundleno = 1150 (0x47e), region = 32 }
  0x45   : > { %p6503_p5 = scmp.eq.s32.totalorder %s4152_s1, 0 }
  0x47   : > { %4066 = dma.done.wait (%p6503_p5), [#allocation6], 32   ;;  %p6504_p12 = pmov %p6503_p5 }
  0x48   : > { %s4262_s18 = sand.u32 1, %s4083_s15   ;;  %p6505_p6 = scmp.ne.s32.totalorder %s6497_s24, 0 }
  0x49   : > { %4068 = vsyncadd (%p6504_p12), [#allocation6], 4294967264  ;;  %s3882_s23 = smul.u32 96, %s4262_s18  ;;  %s177_s28 = scalar_lea.sflag [#allocation4], %s4262_s18 }
  0x4b   : > { %s4266_s29 = scalar_lea.vmem [#allocation7], %s3882_s23 }
  0x4c   : > { %4070 = dma.done.wait (%p6505_p6), %s177_s28, 1536  }
  0x4d   : > { %4072 = vsyncadd (%p6505_p6), %s177_s28, 4294965760 }
  0x4e   : > { %185 = sfence }
  0x4f   : > { %s3719_s27 = sld [smem:[#allocation3 + $0x4]]  ;;  %s3720_s6 = sld [smem:[#allocation3 + $0x8]]  ;;  %v4273_v0 = vld [vmem:[%s4266_s29 + $0x10] sm:$0xff]  ;;  %v4276_v1 = vld [vmem:[%s4266_s29] sm:$0xff]  ;;  %v4279_v3 = vld [vmem:[%s4266_s29 + $0x8] sm:$0xff]  ;;  %vm265_vm0 = vcmask 1046528  }
  0x50   : > { %s3722_s12 = sld [smem:[#allocation3 + $0x10]]  ;;  %s3723_s20 = sld [smem:[#allocation3 + $0x14]]  ;;  %vm335_vm1 = vcmask 1045504   ;;  %vm405_vm2 = vcmask 1040384   ;;  %vm556_vm3 = vcmask 1044480   ;;  %vm632_vm4 = vcmask 1041408  }
  0x51   : > { %s4097_s24 = smov 127   ;;  %s3725_s21 = sld [smem:[#allocation3 + $0x1c]]  ;;  %vm783_vm5 = vcmask 1043456   ;;  %vm857_vm6 = vcmask 1042432   ;;  %vm3606_vm7 = vcmask 130051   ;;  %vm3610_vm8 = vcmask 124928  }
  0x52   : > { %s4098_s30 = smov 126   ;;  %s3726_s4 = sld [smem:[#allocation3 + $0x20]]  ;;  %vm3608_vm9 = vcmask 130048  }
  0x53   : > { %s3727_s7 = sld [smem:[#allocation3 + $0x24]]  ;;  %s3728_s5 = sld [smem:[#allocation3 + $0x28]] }
  0x54   : > { %s3729_s8 = sld [smem:[#allocation3 + $0x2c]]  ;;  %s3730_s9 = sld [smem:[#allocation3 + $0x30]] }
  0x55   : > { %v218_v2 = vstv %s3719_s27  ;;  %v238_v6 = vstv %s3720_s6  ;;  %s4099_s10 = smov 1   ;;  %s3731_s11 = sld [smem:[#allocation3 + $0x34]] }
  0x56   : > { %v221_v4 = vmul.f32 %v218_v2, %v4273_v0  ;;  %v219_v5 = vmul.f32 %v218_v2, %v4276_v1  ;;  %v278_v7 = vstv %s3722_s12  ;;  %v239_v8 = vmul.f32 %v238_v6, %v4276_v1  ;;  %s3732_s13 = sld [smem:[#allocation3 + $0x38]]  ;;  %s4100_s23 = smov 125  }
  0x57   : > { %v220_v9 = vmul.f32 %v218_v2, %v4279_v3  ;;  %v280_v10 = vmul.f32 %v278_v7, %v4279_v3  ;;  %v281_v11 = vmul.f32 %v278_v7, %v4273_v0  ;;  %v279_v12 = vmul.f32 %v278_v7, %v4276_v1  ;;  %s3733_s28 = sld [smem:[#allocation3 + $0x3c]]  ;;  %s3734_s27 = sld [smem:[#allocation3 + $0x40]] }
  0x58   : > { %229 = vrot.lane.b32.xlu1 %v221_v4, %s4097_s24  ;;  %225 = vrot.lane.b32.xlu0 %v219_v5, %s4097_s24  ;;  %v303_v13 = vstv %s3723_s20  ;;  %v241_v14 = vmul.f32 %v238_v6, %v4273_v0  ;;  %v240_v15 = vmul.f32 %v238_v6, %v4279_v3  ;;  %v348_v22 = vstv %s3725_s21  ;;  %s3735_s6 = sld [smem:[#allocation3 + $0x44]]  ;;  %s3736_s12 = sld [smem:[#allocation3 + $0x48]] }
  0x59   : > { %v304_v16 = vmul.f32 %v303_v13, %v4276_v1  ;;  %v286_v17 = vrot.slane %v280_v10, 1  ;;  %v288_v18 = vrot.slane %v281_v11, 1  ;;  %v285_v19 = vrot.slane %v279_v12, 1  ;;  %s3737_s20 = sld [smem:[#allocation3 + $0x4c]]  ;;  %s3738_s21 = sld [smem:[#allocation3 + $0x50]] }
  0x5a   : > { %v305_v20 = vmul.f32 %v303_v13, %v4279_v3  ;;  %v306_v21 = vmul.f32 %v303_v13, %v4273_v0  ;;  %v350_v28 = vmul.f32 %v348_v22, %v4279_v3  ;;  %v351_v30 = vmul.f32 %v348_v22, %v4273_v0  ;;  %p6869_p3 = scmp.ne.s32.totalorder %s6498_s25, 0 }
  0x5b   : > { %v289_v23 = vsel %vm265_vm0, %v286_v17, %v288_v18  ;;  %v287_v24 = vsel %vm265_vm0, %v285_v19, %v286_v17  ;;  %v310_v25 = vrot.slane %v304_v16, 1  ;;  %v349_v31 = vmul.f32 %v348_v22, %v4276_v1 }
  0x5c   : > { %245 = vrot.lane.b32.xlu1 %v239_v8, %s4098_s30  ;;  %227 = vrot.lane.b32.xlu0 %v220_v9, %s4097_s24  ;;  %v311_v26 = vrot.slane %v305_v20, 1  ;;  %v313_v27 = vrot.slane %v306_v21, 1  ;;  %v373_v32 = vstv %s3726_s4  ;;  %v356_v34 = vrot.slane %v350_v28, 2  ;;  %s3739_s4 = sld [smem:[#allocation3 + $0x54]] }
  0x5d   : > { %v358_v35 = vrot.slane %v351_v30, 2  ;;  %v355_v36 = vrot.slane %v349_v31, 2  ;;  %v374_v37 = vmul.f32 %v373_v32, %v4276_v1  ;;  %v375_v38 = vmul.f32 %v373_v32, %v4279_v3 }
  0x5e   : > { %v312_v29 = vsel %vm265_vm0, %v310_v25, %v311_v26  ;;  %v314_v33 = vsel %vm265_vm0, %v311_v26, %v313_v27  ;;  %v376_v39 = vmul.f32 %v373_v32, %v4273_v0  ;;  %v398_v44 = vstv %s3727_s7  ;;  %s4101_s7 = smov 2  }
  0x5f   : > { %v359_v40 = vsel %vm335_vm1, %v356_v34, %v358_v35  ;;  %v357_v41 = vsel %vm335_vm1, %v355_v36, %v356_v34  ;;  %v380_v42 = vrot.slane %v374_v37, 2  ;;  %v381_v43 = vrot.slane %v375_v38, 2 }
  0x60   : > { %249 = vrot.lane.b32.xlu1 %v241_v14, %s4098_s30  ;;  %247 = vrot.lane.b32.xlu0 %v240_v15, %s4098_s30  ;;  %v383_v46 = vrot.slane %v376_v39, 2  ;;  %v399_v47 = vmul.f32 %v398_v44, %v4276_v1  ;;  %v400_v48 = vmul.f32 %v398_v44, %v4279_v3  ;;  %v424_v49 = vstv %s3728_s5  ;;  %s3740_s5 = sld [smem:[#allocation3 + $0x58]] }
  0x61   : > { %v382_v45 = vsel %vm335_vm1, %v380_v42, %v381_v43  ;;  %v401_v53 = vmul.f32 %v398_v44, %v4273_v0  ;;  %v425_v54 = vmul.f32 %v424_v49, %v4276_v1  ;;  %v426_v55 = vmul.f32 %v424_v49, %v4279_v3 }
  0x62   : > { %v384_v50 = vsel %vm335_vm1, %v381_v43, %v383_v46  ;;  %v406_v51 = vrot.slane %v399_v47, 7  ;;  %v407_v52 = vrot.slane %v400_v48, 7  ;;  %v427_v56 = vmul.f32 %v424_v49, %v4273_v0 }
  0x63   : > { %v409_v58 = vrot.slane %v401_v53, 7  ;;  %v449_v59 = vstv %s3729_s8  ;;  %v431_v60 = vrot.slane %v425_v54, 7  ;;  %v432_v61 = vrot.slane %v426_v55, 7  ;;  %s3741_s8 = sld [smem:[#allocation3 + $0x5c]] }
  0x64   : > { %292 = vrot.lane.b32.xlu1 %v289_v23, %s4097_s24  ;;  %290 = vrot.lane.b32.xlu0 %v287_v24, %s4097_s24  ;;  %v408_v57 = vsel %vm405_vm2, %v406_v51, %v407_v52  ;;  %v434_v62 = vrot.slane %v427_v56, 7  ;;  %v450_v2 = vmul.f32 %v449_v59, %v4276_v1  ;;  %v451_v4 = vmul.f32 %v449_v59, %v4279_v3 }
  0x65   : > { %v410_v63 = vsel %vm405_vm2, %v407_v52, %v409_v58  ;;  %v474_v5 = vstv %s3730_s9  ;;  %v433_v7 = vsel %vm405_vm2, %v431_v60, %v432_v61  ;;  %v452_v8 = vmul.f32 %v449_v59, %v4273_v0  ;;  %s4102_s9 = smov 124  }
  0x66   : > { %v435_v6 = vsel %vm405_vm2, %v432_v61, %v434_v62  ;;  %v456_v9 = vrot.slane %v450_v2, 7  ;;  %v457_v10 = vrot.slane %v451_v4, 7  ;;  %v475_v11 = vmul.f32 %v474_v5, %v4276_v1 }
  0x67   : > { %v476_v12 = vmul.f32 %v474_v5, %v4279_v3  ;;  %v459_v13 = vrot.slane %v452_v8, 7  ;;  %v477_v14 = vmul.f32 %v474_v5, %v4273_v0  ;;  %v524_v21 = vstv %s3732_s13  ;;  %s3743_s13 = sld [smem:[#allocation3 + $0x64]] }
  0x68   : > { %315 = vrot.lane.b32.xlu1 %v312_v29, %s4098_s30  ;;  %294 = vrot.lane.b32.xlu0 %v288_v18, %s4097_s24  ;;  %v458_v15 = vsel %vm405_vm2, %v456_v9, %v457_v10  ;;  %v481_v16 = vrot.slane %v475_v11, 1  ;;  %v499_v18 = vstv %s3731_s11  ;;  %v526_v31 = vmul.f32 %v524_v21, %v4279_v3  ;;  %s3742_s11 = sld [smem:[#allocation3 + $0x60]] }
  0x69   : > { %v482_v17 = vrot.slane %v476_v12, 1  ;;  %v460_v19 = vsel %vm405_vm2, %v457_v10, %v459_v13  ;;  %v484_v20 = vrot.slane %v477_v14, 1  ;;  %v501_v23 = vmul.f32 %v499_v18, %v4279_v3 }
  0x6a   : > { %v502_v24 = vmul.f32 %v499_v18, %v4273_v0  ;;  %v500_v25 = vmul.f32 %v499_v18, %v4276_v1  ;;  %v527_v32 = vmul.f32 %v524_v21, %v4273_v0  ;;  %v532_v36 = vrot.slane %v526_v31, 1 }
  0x6b   : > { %v483_v22 = vsel %vm265_vm0, %v481_v16, %v482_v17  ;;  %v485_v26 = vsel %vm265_vm0, %v482_v17, %v484_v20  ;;  %v507_v28 = vrot.slane %v501_v23, 1  ;;  %v549_v37 = vstv %s3733_s28  ;;  %s3744_s28 = sld [smem:[#allocation3 + $0x68]] }
  0x6c   : > { %319 = vrot.lane.b32.xlu1 %v313_v27, %s4098_s30  ;;  %317 = vrot.lane.b32.xlu0 %v314_v33, %s4098_s30  ;;  %v525_v27 = vmul.f32 %v524_v21, %v4276_v1  ;;  %v509_v29 = vrot.slane %v502_v24, 1  ;;  %v506_v30 = vrot.slane %v500_v25, 1  ;;  %v534_v38 = vrot.slane %v527_v32, 1 }
  0x6d   : > { %v575_v39 = vstv %s3734_s27  ;;  %v552_v42 = vmul.f32 %v549_v37, %v4273_v0  ;;  %v550_v43 = vmul.f32 %v549_v37, %v4276_v1  ;;  %v600_v55 = vstv %s3735_s6  ;;  %s3745_s27 = sld [smem:[#allocation3 + $0x6c]]  ;;  %s3746_s6 = sld [smem:[#allocation3 + $0x70]] }
  0x6e   : > { %v510_v33 = vsel %vm265_vm0, %v507_v28, %v509_v29  ;;  %v508_v34 = vsel %vm265_vm0, %v506_v30, %v507_v28  ;;  %v535_v44 = vsel %vm265_vm0, %v532_v36, %v534_v38  ;;  %v577_v49 = vmul.f32 %v575_v39, %v4279_v3 }
  0x6f   : > { %v560_v47 = vrot.slane %v552_v42, 3  ;;  %v557_v48 = vrot.slane %v550_v43, 3  ;;  %v602_v58 = vmul.f32 %v600_v55, %v4279_v3  ;;  %v603_v59 = vmul.f32 %v600_v55, %v4273_v0 }
  0x70   : > { %362 = vrot.lane.b32.xlu1 %v359_v40, %s4097_s24  ;;  %360 = vrot.lane.b32.xlu0 %v357_v41, %s4097_s24  ;;  %v551_v41 = vmul.f32 %v549_v37, %v4279_v3  ;;  %v583_v54 = vrot.slane %v577_v49, 3  ;;  %v625_v61 = vstv %s3736_s12  ;;  %v651_v10 = vstv %s3737_s20  ;;  %s3747_s12 = sld [smem:[#allocation3 + $0x74]]  ;;  %s3748_s20 = sld [smem:[#allocation3 + $0x78]] }
  0x71   : > { %v610_v2 = vrot.slane %v603_v59, 3  ;;  %v626_v5 = vmul.f32 %v625_v61, %v4276_v1  ;;  %v652_v14 = vmul.f32 %v651_v10, %v4276_v1  ;;  %v676_v17 = vstv %s3738_s21  ;;  %s4103_s21 = smov 3  }
  0x72   : > { %v654_v21 = vmul.f32 %v651_v10, %v4273_v0  ;;  %v678_v23 = vmul.f32 %v676_v17, %v4279_v3  ;;  %v726_v31 = vstv %s3740_s5  ;;  %s3750_s5 = sld [smem:[#allocation3 + $0x80]] }
  0x73   : > { %v633_v11 = vrot.slane %v626_v5, 6  ;;  %v727_v37 = vmul.f32 %v726_v31, %v4276_v1 }
  0x74   : > { %385 = vrot.lane.b32.xlu1 %v382_v45, %s4098_s30  ;;  %364 = vrot.lane.b32.xlu0 %v358_v35, %s4097_s24  ;;  %v531_v35 = vrot.slane %v525_v27, 1  ;;  %v576_v45 = vmul.f32 %v575_v39, %v4276_v1  ;;  %v661_v25 = vrot.slane %v654_v21, 6  ;;  %v701_v27 = vstv %s3739_s4  ;;  %s3749_s4 = sld [smem:[#allocation3 + $0x7c]] }
  0x75   : > { %v703_v30 = vmul.f32 %v701_v27, %v4279_v3  ;;  %v733_v43 = vrot.slane %v727_v37, 1 }
  0x76   : > { %v533_v40 = vsel %vm265_vm0, %v531_v35, %v532_v36  ;;  %v582_v53 = vrot.slane %v576_v45, 3  ;;  %v702_v35 = vmul.f32 %v701_v27, %v4276_v1  ;;  %v729_v45 = vmul.f32 %v726_v31, %v4273_v0 }
  0x77   : > { %v709_v36 = vrot.slane %v703_v30, 1 }
  0x78   : > { %389 = vrot.lane.b32.xlu1 %v383_v46, %s4098_s30  ;;  %387 = vrot.lane.b32.xlu0 %v384_v50, %s4098_s30  ;;  %v558_v46 = vrot.slane %v551_v41, 3  ;;  %v578_v50 = vmul.f32 %v575_v39, %v4273_v0  ;;  %v708_v42 = vrot.slane %v702_v35, 1 }
  0x7a   : > { %v559_v52 = vsel %vm556_vm3, %v557_v48, %v558_v46  ;;  %v585_v56 = vrot.slane %v578_v50, 3  ;;  %v751_v48 = vstv %s3741_s8  ;;  %v736_v50 = vrot.slane %v729_v45, 1  ;;  %s4104_s8 = smov 123  }
  0x7c   : > { %413 = vrot.lane.b32.xlu1 %v408_v57, %s4099_s10  ;;  %411 = vrot.lane.b32.xlu0 %v406_v51, %s4099_s10  ;;  %v561_v51 = vsel %vm556_vm3, %v558_v46, %v560_v47  ;;  %v584_v57 = vsel %vm556_vm3, %v582_v53, %v583_v54  ;;  %v586_v62 = vsel %vm556_vm3, %v583_v54, %v585_v56  ;;  %v776_v54 = vstv %s3742_s11  ;;  %s3751_s11 = sld [smem:[#allocation3 + $0x84]] }
  0x7d   : > { %v752_v53 = vmul.f32 %v751_v48, %v4276_v1 }
  0x7f   : > { %v758_v59 = vrot.slane %v752_v53, 1 }
  0x80   : > { %436 = vrot.lane.b32.xlu1 %v431_v60, %s4097_s24  ;;  %415 = vrot.lane.b32.xlu0 %v410_v63, %s4099_s10  ;;  %v601_v60 = vmul.f32 %v600_v55, %v4276_v1  ;;  %v608_v63 = vrot.slane %v602_v58, 3 }
  0x82   : > { %v607_v4 = vrot.slane %v601_v60, 3  ;;  %v778_v60 = vmul.f32 %v776_v54, %v4279_v3 }
  0x84   : > { %440 = vrot.lane.b32.xlu1 %v435_v6, %s4097_s24  ;;  %438 = vrot.lane.b32.xlu0 %v433_v7, %s4097_s24  ;;  %v627_v6 = vmul.f32 %v625_v61, %v4279_v3  ;;  %v611_v7 = vsel %vm556_vm3, %v608_v63, %v610_v2  ;;  %v609_v8 = vsel %vm556_vm3, %v607_v4, %v608_v63 }
  0x86   : > { %v634_v12 = vrot.slane %v627_v6, 6  ;;  %v785_v6 = vrot.slane %v778_v60, 4 }
  0x88   : > { %463 = vrot.lane.b32.xlu1 %v458_v15, %s4100_s23  ;;  %461 = vrot.lane.b32.xlu0 %v456_v9, %s4100_s23  ;;  %v628_v9 = vmul.f32 %v625_v61, %v4273_v0  ;;  %v653_v15 = vmul.f32 %v651_v10, %v4279_v3  ;;  %v635_v16 = vsel %vm632_vm4, %v633_v11, %v634_v12 }
  0x8a   : > { %v636_v13 = vrot.slane %v628_v9, 6 }
  0x8c   : > { %486 = vrot.lane.b32.xlu1 %v483_v22, %s4099_s10  ;;  %465 = vrot.lane.b32.xlu0 %v460_v19, %s4100_s23  ;;  %v637_v18 = vsel %vm632_vm4, %v634_v12, %v636_v13  ;;  %v658_v19 = vrot.slane %v652_v14, 6  ;;  %v677_v22 = vmul.f32 %v676_v17, %v4276_v1 }
  0x8e   : > { %v683_v28 = vrot.slane %v677_v22, 6 }
  0x90   : > { %490 = vrot.lane.b32.xlu1 %v484_v20, %s4099_s10  ;;  %488 = vrot.lane.b32.xlu0 %v485_v26, %s4099_s10  ;;  %v659_v20 = vrot.slane %v653_v15, 6  ;;  %v679_v26 = vmul.f32 %v676_v17, %v4273_v0  ;;  %v827_v17 = vstv %s3744_s28  ;;  %s3753_s28 = sld [smem:[#allocation3 + $0x8c]] }
  0x91   : > { %v828_v22 = vmul.f32 %v827_v17, %v4276_v1  ;;  %v830_v30 = vmul.f32 %v827_v17, %v4273_v0 }
  0x92   : > { %v660_v24 = vsel %vm632_vm4, %v658_v19, %v659_v20  ;;  %v662_v32 = vsel %vm632_vm4, %v659_v20, %v661_v25 }
  0x93   : > { %v837_v35 = vrot.slane %v830_v30, 4 }
  0x94   : > { %513 = vrot.lane.b32.xlu1 %v510_v33, %s4097_s24  ;;  %511 = vrot.lane.b32.xlu0 %v508_v34, %s4097_s24  ;;  %v686_v33 = vrot.slane %v679_v26, 6  ;;  %v704_v34 = vmul.f32 %v701_v27, %v4273_v0 }
  0x96   : > { %v711_v41 = vrot.slane %v704_v34, 1 }
  0x98   : > { %536 = vrot.lane.b32.xlu1 %v533_v40, %s4100_s23  ;;  %515 = vrot.lane.b32.xlu0 %v509_v29, %s4097_s24  ;;  %v684_v29 = vrot.slane %v678_v23, 6  ;;  %v712_v46 = vsel %vm265_vm0, %v709_v36, %v711_v41  ;;  %v829_v23 = vmul.f32 %v827_v17, %v4279_v3  ;;  %v941_v17 = vstv %s3749_s4  ;;  %s3764_s4 = sld [smem:[#allocation3 + $0x1d]] }
  0x9a   : > { %v687_v39 = vsel %vm632_vm4, %v684_v29, %v686_v33  ;;  %v685_v40 = vsel %vm632_vm4, %v683_v28, %v684_v29  ;;  %v835_v29 = vrot.slane %v829_v23, 4  ;;  %v852_v33 = vstv %s3745_s27  ;;  %s3758_s27 = sld [smem:[#allocation3 + $0x5]] }
  0x9b   : > { %v854_v37 = vmul.f32 %v852_v33, %v4279_v3  ;;  %v942_v23 = vmul.f32 %v941_v17, %v4276_v1 }
  0x9c   : > { %540 = vrot.lane.b32.xlu1 %v534_v38, %s4100_s23  ;;  %538 = vrot.lane.b32.xlu0 %v535_v44, %s4100_s23  ;;  %v728_v38 = vmul.f32 %v726_v31, %v4279_v3 }
  0x9e   : > { %v734_v44 = vrot.slane %v728_v38, 1 }
  0xa0   : > { %564 = vrot.lane.b32.xlu1 %v561_v51, %s4099_s10  ;;  %562 = vrot.lane.b32.xlu0 %v559_v52, %s4099_s10  ;;  %v735_v49 = vsel %vm265_vm0, %v733_v43, %v734_v44  ;;  %v753_v51 = vmul.f32 %v751_v48, %v4279_v3  ;;  %v754_v52 = vmul.f32 %v751_v48, %v4273_v0  ;;  %v874_v43 = vstv %s3746_s6  ;;  %s3761_s6 = sld [smem:[#allocation3 + $0x11]] }
  0xa1   : > { %v737_v55 = vsel %vm265_vm0, %v734_v44, %v736_v50  ;;  %v876_v48 = vmul.f32 %v874_v43, %v4279_v3 }
  0xa2   : > { %v761_v58 = vrot.slane %v754_v52, 1 }
  0xa3   : > { %v880_v53 = vrot.slane %v876_v48, 5  ;;  %v991_v48 = vstv %s3751_s11  ;;  %s3766_s11 = sld [smem:[#allocation3 + $0x25]] }
  0xa4   : > { %587 = vrot.lane.b32.xlu1 %v584_v57, %s4097_s24  ;;  %566 = vrot.lane.b32.xlu0 %v560_v47, %s4099_s10  ;;  %v710_v47 = vsel %vm265_vm0, %v708_v42, %v709_v36  ;;  %v759_v57 = vrot.slane %v753_v51, 1  ;;  %v853_v36 = vmul.f32 %v852_v33, %v4276_v1  ;;  %v859_v42 = vrot.slane %v854_v37, 5 }
  0xa5   : > { %v895_v51 = vstv %s3747_s12  ;;  %s3759_s12 = sld [smem:[#allocation3 + $0x9]] }
  0xa6   : > { %v762_v4 = vsel %vm265_vm0, %v759_v57, %v761_v58  ;;  %v760_v5 = vsel %vm265_vm0, %v758_v59, %v759_v57 }
  0xa8   : > { %591 = vrot.lane.b32.xlu1 %v585_v56, %s4097_s24  ;;  %589 = vrot.lane.b32.xlu0 %v586_v62, %s4097_s24  ;;  %v777_v56 = vmul.f32 %v776_v54, %v4276_v1 }
  0xaa   : > { %v784_v63 = vrot.slane %v777_v56, 4  ;;  %v916_v56 = vstv %s3748_s20  ;;  %s3762_s20 = sld [smem:[#allocation3 + $0x15]] }
  0xab   : > { %v917_v59 = vmul.f32 %v916_v56, %v4276_v1 }
  0xac   : > { %614 = vrot.lane.b32.xlu1 %v611_v7, %s4100_s23  ;;  %612 = vrot.lane.b32.xlu0 %v609_v8, %s4100_s23  ;;  %v802_v7 = vstv %s3743_s13  ;;  %v786_v12 = vsel %vm783_vm5, %v784_v63, %v785_v6  ;;  %s3752_s13 = sld [smem:[#allocation3 + $0x88]] }
  0xad   : > { %v804_v10 = vmul.f32 %v802_v7, %v4279_v3  ;;  %v803_v14 = vmul.f32 %v802_v7, %v4276_v1 }
  0xaf   : > { %v809_v21 = vrot.slane %v803_v14, 4 }
  0xb0   : > { %638 = vrot.lane.b32.xlu1 %v633_v11, %s4101_s7  ;;  %616 = vrot.lane.b32.xlu0 %v610_v2, %s4100_s23  ;;  %v779_v2 = vmul.f32 %v776_v54, %v4273_v0  ;;  %v805_v11 = vmul.f32 %v802_v7, %v4273_v0  ;;  %v896_v54 = vmul.f32 %v895_v51, %v4276_v1 }
  0xb1   : > { %v919_v7 = vmul.f32 %v916_v56, %v4273_v0 }
  0xb2   : > { %v787_v13 = vrot.slane %v779_v2, 4  ;;  %v900_v63 = vrot.slane %v896_v54, 5  ;;  %v993_v54 = vmul.f32 %v991_v48, %v4273_v0 }
  0xb4   : > { %642 = vrot.lane.b32.xlu1 %v637_v18, %s4101_s7  ;;  %640 = vrot.lane.b32.xlu0 %v635_v16, %s4101_s7  ;;  %v810_v18 = vrot.slane %v804_v10, 4  ;;  %v788_v20 = vsel %vm783_vm5, %v785_v6, %v787_v13 }
  0xb6   : > { %v811_v27 = vsel %vm783_vm5, %v809_v21, %v810_v18  ;;  %v943_v21 = vmul.f32 %v941_v17, %v4279_v3 }
  0xb8   : > { %665 = vrot.lane.b32.xlu1 %v660_v24, %s4097_s24  ;;  %663 = vrot.lane.b32.xlu0 %v658_v19, %s4097_s24  ;;  %v812_v19 = vrot.slane %v805_v11, 4  ;;  %v923_v11 = vrot.slane %v917_v59, 1  ;;  %v949_v33 = vrot.slane %v943_v21, 1 }
  0xba   : > { %v813_v26 = vsel %vm783_vm5, %v810_v18, %v812_v19  ;;  %v926_v18 = vrot.slane %v919_v7, 1 }
  0xbc   : > { %688 = vrot.lane.b32.xlu1 %v683_v28, %s4102_s9  ;;  %667 = vrot.lane.b32.xlu0 %v662_v32, %s4097_s24  ;;  %v834_v28 = vrot.slane %v828_v22, 4  ;;  %v944_v22 = vmul.f32 %v941_v17, %v4273_v0 }
  0xbe   : > { %v836_v34 = vsel %vm783_vm5, %v834_v28, %v835_v29 }
  0xc0   : > { %692 = vrot.lane.b32.xlu1 %v687_v39, %s4102_s9  ;;  %690 = vrot.lane.b32.xlu0 %v685_v40, %s4102_s9  ;;  %v838_v40 = vsel %vm783_vm5, %v835_v29, %v837_v35 }
  0xc4   : > { %715 = vrot.lane.b32.xlu1 %v712_v46, %s4101_s7  ;;  %713 = vrot.lane.b32.xlu0 %v710_v47, %s4101_s7  ;;  %v875_v46 = vmul.f32 %v874_v43, %v4276_v1 }
  0xc6   : > { %v879_v52 = vrot.slane %v875_v46, 5 }
  0xc8   : > { %738 = vrot.lane.b32.xlu1 %v735_v49, %s4097_s24  ;;  %717 = vrot.lane.b32.xlu0 %v711_v41, %s4101_s7  ;;  %v858_v41 = vrot.slane %v853_v36, 5  ;;  %v881_v60 = vsel %vm857_vm6, %v879_v52, %v880_v53 }
  0xca   : > { %v4440_v61 = vpop.permute.xlu1 %229  ;;  %v4442_v62 = vpop.permute.xlu0 %225  ;;  %v860_v47 = vsel %vm857_vm6, %v858_v41, %v859_v42 }
  0xcc   : > { %742 = vrot.lane.b32.xlu1 %v736_v50, %s4097_s24  ;;  %740 = vrot.lane.b32.xlu0 %v737_v55, %s4097_s24  ;;  %v897_v55 = vmul.f32 %v895_v51, %v4279_v3 }
  0xce   : > { %v4449_v8 = vpop.permute.xlu1 %245  ;;  %v4451_v9 = vpop.permute.xlu0 %227  ;;  %v901_v2 = vrot.slane %v897_v55, 5 }
  0xd0   : > { %765 = vrot.lane.b32.xlu1 %v762_v4, %s4102_s9  ;;  %763 = vrot.lane.b32.xlu0 %v760_v5, %s4102_s9  ;;  %v918_v4 = vmul.f32 %v916_v56, %v4279_v3  ;;  %v902_v10 = vsel %vm857_vm6, %v900_v63, %v901_v2 }
  0xd2   : > { %v4459_v15 = vpop.permute.xlu1 %249  ;;  %v4461_v16 = vpop.permute.xlu0 %247 }
  0xd4   : > { %789 = vrot.lane.b32.xlu1 %v786_v12, %s4101_s7  ;;  %767 = vrot.lane.b32.xlu0 %v761_v58, %s4102_s9  ;;  %v924_v12 = vrot.slane %v918_v4, 1 }
  0xd6   : > { %v4468_v24 = vpop.permute.xlu1 %292  ;;  %v4470_v25 = vpop.permute.xlu0 %290  ;;  %v927_v30 = vsel %vm265_vm0, %v924_v12, %v926_v18 }
  0xd8   : > { %793 = vrot.lane.b32.xlu1 %v787_v13, %s4101_s7  ;;  %791 = vrot.lane.b32.xlu0 %v788_v20, %s4101_s7  ;;  %v925_v20 = vsel %vm265_vm0, %v923_v11, %v924_v12 }
  0xda   : > { %v4477_v31 = vpop.permute.xlu1 %315  ;;  %v4479_v32 = vpop.permute.xlu0 %294 }
  0xdc   : > { %816 = vrot.lane.b32.xlu1 %v813_v26, %s4097_s24  ;;  %814 = vrot.lane.b32.xlu0 %v811_v27, %s4097_s24 }
  0xde   : > { %v4486_v38 = vpop.permute.xlu1 %319  ;;  %v4488_v39 = vpop.permute.xlu0 %317 }
  0xe0   : > { %839 = vrot.lane.b32.xlu1 %v836_v34, %s4102_s9  ;;  %818 = vrot.lane.b32.xlu0 %v812_v19, %s4097_s24  ;;  %v966_v19 = vstv %s3750_s5  ;;  %v951_v34 = vrot.slane %v944_v22, 1  ;;  %s3765_s5 = sld [smem:[#allocation3 + $0x21]] }
  0xe1   : > { %v967_v28 = vmul.f32 %v966_v19, %v4276_v1  ;;  %v968_v29 = vmul.f32 %v966_v19, %v4279_v3 }
  0xe2   : > { %v4493_v44 = vpop.permute.xlu1 %362  ;;  %v4495_v45 = vpop.permute.xlu0 %360 }
  0xe3   : > { %v974_v43 = vrot.slane %v968_v29, 1 }
  0xe4   : > { %843 = vrot.lane.b32.xlu1 %v837_v35, %s4102_s9  ;;  %841 = vrot.lane.b32.xlu0 %v838_v40, %s4102_s9  ;;  %v948_v35 = vrot.slane %v942_v23, 1  ;;  %v969_v40 = vmul.f32 %v966_v19, %v4273_v0  ;;  %v1033_v19 = vstv %s3753_s28  ;;  %s3768_s28 = sld [smem:[#allocation3 + $0x2d]] }
  0xe5   : > { %v1034_v22 = vmul.f32 %v1033_v19, %v4279_v3  ;;  %v1035_v23 = vmul.f32 %v1033_v19, %v4273_v0 }
  0xe6   : > { %v4502_v49 = vpop.permute.xlu1 %385  ;;  %v4504_v50 = vpop.permute.xlu0 %364  ;;  %v950_v1 = vsel %vm265_vm0, %v948_v35, %v949_v33 }
  0xe8   : > { %863 = vrot.lane.b32.xlu1 %v860_v47, %s4103_s21  ;;  %861 = vrot.lane.b32.xlu0 %v858_v41, %s4103_s21  ;;  %v952_v41 = vsel %vm265_vm0, %v949_v33, %v951_v34  ;;  %v1038_v33 = vrot.slane %v1034_v22, 5 }
  0xea   : > { %v4510_v57 = vpop.permute.xlu1 %389  ;;  %v4512_v58 = vpop.permute.xlu0 %387 }
  0xec   : > { %882 = vrot.lane.b32.xlu1 %v879_v52, %s4097_s24  ;;  %865 = vrot.lane.b32.xlu0 %v859_v42, %s4103_s21  ;;  %v973_v42 = vrot.slane %v967_v28, 1  ;;  %v976_v52 = vrot.slane %v969_v40, 1  ;;  %v4603_v40 = vld [vmem:[%s4266_s29 + $0x18] sm:$0xff] }
  0xee   : > { %v4519_v5 = vpop.permute.xlu1 %413  ;;  %v4521_v6 = vpop.permute.xlu0 %411  ;;  %v975_v51 = vsel %vm265_vm0, %v973_v42, %v974_v43  ;;  %v977_v59 = vsel %vm265_vm0, %v974_v43, %v976_v52 }
  0xf0   : > { %886 = vrot.lane.b32.xlu1 %v880_v53, %s4097_s24  ;;  %884 = vrot.lane.b32.xlu0 %v881_v60, %s4097_s24  ;;  %v992_v53 = vmul.f32 %v991_v48, %v4279_v3  ;;  %v4613_v48 = vld [vmem:[%s4266_s29 + $0x28] sm:$0xff] }
  0xf2   : > { %v4527_v13 = vpop.permute.xlu1 %436  ;;  %v4529_v14 = vpop.permute.xlu0 %415  ;;  %v996_v60 = vrot.slane %v992_v53, 5 }
  0xf4   : > { %905 = vrot.lane.b32.xlu1 %v902_v10, %s4104_s8  ;;  %903 = vrot.lane.b32.xlu0 %v900_v63, %s4104_s8  ;;  %v997_v63 = vrot.slane %v993_v54, 5  ;;  %v1125_v54 = vstv %s3761_s6  ;;  %s3770_s6 = sld [smem:[#allocation3 + $0x35]] }
  0xf6   : > { %v4537_v26 = vpop.permute.xlu1 %440  ;;  %v4539_v27 = vpop.permute.xlu0 %438  ;;  %v998_v11 = vsel %vm857_vm6, %v996_v60, %v997_v63 }
  0xf8   : > { %928 = vrot.lane.b32.xlu1 %v925_v20, %s4103_s21  ;;  %907 = vrot.lane.b32.xlu0 %v901_v2, %s4104_s8  ;;  %v1012_v2 = vstv %s3752_s13  ;;  %s3767_s13 = sld [smem:[#allocation3 + $0x29]] }
  0xf9   : > { %v1013_v10 = vmul.f32 %v1012_v2, %v4279_v3  ;;  %v1014_v12 = vmul.f32 %v1012_v2, %v4273_v0  ;;  %v1126_v2 = vmul.f32 %v4603_v40, %v1125_v54 }
  0xfa   : > { %v4546_v36 = vpop.permute.xlu1 %463  ;;  %v4548_v37 = vpop.permute.xlu0 %461 }
  0xfb   : > { %v1017_v20 = vrot.slane %v1013_v10, 5  ;;  %v1018_v21 = vrot.slane %v1014_v12, 5 }
  0xfc   : > { %932 = vrot.lane.b32.xlu1 %v926_v18, %s4103_s21  ;;  %930 = vrot.lane.b32.xlu0 %v927_v30, %s4103_s21 }
  0xfd   : > { %v1019_v30 = vsel %vm857_vm6, %v1017_v20, %v1018_v21 }
  0xfe   : > { %v4555_v46 = vpop.permute.xlu1 %486  ;;  %v4557_v47 = vpop.permute.xlu0 %465 }
 0x100   : > { %955 = vrot.lane.b32.xlu1 %v952_v41, %s4097_s24  ;;  %953 = vrot.lane.b32.xlu0 %v950_v1, %s4097_s24  ;;  %v1066_v41 = vstv %s3758_s27  ;;  %s3769_s27 = sld [smem:[#allocation3 + $0x31]] }
 0x101   : > { %v1067_v43 = vmul.f32 %v4603_v40, %v1066_v41 }
 0x102   : > { %v4564_v55 = vpop.permute.xlu1 %490  ;;  %v4566_v56 = vpop.permute.xlu0 %488 }
 0x104   : > { %978 = vrot.lane.b32.xlu1 %v975_v51, %s4104_s8  ;;  %957 = vrot.lane.b32.xlu0 %v951_v34, %s4097_s24  ;;  %v1039_v34 = vrot.slane %v1035_v23, 5  ;;  %v4616_v51 = vld [vmem:[%s4266_s29 + $0x20] sm:$0xff]  ;;  %v1128_v23 = vmul.f32 %v4613_v48, %v1125_v54 }
 0x105   : > { %v1127_v10 = vmul.f32 %v4616_v51, %v1125_v54 }
 0x106   : > { %v4571_v4 = vpop.permute.xlu1 %513  ;;  %v4573_v7 = vpop.permute.xlu0 %511  ;;  %v1040_v0 = vsel %vm857_vm6, %v1038_v33, %v1039_v34  ;;  %v1135_v54 = vrot.slane %v1128_v23, 1 }
 0x107   : > { %6506 = vst [vmem:[#allocation12_spill] sm:$0xff] %v4571_v4  ;;  %6507 = vst [vmem:[#allocation13_spill] sm:$0xff] %v4573_v7  ;;  %v1133_v22 = vrot.slane %v1127_v10, 1 }
 0x108   : > { %982 = vrot.lane.b32.xlu1 %v976_v52, %s4104_s8  ;;  %980 = vrot.lane.b32.xlu0 %v977_v59, %s4104_s8  ;;  %v1069_v59 = vmul.f32 %v4613_v48, %v1066_v41 }
 0x10a   : > { %v4580_v17 = vpop.permute.xlu1 %536  ;;  %v4582_v18 = vpop.permute.xlu0 %515 }
 0x10b   : > { %6508 = vst [vmem:[#allocation14_spill] sm:$0xff] %v4580_v17  ;;  %6509 = vst [vmem:[#allocation15_spill] sm:$0xff] %v4582_v18 }
 0x10c   : > { %1001 = vrot.lane.b32.xlu1 %v998_v11, %s4103_s21  ;;  %999 = vrot.lane.b32.xlu0 %v996_v60, %s4103_s21  ;;  %v1068_v60 = vmul.f32 %v4616_v51, %v1066_v41 }
 0x10e   : > { %v4588_v28 = vpop.permute.xlu1 %540  ;;  %v4590_v29 = vpop.permute.xlu0 %538 }
 0x10f   : > { %6510 = vst [vmem:[#allocation16_spill] sm:$0xff] %v4588_v28  ;;  %6511 = vst [vmem:[#allocation17_spill] sm:$0xff] %v4590_v29 }
 0x110   : > { %1020 = vrot.lane.b32.xlu1 %v1017_v20, %s4097_s24  ;;  %1003 = vrot.lane.b32.xlu0 %v997_v63, %s4103_s21  ;;  %v1086_v63 = vstv %s3759_s12  ;;  %s3771_s12 = sld [smem:[#allocation3 + $0x39]] }
 0x111   : > { %v1088_v19 = vmul.f32 %v4616_v51, %v1086_v63  ;;  %v1087_v20 = vmul.f32 %v4603_v40, %v1086_v63 }
 0x112   : > { %v4595_v35 = vpop.permute.xlu1 %564  ;;  %v4597_v3 = vpop.permute.xlu0 %562 }
 0x113   : > { %6512 = vst [vmem:[#allocation18_spill] sm:$0xff] %v4595_v35  ;;  %6513 = vst [vmem:[#allocation19_spill] sm:$0xff] %v4597_v3 }
 0x114   : > { %1024 = vrot.lane.b32.xlu1 %v1018_v21, %s4097_s24  ;;  %1022 = vrot.lane.b32.xlu0 %v1019_v30, %s4097_s24  ;;  %v1132_v21 = vrot.slane %v1126_v2, 1  ;;  %v1150_v30 = vstv %s3762_s20  ;;  %s3772_s20 = sld [smem:[#allocation3 + $0x3d]] }
 0x115   : > { %v1152_v41 = vmul.f32 %v4616_v51, %v1150_v30 }
 0x116   : > { %v4605_v1 = vpop.permute.xlu1 %587  ;;  %v4607_v42 = vpop.permute.xlu0 %566 }
 0x117   : > { %6514 = vst [vmem:[#allocation20_spill] sm:$0xff] %v4605_v1  ;;  %6515 = vst [vmem:[#allocation21_spill] sm:$0xff] %v4607_v42 }
 0x118   : > { %1043 = vrot.lane.b32.xlu1 %v1040_v0, %s4104_s8  ;;  %1041 = vrot.lane.b32.xlu0 %v1038_v33, %s4104_s8  ;;  %v1089_v0 = vmul.f32 %v4613_v48, %v1086_v63  ;;  %v1158_v63 = vrot.slane %v1152_v41, 1 }
 0x11a   : > { %v4618_v52 = vpop.permute.xlu1 %591  ;;  %v4620_v53 = vpop.permute.xlu0 %589 }
 0x11b   : > { %6516 = vst [vmem:[#allocation22_spill] sm:$0xff] %v4618_v52  ;;  %6517 = vst [vmem:[#allocation23_spill] sm:$0xff] %v4620_v53  ;;  %v3965_v52 = vld [vmem:[%s4266_s29] sm:$0xff] }
 0x11c   : > { %1073 = vrot.lane.b32.xlu1 %v1067_v43, %s4097_s24  ;;  %1045 = vrot.lane.b32.xlu0 %v1039_v34, %s4104_s8  ;;  %v1153_v43 = vmul.f32 %v4613_v48, %v1150_v30 }
 0x11e   : > { %v4628_v11 = vpop.permute.xlu1 %614  ;;  %v4630_v12 = vpop.permute.xlu0 %612 }
 0x11f   : > { %6518 = vst [vmem:[#allocation24_spill] sm:$0xff] %v4628_v11  ;;  %6519 = vst [vmem:[#allocation25_spill] sm:$0xff] %v4630_v12  ;;  %v1136_v11 = vsel %vm265_vm0, %v1133_v22, %v1135_v54 }
 0x120   : > { %1077 = vrot.lane.b32.xlu1 %v1069_v59, %s4097_s24  ;;  %1075 = vrot.lane.b32.xlu0 %v1068_v60, %s4097_s24  ;;  %v1151_v59 = vmul.f32 %v4603_v40, %v1150_v30  ;;  %v1134_v60 = vsel %vm265_vm0, %v1132_v21, %v1133_v22 }
 0x122   : > { %v4637_v33 = vpop.permute.xlu1 %638  ;;  %v4639_v34 = vpop.permute.xlu0 %616 }
 0x123   : > { %6520 = vst [vmem:[#allocation26_spill] sm:$0xff] %v4637_v33  ;;  %6521 = vst [vmem:[#allocation27_spill] sm:$0xff] %v4639_v34  ;;  %v1194_v33 = vstv %s3764_s4  ;;  %s3773_s4 = sld [smem:[#allocation3 + $0x41]] }
 0x124   : > { %1095 = vrot.lane.b32.xlu1 %v1088_v19, %s4098_s30  ;;  %1093 = vrot.lane.b32.xlu0 %v1087_v20, %s4098_s30  ;;  %v1160_v19 = vrot.slane %v1153_v43, 1  ;;  %v1157_v20 = vrot.slane %v1151_v59, 1  ;;  %v1195_v30 = vmul.f32 %v4603_v40, %v1194_v33  ;;  %v1196_v21 = vmul.f32 %v4616_v51, %v1194_v33 }
 0x125   : > { %v1197_v22 = vmul.f32 %v4613_v48, %v1194_v33  ;;  %v1219_v59 = vstv %s3765_s5  ;;  %s3774_s5 = sld [smem:[#allocation3 + $0x45]] }
 0x126   : > { %v4648_v2 = vpop.permute.xlu1 %642  ;;  %v4650_v10 = vpop.permute.xlu0 %640  ;;  %v1201_v41 = vrot.slane %v1195_v30, 2  ;;  %v1202_v43 = vrot.slane %v1196_v21, 2  ;;  %v1220_v30 = vmul.f32 %v4603_v40, %v1219_v59 }
 0x127   : > { %6522 = vst [vmem:[#allocation28_spill] sm:$0xff] %v4648_v2  ;;  %6523 = vst [vmem:[#allocation29_spill] sm:$0xff] %v4650_v10 }
 0x128   : > { %1137 = vrot.lane.b32.xlu1 %v1134_v60, %s4097_s24  ;;  %1097 = vrot.lane.b32.xlu0 %v1089_v0, %s4098_s30  ;;  %v1161_v60 = vsel %vm265_vm0, %v1158_v63, %v1160_v19  ;;  %v1159_v0 = vsel %vm265_vm0, %v1157_v20, %v1158_v63  ;;  %v1203_v63 = vsel %vm335_vm1, %v1201_v41, %v1202_v43  ;;  %v1204_v20 = vrot.slane %v1197_v22, 2 }
 0x12a   : > { %v4657_v23 = vpop.permute.xlu1 %665  ;;  %v4659_v34 = vpop.permute.xlu0 %663 }
 0x12b   : > { %6524 = vst [vmem:[#allocation30_spill] sm:$0xff] %v4657_v23  ;;  %6525 = vst [vmem:[#allocation31_spill] sm:$0xff] %v4659_v34  ;;  %v1244_v34 = vstv %s3766_s11  ;;  %s3775_s11 = sld [smem:[#allocation3 + $0x49]] }
 0x12c   : > { %1141 = vrot.lane.b32.xlu1 %v1135_v54, %s4097_s24  ;;  %1139 = vrot.lane.b32.xlu0 %v1136_v11, %s4097_s24  ;;  %v1221_v11 = vmul.f32 %v4616_v51, %v1219_v59  ;;  %v1222_v54 = vmul.f32 %v4613_v48, %v1219_v59  ;;  %v1245_v59 = vmul.f32 %v4603_v40, %v1244_v34 }
 0x12e   : > { %v4666_v10 = vpop.permute.xlu1 %688  ;;  %v4668_v2 = vpop.permute.xlu0 %667 }
 0x12f   : > { %6526 = vst [vmem:[#allocation32_spill] sm:$0xff] %v4666_v10  ;;  %6527 = vst [vmem:[#allocation33_spill] sm:$0xff] %v4668_v2  ;;  %v1205_v10 = vsel %vm335_vm1, %v1202_v43, %v1204_v20  ;;  %v1226_v2 = vrot.slane %v1220_v30, 2  ;;  %v1247_v43 = vmul.f32 %v4613_v48, %v1244_v34 }
 0x130   : > { %1164 = vrot.lane.b32.xlu1 %v1161_v60, %s4098_s30  ;;  %1162 = vrot.lane.b32.xlu0 %v1159_v0, %s4098_s30  ;;  %v1227_v60 = vrot.slane %v1221_v11, 2  ;;  %v1229_v0 = vrot.slane %v1222_v54, 2  ;;  %v1246_v11 = vmul.f32 %v4616_v51, %v1244_v34  ;;  %v1269_v54 = vstv %s3767_s13  ;;  %s3776_s13 = sld [smem:[#allocation3 + $0x4d]] }
 0x132   : > { %v4676_v33 = vpop.permute.xlu1 %692  ;;  %v4678_v21 = vpop.permute.xlu0 %690  ;;  %v1230_v22 = vsel %vm335_vm1, %v1227_v60, %v1229_v0 }
 0x133   : > { %6528 = vst [vmem:[#allocation34_spill] sm:$0xff] %v4676_v33  ;;  %6529 = vst [vmem:[#allocation35_spill] sm:$0xff] %v4678_v21  ;;  %v1272_v33 = vmul.f32 %v4613_v48, %v1269_v54 }
 0x134   : > { %1206 = vrot.lane.b32.xlu1 %v1203_v63, %s4097_s24  ;;  %1166 = vrot.lane.b32.xlu0 %v1160_v19, %s4098_s30  ;;  %v1228_v19 = vsel %vm335_vm1, %v1226_v2, %v1227_v60  ;;  %v1252_v2 = vrot.slane %v1246_v11, 7  ;;  %v1254_v60 = vrot.slane %v1247_v43, 7 }
 0x136   : > { %v4683_v23 = vpop.permute.xlu1 %715  ;;  %v4685_v41 = vpop.permute.xlu0 %713 }
 0x137   : > { %6530 = vst [vmem:[#allocation36_spill] sm:$0xff] %v4683_v23  ;;  %6531 = vst [vmem:[#allocation37_spill] sm:$0xff] %v4685_v41  ;;  %v1271_v41 = vmul.f32 %v4616_v51, %v1269_v54 }
 0x138   : > { %1210 = vrot.lane.b32.xlu1 %v1204_v20, %s4097_s24  ;;  %1208 = vrot.lane.b32.xlu0 %v1205_v10, %s4097_s24  ;;  %v1251_v10 = vrot.slane %v1245_v59, 7  ;;  %v1270_v20 = vmul.f32 %v4603_v40, %v1269_v54 }
 0x13a   : > { %v4694_v63 = vpop.permute.xlu1 %738  ;;  %v4696_v30 = vpop.permute.xlu0 %717  ;;  %v1253_v59 = vsel %vm405_vm2, %v1251_v10, %v1252_v2 }
 0x13b   : > { %6532 = vst [vmem:[#allocation38_spill] sm:$0xff] %v4694_v63  ;;  %6533 = vst [vmem:[#allocation39_spill] sm:$0xff] %v4696_v30  ;;  %v1276_v63 = vrot.slane %v1270_v20, 7  ;;  %v1294_v30 = vstv %s3768_s28  ;;  %v1279_v20 = vrot.slane %v1272_v33, 7  ;;  %s3777_s28 = sld [smem:[#allocation3 + $0x51]] }
 0x13c   : > { %1233 = vrot.lane.b32.xlu1 %v1230_v22, %s4098_s30  ;;  %1231 = vrot.lane.b32.xlu0 %v1228_v19, %s4098_s30  ;;  %v1277_v22 = vrot.slane %v1271_v41, 7  ;;  %v1255_v19 = vsel %vm405_vm2, %v1252_v2, %v1254_v60  ;;  %v1295_v41 = vmul.f32 %v4603_v40, %v1294_v30  ;;  %v1296_v60 = vmul.f32 %v4616_v51, %v1294_v30 }
 0x13d   : > { %v1319_v2 = vstv %s3769_s27  ;;  %s3778_s27 = sld [smem:[#allocation3 + $0x55]] }
 0x13e   : > { %v4702_v23 = vpop.permute.xlu1 %742  ;;  %v4704_v34 = vpop.permute.xlu0 %740  ;;  %v1320_v33 = vmul.f32 %v4603_v40, %v1319_v2 }
 0x13f   : > { %6534 = vst [vmem:[#allocation40_spill] sm:$0xff] %v4702_v23  ;;  %6535 = vst [vmem:[#allocation41_spill] sm:$0xff] %v4704_v34  ;;  %v1280_v34 = vsel %vm405_vm2, %v1277_v22, %v1279_v20  ;;  %v1302_v23 = vrot.slane %v1296_v60, 7 }
 0x140   : > { %1256 = vrot.lane.b32.xlu1 %v1251_v10, %s4099_s10  ;;  %1235 = vrot.lane.b32.xlu0 %v1229_v0, %s4098_s30  ;;  %v1278_v0 = vsel %vm405_vm2, %v1276_v63, %v1277_v22  ;;  %v1297_v10 = vmul.f32 %v4613_v48, %v1294_v30 }
 0x142   : > { %v4711_v11 = vpop.permute.xlu1 %765  ;;  %v4713_v43 = vpop.permute.xlu0 %763  ;;  %v1304_v30 = vrot.slane %v1297_v10, 7 }
 0x143   : > { %6536 = vst [vmem:[#allocation42_spill] sm:$0xff] %v4711_v11  ;;  %6537 = vst [vmem:[#allocation43_spill] sm:$0xff] %v4713_v43  ;;  %v1322_v43 = vmul.f32 %v4613_v48, %v1319_v2 }
 0x144   : > { %1260 = vrot.lane.b32.xlu1 %v1255_v19, %s4099_s10  ;;  %1258 = vrot.lane.b32.xlu0 %v1253_v59, %s4099_s10  ;;  %v1301_v19 = vrot.slane %v1295_v41, 7  ;;  %v1321_v59 = vmul.f32 %v4616_v51, %v1319_v2  ;;  %v1326_v41 = vrot.slane %v1320_v33, 1  ;;  %v1305_v12 = vsel %vm405_vm2, %v1302_v23, %v1304_v30 }
 0x146   : > { %v4721_v54 = vpop.permute.xlu1 %789  ;;  %v4723_v11 = vpop.permute.xlu0 %767  ;;  %v1303_v2 = vsel %vm405_vm2, %v1301_v19, %v1302_v23 }
 0x147   : > { %6538 = vst [vmem:[#allocation44_spill] sm:$0xff] %v4721_v54  ;;  %6539 = vst [vmem:[#allocation45_spill] sm:$0xff] %v4723_v11  ;;  %v1344_v11 = vstv %s3770_s6  ;;  %s3779_s6 = sld [smem:[#allocation3 + $0x59]] }
 0x148   : > { %1283 = vrot.lane.b32.xlu1 %v1278_v0, %s4097_s24  ;;  %1281 = vrot.lane.b32.xlu0 %v1276_v63, %s4097_s24  ;;  %v1327_v63 = vrot.slane %v1321_v59, 1  ;;  %v1329_v0 = vrot.slane %v1322_v43, 1  ;;  %v1345_v22 = vmul.f32 %v4603_v40, %v1344_v11  ;;  %v1346_v20 = vmul.f32 %v4616_v51, %v1344_v11 }
 0x149   : > { %v1347_v23 = vmul.f32 %v4613_v48, %v1344_v11 }
 0x14a   : > { %v4731_v21 = vpop.permute.xlu1 %793  ;;  %v4733_v54 = vpop.permute.xlu0 %791  ;;  %v1328_v43 = vsel %vm265_vm0, %v1326_v41, %v1327_v63  ;;  %v1351_v59 = vrot.slane %v1345_v22, 1  ;;  %v1352_v33 = vrot.slane %v1346_v20, 1  ;;  %v1394_v20 = vstv %s3772_s20  ;;  %s3781_s20 = sld [smem:[#allocation3 + $0x61]] }
 0x14b   : > { %6540 = vst [vmem:[#allocation46_spill] sm:$0xff] %v4731_v21  ;;  %6541 = vst [vmem:[#allocation47_spill] sm:$0xff] %v4733_v54  ;;  %v1354_v41 = vrot.slane %v1347_v23, 1 }
 0x14c   : > { %1306 = vrot.lane.b32.xlu1 %v1301_v19, %s4100_s23  ;;  %1285 = vrot.lane.b32.xlu0 %v1280_v34, %s4097_s24  ;;  %v1330_v34 = vsel %vm265_vm0, %v1327_v63, %v1329_v0  ;;  %v1369_v19 = vstv %s3771_s12  ;;  %v1353_v63 = vsel %vm265_vm0, %v1351_v59, %v1352_v33  ;;  %v1396_v59 = vmul.f32 %v4616_v51, %v1394_v20  ;;  %s3780_s12 = sld [smem:[#allocation3 + $0x5d]] }
 0x14e   : > { %v4741_v60 = vpop.permute.xlu1 %816  ;;  %v4743_v10 = vpop.permute.xlu0 %814 }
 0x14f   : > { %6542 = vst [vmem:[#allocation48_spill] sm:$0xff] %v4741_v60  ;;  %6543 = vst [vmem:[#allocation49_spill] sm:$0xff] %v4743_v10  ;;  %v1370_v60 = vmul.f32 %v4603_v40, %v1369_v19 }
 0x150   : > { %1310 = vrot.lane.b32.xlu1 %v1305_v12, %s4100_s23  ;;  %1308 = vrot.lane.b32.xlu0 %v1303_v2, %s4100_s23  ;;  %v1371_v12 = vmul.f32 %v4616_v51, %v1369_v19  ;;  %v1372_v2 = vmul.f32 %v4613_v48, %v1369_v19  ;;  %v1395_v19 = vmul.f32 %v4603_v40, %v1394_v20 }
 0x152   : > { %v4750_v30 = vpop.permute.xlu1 %839  ;;  %v4752_v54 = vpop.permute.xlu0 %818 }
 0x153   : > { %6544 = vst [vmem:[#allocation50_spill] sm:$0xff] %v4750_v30  ;;  %6545 = vst [vmem:[#allocation51_spill] sm:$0xff] %v4752_v54  ;;  %v1376_v54 = vrot.slane %v1370_v60, 1  ;;  %v1355_v30 = vsel %vm265_vm0, %v1352_v33, %v1354_v41  ;;  %v1401_v60 = vrot.slane %v1395_v19, 3  ;;  %v1397_v33 = vmul.f32 %v4613_v48, %v1394_v20 }
 0x154   : > { %1333 = vrot.lane.b32.xlu1 %v1330_v34, %s4099_s10  ;;  %1331 = vrot.lane.b32.xlu0 %v1328_v43, %s4099_s10  ;;  %v1377_v34 = vrot.slane %v1371_v12, 1  ;;  %v1379_v43 = vrot.slane %v1372_v2, 1  ;;  %v1402_v2 = vrot.slane %v1396_v59, 3  ;;  %v1444_v59 = vstv %s3774_s5  ;;  %s3783_s5 = sld [smem:[#allocation3 + $0x69]] }
 0x156   : > { %v4760_v11 = vpop.permute.xlu1 %843  ;;  %v4762_v22 = vpop.permute.xlu0 %841  ;;  %v1378_v12 = vsel %vm265_vm0, %v1376_v54, %v1377_v34  ;;  %v1403_v54 = vsel %vm556_vm3, %v1401_v60, %v1402_v2  ;;  %v1446_v60 = vmul.f32 %v4616_v51, %v1444_v59 }
 0x157   : > { %6546 = vst [vmem:[#allocation52_spill] sm:$0xff] %v4760_v11  ;;  %6547 = vst [vmem:[#allocation53_spill] sm:$0xff] %v4762_v22 }
 0x158   : > { %1356 = vrot.lane.b32.xlu1 %v1353_v63, %s4097_s24  ;;  %1335 = vrot.lane.b32.xlu0 %v1329_v0, %s4099_s10  ;;  %v1380_v0 = vsel %vm265_vm0, %v1377_v34, %v1379_v43  ;;  %v1419_v63 = vstv %s3773_s4  ;;  %v1404_v34 = vrot.slane %v1397_v33, 3  ;;  %s3782_s4 = sld [smem:[#allocation3 + $0x65]] }
 0x15a   : > { %v4769_v23 = vpop.permute.xlu1 %863  ;;  %v4771_v10 = vpop.permute.xlu0 %861 }
 0x15b   : > { %6548 = vst [vmem:[#allocation54_spill] sm:$0xff] %v4769_v23  ;;  %6549 = vst [vmem:[#allocation55_spill] sm:$0xff] %v4771_v10  ;;  %v1420_v23 = vmul.f32 %v4603_v40, %v1419_v63 }
 0x15c   : > { %1360 = vrot.lane.b32.xlu1 %v1354_v41, %s4097_s24  ;;  %1358 = vrot.lane.b32.xlu0 %v1355_v30, %s4097_s24  ;;  %v1421_v41 = vmul.f32 %v4616_v51, %v1419_v63  ;;  %v1422_v30 = vmul.f32 %v4613_v48, %v1419_v63  ;;  %v1445_v63 = vmul.f32 %v4603_v40, %v1444_v59 }
 0x15e   : > { %v4778_v22 = vpop.permute.xlu1 %882  ;;  %v4780_v11 = vpop.permute.xlu0 %865 }
 0x15f   : > { %6550 = vst [vmem:[#allocation56_spill] sm:$0xff] %v4778_v22  ;;  %6551 = vst [vmem:[#allocation57_spill] sm:$0xff] %v4780_v11  ;;  %v1426_v11 = vrot.slane %v1420_v23, 3  ;;  %v1405_v22 = vsel %vm556_vm3, %v1402_v2, %v1404_v34  ;;  %v1452_v23 = vrot.slane %v1446_v60, 3  ;;  %v1447_v2 = vmul.f32 %v4613_v48, %v1444_v59 }
 0x160   : > { %1383 = vrot.lane.b32.xlu1 %v1380_v0, %s4100_s23  ;;  %1381 = vrot.lane.b32.xlu0 %v1378_v12, %s4100_s23  ;;  %v1427_v0 = vrot.slane %v1421_v41, 3  ;;  %v1429_v12 = vrot.slane %v1422_v30, 3  ;;  %v1451_v41 = vrot.slane %v1445_v63, 3  ;;  %v1469_v30 = vstv %s3775_s11  ;;  %s3784_s11 = sld [smem:[#allocation3 + $0x6d]] }
 0x162   : > { %v4788_v20 = vpop.permute.xlu1 %886  ;;  %v4790_v19 = vpop.permute.xlu0 %884 }
 0x163   : > { %6552 = vst [vmem:[#allocation58_spill] sm:$0xff] %v4788_v20  ;;  %6553 = vst [vmem:[#allocation59_spill] sm:$0xff] %v4790_v19 }
 0x164   : > { %1406 = vrot.lane.b32.xlu1 %v1403_v54, %s4099_s10  ;;  %1385 = vrot.lane.b32.xlu0 %v1379_v43, %s4100_s23  ;;  %v1430_v54 = vsel %vm556_vm3, %v1427_v0, %v1429_v12  ;;  %v1428_v43 = vsel %vm556_vm3, %v1426_v11, %v1427_v0  ;;  %v1453_v11 = vsel %vm556_vm3, %v1451_v41, %v1452_v23  ;;  %v1454_v0 = vrot.slane %v1447_v2, 3 }
 0x166   : > { %v4797_v33 = vpop.permute.xlu1 %905  ;;  %v4799_v10 = vpop.permute.xlu0 %903 }
 0x167   : > { %6554 = vst [vmem:[#allocation60_spill] sm:$0xff] %v4797_v33  ;;  %6555 = vst [vmem:[#allocation61_spill] sm:$0xff] %v4799_v10  ;;  %v1494_v33 = vstv %s3776_s13  ;;  %v1544_v10 = vstv %s3778_s27  ;;  %s3785_s13 = sld [smem:[#allocation3 + $0x71]] }
 0x168   : > { %1410 = vrot.lane.b32.xlu1 %v1404_v34, %s4099_s10  ;;  %1408 = vrot.lane.b32.xlu0 %v1405_v22, %s4099_s10  ;;  %v1470_v22 = vmul.f32 %v4603_v40, %v1469_v30  ;;  %v1471_v34 = vmul.f32 %v4616_v51, %v1469_v30  ;;  %s3787_s27 = sld [smem:[#allocation3 + $0x79]] }
 0x16a   : > { %v4806_v19 = vpop.permute.xlu1 %928  ;;  %v4808_v20 = vpop.permute.xlu0 %907  ;;  %v1476_v60 = vrot.slane %v1470_v22, 6 }
 0x16b   : > { %6556 = vst [vmem:[#allocation62_spill] sm:$0xff] %v4806_v19  ;;  %6557 = vst [vmem:[#allocation63_spill] sm:$0xff] %v4808_v20  ;;  %v1472_v20 = vmul.f32 %v4613_v48, %v1469_v30 }
 0x16c   : > { %1433 = vrot.lane.b32.xlu1 %v1430_v54, %s4097_s24  ;;  %1431 = vrot.lane.b32.xlu0 %v1428_v43, %s4097_s24  ;;  %v1477_v54 = vrot.slane %v1471_v34, 6  ;;  %v1455_v43 = vsel %vm556_vm3, %v1452_v23, %v1454_v0  ;;  %v1496_v34 = vmul.f32 %v4616_v51, %v1494_v33  ;;  %v1497_v23 = vmul.f32 %v4613_v48, %v1494_v33 }
 0x16d   : > { %v1479_v22 = vrot.slane %v1472_v20, 6 }
 0x16e   : > { %v4815_v63 = vpop.permute.xlu1 %932  ;;  %v4817_v59 = vpop.permute.xlu0 %930  ;;  %v1478_v2 = vsel %vm632_vm4, %v1476_v60, %v1477_v54 }
 0x16f   : > { %6558 = vst [vmem:[#allocation64_spill] sm:$0xff] %v4815_v63  ;;  %6559 = vst [vmem:[#allocation65_spill] sm:$0xff] %v4817_v59  ;;  %v1480_v20 = vsel %vm632_vm4, %v1477_v54, %v1479_v22  ;;  %v1504_v63 = vrot.slane %v1497_v23, 6  ;;  %v1546_v22 = vmul.f32 %v4616_v51, %v1544_v10 }
 0x170   : > { %1456 = vrot.lane.b32.xlu1 %v1453_v11, %s4100_s23  ;;  %1435 = vrot.lane.b32.xlu0 %v1429_v12, %s4097_s24  ;;  %v1495_v12 = vmul.f32 %v4603_v40, %v1494_v33  ;;  %v1519_v11 = vstv %s3777_s28  ;;  %s3786_s28 = sld [smem:[#allocation3 + $0x75]] }
 0x172   : > { %v4823_v19 = vpop.permute.xlu1 %955  ;;  %v4825_v41 = vpop.permute.xlu0 %953 }
 0x173   : > { %6560 = vst [vmem:[#allocation66_spill] sm:$0xff] %v4823_v19  ;;  %6561 = vst [vmem:[#allocation67_spill] sm:$0xff] %v4825_v41  ;;  %v1521_v19 = vmul.f32 %v4616_v51, %v1519_v11  ;;  %v1502_v41 = vrot.slane %v1496_v34, 6  ;;  %v1522_v34 = vmul.f32 %v4613_v48, %v1519_v11 }
 0x174   : > { %1460 = vrot.lane.b32.xlu1 %v1454_v0, %s4100_s23  ;;  %1458 = vrot.lane.b32.xlu0 %v1455_v43, %s4100_s23  ;;  %v1501_v0 = vrot.slane %v1495_v12, 6  ;;  %v1520_v43 = vmul.f32 %v4603_v40, %v1519_v11  ;;  %v1545_v12 = vmul.f32 %v4603_v40, %v1544_v10 }
 0x176   : > { %v4833_v30 = vpop.permute.xlu1 %978  ;;  %v4835_v59 = vpop.permute.xlu0 %957  ;;  %v1503_v54 = vsel %vm632_vm4, %v1501_v0, %v1502_v41 }
 0x177   : > { %6562 = vst [vmem:[#allocation68_spill] sm:$0xff] %v4833_v30  ;;  %6563 = vst [vmem:[#allocation69_spill] sm:$0xff] %v4835_v59  ;;  %v1505_v59 = vsel %vm632_vm4, %v1502_v41, %v1504_v63  ;;  %v1529_v63 = vrot.slane %v1522_v34, 6  ;;  %v1547_v41 = vmul.f32 %v4613_v48, %v1544_v10 }
 0x178   : > { %1483 = vrot.lane.b32.xlu1 %v1478_v2, %s4101_s7  ;;  %1481 = vrot.lane.b32.xlu0 %v1476_v60, %s4101_s7  ;;  %v1526_v60 = vrot.slane %v1520_v43, 6  ;;  %v1527_v2 = vrot.slane %v1521_v19, 6  ;;  %v1551_v43 = vrot.slane %v1545_v12, 1 }
 0x17a   : > { %v4842_v33 = vpop.permute.xlu1 %982  ;;  %v4844_v30 = vpop.permute.xlu0 %980  ;;  %v1528_v19 = vsel %vm632_vm4, %v1526_v60, %v1527_v2  ;;  %v1530_v12 = vsel %vm632_vm4, %v1527_v2, %v1529_v63 }
 0x17b   : > { %6564 = vst [vmem:[#allocation70_spill] sm:$0xff] %v4842_v33  ;;  %6565 = vst [vmem:[#allocation71_spill] sm:$0xff] %v4844_v30 }
 0x17c   : > { %1506 = vrot.lane.b32.xlu1 %v1501_v0, %s4097_s24  ;;  %1485 = vrot.lane.b32.xlu0 %v1480_v20, %s4101_s7  ;;  %v1552_v20 = vrot.slane %v1546_v22, 1  ;;  %v1569_v0 = vstv %s3779_s6  ;;  %v1554_v22 = vrot.slane %v1547_v41, 1  ;;  %s3788_s6 = sld [smem:[#allocation3 + $0x7d]] }
 0x17d   : > { %v1570_v10 = vmul.f32 %v4603_v40, %v1569_v0 }
 0x17e   : > { %v4853_v23 = vpop.permute.xlu1 %1001  ;;  %v4855_v33 = vpop.permute.xlu0 %999 }
 0x17f   : > { %6566 = vst [vmem:[#allocation72_spill] sm:$0xff] %v4853_v23  ;;  %6567 = vst [vmem:[#allocation73_spill] sm:$0xff] %v4855_v33  ;;  %v1553_v23 = vsel %vm265_vm0, %v1551_v43, %v1552_v20  ;;  %v1555_v33 = vsel %vm265_vm0, %v1552_v20, %v1554_v22  ;;  %v1576_v43 = vrot.slane %v1570_v10, 1  ;;  %v1619_v10 = vstv %s3781_s20  ;;  %s3790_s20 = sld [smem:[#allocation3 + $0x85]] }
 0x180   : > { %1510 = vrot.lane.b32.xlu1 %v1505_v59, %s4097_s24  ;;  %1508 = vrot.lane.b32.xlu0 %v1503_v54, %s4097_s24  ;;  %v1571_v59 = vmul.f32 %v4616_v51, %v1569_v0  ;;  %v1572_v54 = vmul.f32 %v4613_v48, %v1569_v0 }
 0x182   : > { %v4861_v30 = vpop.permute.xlu1 %1020  ;;  %v4863_v11 = vpop.permute.xlu0 %1003 }
 0x183   : > { %6568 = vst [vmem:[#allocation74_spill] sm:$0xff] %v4861_v30  ;;  %6569 = vst [vmem:[#allocation75_spill] sm:$0xff] %v4863_v11  ;;  %v1594_v11 = vstv %s3780_s12  ;;  %s3789_s12 = sld [smem:[#allocation3 + $0x81]] }
 0x184   : > { %1533 = vrot.lane.b32.xlu1 %v1528_v19, %s4102_s9  ;;  %1531 = vrot.lane.b32.xlu0 %v1526_v60, %s4102_s9  ;;  %v1577_v60 = vrot.slane %v1571_v59, 1  ;;  %v1579_v19 = vrot.slane %v1572_v54, 1  ;;  %v1595_v2 = vmul.f32 %v4603_v40, %v1594_v11  ;;  %v1596_v63 = vmul.f32 %v4616_v51, %v1594_v11 }
 0x185   : > { %v1597_v59 = vmul.f32 %v4613_v48, %v1594_v11  ;;  %v1622_v11 = vmul.f32 %v4613_v48, %v1619_v10 }
 0x186   : > { %v4872_v34 = vpop.permute.xlu1 %1024  ;;  %v4874_v30 = vpop.permute.xlu0 %1022  ;;  %v1578_v20 = vsel %vm265_vm0, %v1576_v43, %v1577_v60  ;;  %v1601_v54 = vrot.slane %v1595_v2, 1 }
 0x187   : > { %6570 = vst [vmem:[#allocation76_spill] sm:$0xff] %v4872_v34  ;;  %6571 = vst [vmem:[#allocation77_spill] sm:$0xff] %v4874_v30 }
 0x188   : > { %1556 = vrot.lane.b32.xlu1 %v1553_v23, %s4101_s7  ;;  %1535 = vrot.lane.b32.xlu0 %v1530_v12, %s4102_s9  ;;  %v1580_v23 = vsel %vm265_vm0, %v1577_v60, %v1579_v19  ;;  %v1602_v12 = vrot.slane %v1596_v63, 1  ;;  %v1620_v60 = vmul.f32 %v4603_v40, %v1619_v10  ;;  %v1644_v63 = vstv %s3782_s4  ;;  %s3791_s4 = sld [smem:[#allocation3 + $0x89]] }
 0x18a   : > { %v4881_v41 = vpop.permute.xlu1 %1043  ;;  %v4883_v0 = vpop.permute.xlu0 %1041 }
 0x18b   : > { %6572 = vst [vmem:[#allocation78_spill] sm:$0xff] %v4881_v41  ;;  %6573 = vst [vmem:[#allocation79_spill] sm:$0xff] %v4883_v0  ;;  %v1603_v41 = vsel %vm265_vm0, %v1601_v54, %v1602_v12  ;;  %v1645_v54 = vmul.f32 %v4603_v40, %v1644_v63 }
 0x18c   : > { %1560 = vrot.lane.b32.xlu1 %v1554_v22, %s4101_s7  ;;  %1558 = vrot.lane.b32.xlu0 %v1555_v33, %s4101_s7  ;;  %v1604_v22 = vrot.slane %v1597_v59, 1  ;;  %v1621_v33 = vmul.f32 %v4616_v51, %v1619_v10 }
 0x18e   : > { %v4890_v30 = vpop.permute.xlu1 %1073  ;;  %v4892_v34 = vpop.permute.xlu0 %1045  ;;  %v1627_v59 = vrot.slane %v1621_v33, 4  ;;  %v1651_v33 = vrot.slane %v1645_v54, 4 }
 0x18f   : > { %6574 = vst [vmem:[#allocation80_spill] sm:$0xff] %v4890_v30  ;;  %6575 = vst [vmem:[#allocation81_spill] sm:$0xff] %v4892_v34  ;;  %v1626_v30 = vrot.slane %v1620_v60, 4  ;;  %v1646_v34 = vmul.f32 %v4616_v51, %v1644_v63 }
 0x190   : > { %1583 = vrot.lane.b32.xlu1 %v1580_v23, %s4097_s24  ;;  %1581 = vrot.lane.b32.xlu0 %v1578_v20, %s4097_s24  ;;  %v1605_v23 = vsel %vm265_vm0, %v1602_v12, %v1604_v22  ;;  %v1629_v20 = vrot.slane %v1622_v11, 4 }
 0x191   : > { %v1628_v12 = vsel %vm783_vm5, %v1626_v30, %v1627_v59  ;;  %v1652_v11 = vrot.slane %v1646_v34, 4 }
 0x192   : > { %v4900_v43 = vpop.permute.xlu1 %1077  ;;  %v4902_v2 = vpop.permute.xlu0 %1075 }
 0x193   : > { %6576 = vst [vmem:[#allocation82_spill] sm:$0xff] %v4900_v43  ;;  %6577 = vst [vmem:[#allocation83_spill] sm:$0xff] %v4902_v2 }
 0x194   : > { %1606 = vrot.lane.b32.xlu1 %v1603_v41, %s4102_s9  ;;  %1585 = vrot.lane.b32.xlu0 %v1579_v19, %s4097_s24  ;;  %v1647_v41 = vmul.f32 %v4613_v48, %v1644_v63  ;;  %v1630_v19 = vsel %vm783_vm5, %v1627_v59, %v1629_v20 }
 0x196   : > { %v4909_v10 = vpop.permute.xlu1 %1095  ;;  %v4911_v43 = vpop.permute.xlu0 %1093 }
 0x197   : > { %6578 = vst [vmem:[#allocation84_spill] sm:$0xff] %v4909_v10  ;;  %6579 = vst [vmem:[#allocation85_spill] sm:$0xff] %v4911_v43  ;;  %v1669_v10 = vstv %s3783_s5  ;;  %s3792_s5 = sld [smem:[#allocation3 + $0x8d]] }
 0x198   : > { %1610 = vrot.lane.b32.xlu1 %v1604_v22, %s4102_s9  ;;  %1608 = vrot.lane.b32.xlu0 %v1605_v23, %s4102_s9  ;;  %v1654_v22 = vrot.slane %v1647_v41, 4  ;;  %v1653_v23 = vsel %vm783_vm5, %v1651_v33, %v1652_v11  ;;  %v1671_v63 = vmul.f32 %v4616_v51, %v1669_v10  ;;  %v1672_v43 = vmul.f32 %v4613_v48, %v1669_v10 }
 0x199   : > { %v1670_v30 = vmul.f32 %v4603_v40, %v1669_v10  ;;  %v1694_v33 = vstv %s3784_s11  ;;  %s3797_s11 = sld [smem:[#allocation3 + $0x6]] }
 0x19a   : > { %v4918_v60 = vpop.permute.xlu1 %1137  ;;  %v4920_v2 = vpop.permute.xlu0 %1097  ;;  %v1655_v54 = vsel %vm783_vm5, %v1652_v11, %v1654_v22  ;;  %v1677_v41 = vrot.slane %v1671_v63, 4  ;;  %v1695_v10 = vmul.f32 %v4603_v40, %v1694_v33  ;;  %v1696_v11 = vmul.f32 %v4616_v51, %v1694_v33 }
 0x19b   : > { %6580 = vst [vmem:[#allocation86_spill] sm:$0xff] %v4918_v60  ;;  %6581 = vst [vmem:[#allocation87_spill] sm:$0xff] %v4920_v2 }
 0x19c   : > { %1633 = vrot.lane.b32.xlu1 %v1630_v19, %s4101_s7  ;;  %1631 = vrot.lane.b32.xlu0 %v1628_v12, %s4101_s7  ;;  %v1679_v19 = vrot.slane %v1672_v43, 4  ;;  %v1676_v12 = vrot.slane %v1670_v30, 4  ;;  %v1715_v30 = vstv %s3785_s13  ;;  %s3798_s13 = sld [smem:[#allocation3 + $0xa]] }
 0x19e   : > { %v4928_v34 = vpop.permute.xlu1 %1141  ;;  %v4930_v59 = vpop.permute.xlu0 %1139 }
 0x19f   : > { %6582 = vst [vmem:[#allocation88_spill] sm:$0xff] %v4928_v34  ;;  %6583 = vst [vmem:[#allocation89_spill] sm:$0xff] %v4930_v59  ;;  %v1782_v59 = vstv %s3788_s6  ;;  %s3803_s6 = sld [smem:[#allocation3 + $0x1e]] }
 0x1a0   : > { %1656 = vrot.lane.b32.xlu1 %v1653_v23, %s4097_s24  ;;  %1635 = vrot.lane.b32.xlu0 %v1629_v20, %s4101_s7  ;;  %v1680_v23 = vsel %vm783_vm5, %v1677_v41, %v1679_v19  ;;  %v1678_v20 = vsel %vm783_vm5, %v1676_v12, %v1677_v41 }
 0x1a2   : > { %v4935_v60 = vpop.permute.xlu1 %1164  ;;  %v4937_v2 = vpop.permute.xlu0 %1162 }
 0x1a3   : > { %6584 = vst [vmem:[#allocation90_spill] sm:$0xff] %v4935_v60  ;;  %6585 = vst [vmem:[#allocation91_spill] sm:$0xff] %v4937_v2  ;;  %v1716_v2 = vmul.f32 %v4603_v40, %v1715_v30  ;;  %v1717_v60 = vmul.f32 %v4616_v51, %v1715_v30 }
 0x1a4   : > { %1660 = vrot.lane.b32.xlu1 %v1654_v22, %s4097_s24  ;;  %1658 = vrot.lane.b32.xlu0 %v1655_v54, %s4097_s24  ;;  %v1699_v22 = vrot.slane %v1695_v10, 5  ;;  %v1700_v54 = vrot.slane %v1696_v11, 5 }
 0x1a6   : > { %v4945_v43 = vpop.permute.xlu1 %1206  ;;  %v4947_v63 = vpop.permute.xlu0 %1166  ;;  %v1701_v33 = vsel %vm857_vm6, %v1699_v22, %v1700_v54 }
 0x1a7   : > { %6586 = vst [vmem:[#allocation92_spill] sm:$0xff] %v4945_v43  ;;  %6587 = vst [vmem:[#allocation93_spill] sm:$0xff] %v4947_v63  ;;  %v1721_v43 = vrot.slane %v1717_v60, 5 }
 0x1a8   : > { %1683 = vrot.lane.b32.xlu1 %v1680_v23, %s4102_s9  ;;  %1681 = vrot.lane.b32.xlu0 %v1678_v20, %s4102_s9  ;;  %v1720_v23 = vrot.slane %v1716_v2, 5  ;;  %v1736_v20 = vstv %s3786_s28  ;;  %s3800_s28 = sld [smem:[#allocation3 + $0x12]] }
 0x1a9   : > { %v1737_v30 = vmul.f32 %v4603_v40, %v1736_v20 }
 0x1aa   : > { %v4953_v41 = vpop.permute.xlu1 %1210  ;;  %v4955_v12 = vpop.permute.xlu0 %1208 }
 0x1ab   : > { %6588 = vst [vmem:[#allocation94_spill] sm:$0xff] %v4953_v41  ;;  %6589 = vst [vmem:[#allocation95_spill] sm:$0xff] %v4955_v12  ;;  %v1738_v41 = vmul.f32 %v4616_v51, %v1736_v20  ;;  %v1757_v12 = vstv %s3787_s27  ;;  %v1741_v60 = vrot.slane %v1737_v30, 5  ;;  %s3801_s27 = sld [smem:[#allocation3 + $0x16]] }
 0x1ac   : > { %1702 = vrot.lane.b32.xlu1 %v1699_v22, %s4103_s21  ;;  %1685 = vrot.lane.b32.xlu0 %v1679_v19, %s4102_s9  ;;  %v1722_v19 = vsel %vm857_vm6, %v1720_v23, %v1721_v43 }
 0x1ae   : > { %v4960_v10 = vpop.permute.xlu1 %1233  ;;  %v4962_v11 = vpop.permute.xlu0 %1231 }
 0x1af   : > { %6590 = vst [vmem:[#allocation96_spill] sm:$0xff] %v4960_v10  ;;  %6591 = vst [vmem:[#allocation97_spill] sm:$0xff] %v4962_v11  ;;  %v1742_v11 = vrot.slane %v1738_v41, 5  ;;  %v1758_v10 = vmul.f32 %v4603_v40, %v1757_v12 }
 0x1b0   : > { %1706 = vrot.lane.b32.xlu1 %v1700_v54, %s4103_s21  ;;  %1704 = vrot.lane.b32.xlu0 %v1701_v33, %s4103_s21  ;;  %v1759_v54 = vmul.f32 %v4616_v51, %v1757_v12  ;;  %v1760_v33 = vmul.f32 %v4613_v48, %v1757_v12 }
 0x1b2   : > { %v4969_v22 = vpop.permute.xlu1 %1256  ;;  %v4971_v2 = vpop.permute.xlu0 %1235  ;;  %v1765_v30 = vrot.slane %v1759_v54, 1  ;;  %v1767_v41 = vrot.slane %v1760_v33, 1 }
 0x1b3   : > { %6592 = vst [vmem:[#allocation98_spill] sm:$0xff] %v4969_v22  ;;  %6593 = vst [vmem:[#allocation99_spill] sm:$0xff] %v4971_v2  ;;  %v1783_v22 = vmul.f32 %v4603_v40, %v1782_v59  ;;  %v1784_v2 = vmul.f32 %v4616_v51, %v1782_v59 }
 0x1b4   : > { %1725 = vrot.lane.b32.xlu1 %v1722_v19, %s4097_s24  ;;  %1723 = vrot.lane.b32.xlu0 %v1720_v23, %s4097_s24  ;;  %v1743_v23 = vsel %vm857_vm6, %v1741_v60, %v1742_v11  ;;  %v1764_v19 = vrot.slane %v1758_v10, 1 }
 0x1b5   : > { %v1789_v54 = vrot.slane %v1783_v22, 1  ;;  %v1790_v10 = vrot.slane %v1784_v2, 1 }
 0x1b6   : > { %v4978_v20 = vpop.permute.xlu1 %1260  ;;  %v4980_v63 = vpop.permute.xlu0 %1258 }
 0x1b7   : > { %6594 = vst [vmem:[#allocation100_spill] sm:$0xff] %v4978_v20  ;;  %6595 = vst [vmem:[#allocation101_spill] sm:$0xff] %v4980_v63  ;;  %v1785_v63 = vmul.f32 %v4613_v48, %v1782_v59 }
 0x1b8   : > { %1744 = vrot.lane.b32.xlu1 %v1741_v60, %s4104_s8  ;;  %1727 = vrot.lane.b32.xlu0 %v1721_v43, %s4097_s24  ;;  %v1768_v43 = vsel %vm265_vm0, %v1765_v30, %v1767_v41  ;;  %v1766_v60 = vsel %vm265_vm0, %v1764_v19, %v1765_v30 }
 0x1ba   : > { %v4987_v12 = vpop.permute.xlu1 %1283  ;;  %v4989_v20 = vpop.permute.xlu0 %1281 }
 0x1bb   : > { %6596 = vst [vmem:[#allocation102_spill] sm:$0xff] %v4987_v12  ;;  %6597 = vst [vmem:[#allocation103_spill] sm:$0xff] %v4989_v20  ;;  %v1807_v12 = vstv %s3789_s12  ;;  %s3804_s12 = sld [smem:[#allocation3 + $0x22]] }
 0x1bc   : > { %1748 = vrot.lane.b32.xlu1 %v1742_v11, %s4104_s8  ;;  %1746 = vrot.lane.b32.xlu0 %v1743_v23, %s4104_s8  ;;  %v1792_v11 = vrot.slane %v1785_v63, 1  ;;  %v1791_v23 = vsel %vm265_vm0, %v1789_v54, %v1790_v10  ;;  %v1809_v59 = vmul.f32 %v4616_v51, %v1807_v12  ;;  %v1810_v20 = vmul.f32 %v4613_v48, %v1807_v12 }
 0x1bd   : > { %v1808_v22 = vmul.f32 %v4603_v40, %v1807_v12  ;;  %v1832_v54 = vstv %s3790_s20  ;;  %s3805_s20 = sld [smem:[#allocation3 + $0x26]] }
 0x1be   : > { %v4996_v33 = vpop.permute.xlu1 %1306  ;;  %v4998_v34 = vpop.permute.xlu0 %1285  ;;  %v1793_v19 = vsel %vm265_vm0, %v1790_v10, %v1792_v11  ;;  %v1815_v63 = vrot.slane %v1809_v59, 1  ;;  %v1833_v40 = vmul.f32 %v4616_v51, %v1832_v54  ;;  %v1834_v10 = vmul.f32 %v4613_v48, %v1832_v54 }
 0x1bf   : > { %6598 = vst [vmem:[#allocation104_spill] sm:$0xff] %v4996_v33  ;;  %6599 = vst [vmem:[#allocation105_spill] sm:$0xff] %v4998_v34  ;;  %v1853_v59 = vstv %s3791_s4  ;;  %s3806_s4 = sld [smem:[#allocation3 + $0x2a]] }
 0x1c0   : > { %1771 = vrot.lane.b32.xlu1 %v1768_v43, %s4103_s21  ;;  %1769 = vrot.lane.b32.xlu0 %v1766_v60, %s4103_s21  ;;  %v1817_v43 = vrot.slane %v1810_v20, 1  ;;  %v1814_v60 = vrot.slane %v1808_v22, 1  ;;  %v1838_v22 = vrot.slane %v1834_v10, 5 }
 0x1c2   : > { %v5006_v2 = vpop.permute.xlu1 %1310  ;;  %v5008_v30 = vpop.permute.xlu0 %1308  ;;  %v1818_v12 = vsel %vm265_vm0, %v1815_v63, %v1817_v43 }
 0x1c3   : > { %6600 = vst [vmem:[#allocation106_spill] sm:$0xff] %v5006_v2  ;;  %6601 = vst [vmem:[#allocation107_spill] sm:$0xff] %v5008_v30 }
 0x1c4   : > { %1794 = vrot.lane.b32.xlu1 %v1791_v23, %s4097_s24  ;;  %1773 = vrot.lane.b32.xlu0 %v1767_v41, %s4103_s21  ;;  %v1816_v41 = vsel %vm265_vm0, %v1814_v60, %v1815_v63 }
 0x1c6   : > { %v5013_v33 = vpop.permute.xlu1 %1333  ;;  %v5015_v34 = vpop.permute.xlu0 %1331 }
 0x1c7   : > { %6602 = vst [vmem:[#allocation108_spill] sm:$0xff] %v5013_v33  ;;  %6603 = vst [vmem:[#allocation109_spill] sm:$0xff] %v5015_v34  ;;  %v1855_v34 = vmul.f32 %v4613_v48, %v1853_v59 }
 0x1c8   : > { %1798 = vrot.lane.b32.xlu1 %v1792_v11, %s4097_s24  ;;  %1796 = vrot.lane.b32.xlu0 %v1793_v19, %s4097_s24  ;;  %v1837_v11 = vrot.slane %v1833_v40, 5  ;;  %v1854_v19 = vmul.f32 %v4616_v51, %v1853_v59 }
 0x1ca   : > { %v5023_v20 = vpop.permute.xlu1 %1356  ;;  %v5025_v23 = vpop.permute.xlu0 %1335  ;;  %v1839_v60 = vsel %vm857_vm6, %v1837_v11, %v1838_v22  ;;  %v1858_v54 = vrot.slane %v1854_v19, 5 }
 0x1cb   : > { %6604 = vst [vmem:[#allocation110_spill] sm:$0xff] %v5023_v20  ;;  %6605 = vst [vmem:[#allocation111_spill] sm:$0xff] %v5025_v23  ;;  %v1874_v20 = vstv %s3792_s5  ;;  %s3807_s5 = sld [smem:[#allocation3 + $0x2e]] }
 0x1cc   : > { %1821 = vrot.lane.b32.xlu1 %v1818_v12, %s4104_s8  ;;  %1819 = vrot.lane.b32.xlu0 %v1816_v41, %s4104_s8  ;;  %v1859_v12 = vrot.slane %v1855_v34, 5  ;;  %v1875_v10 = vmul.f32 %v4616_v51, %v1874_v20 }
 0x1ce   : > { %v5031_v33 = vpop.permute.xlu1 %1360  ;;  %v5033_v63 = vpop.permute.xlu0 %1358  ;;  %v1860_v59 = vsel %vm857_vm6, %v1858_v54, %v1859_v12 }
 0x1cf   : > { %6606 = vst [vmem:[#allocation112_spill] sm:$0xff] %v5031_v33  ;;  %6607 = vst [vmem:[#allocation113_spill] sm:$0xff] %v5033_v63 }
 0x1d0   : > { %1840 = vrot.lane.b32.xlu1 %v1837_v11, %s4103_s21  ;;  %1823 = vrot.lane.b32.xlu0 %v1817_v43, %s4104_s8  ;;  %v1876_v43 = vmul.f32 %v4613_v48, %v1874_v20  ;;  %v5061_v20 = vld [vmem:[%s4266_s29 + $0x38] sm:$0xff] }
 0x1d2   : > { %v5038_v41 = vpop.permute.xlu1 %1383  ;;  %v5040_v40 = vpop.permute.xlu0 %1381  ;;  %v1880_v19 = vrot.slane %v1876_v43, 5 }
 0x1d3   : > { %6608 = vst [vmem:[#allocation114_spill] sm:$0xff] %v5038_v41  ;;  %6609 = vst [vmem:[#allocation115_spill] sm:$0xff] %v5040_v40 }
 0x1d4   : > { %1844 = vrot.lane.b32.xlu1 %v1838_v22, %s4103_s21  ;;  %1842 = vrot.lane.b32.xlu0 %v1839_v60, %s4103_s21  ;;  %v1879_v22 = vrot.slane %v1875_v10, 5 }
 0x1d6   : > { %v5047_v11 = vpop.permute.xlu1 %1406  ;;  %v5049_v34 = vpop.permute.xlu0 %1385  ;;  %v1881_v48 = vsel %vm857_vm6, %v1879_v22, %v1880_v19 }
 0x1d7   : > { %6610 = vst [vmem:[#allocation116_spill] sm:$0xff] %v5047_v11  ;;  %6611 = vst [vmem:[#allocation117_spill] sm:$0xff] %v5049_v34  ;;  %v5064_v11 = vld [vmem:[%s4266_s29 + $0x30] sm:$0xff] }
 0x1d8   : > { %1863 = vrot.lane.b32.xlu1 %v1860_v59, %s4097_s24  ;;  %1861 = vrot.lane.b32.xlu0 %v1858_v54, %s4097_s24  ;;  %v1907_v59 = vstv %s3797_s11  ;;  %s3808_s11 = sld [smem:[#allocation3 + $0x32]] }
 0x1d9   : > { %v1909_v43 = vmul.f32 %v5061_v20, %v1907_v59 }
 0x1da   : > { %v5053_v51 = vpop.permute.xlu1 %1410  ;;  %v5055_v60 = vpop.permute.xlu0 %1408 }
 0x1db   : > { %6612 = vst [vmem:[#allocation118_spill] sm:$0xff] %v5053_v51  ;;  %6613 = vst [vmem:[#allocation119_spill] sm:$0xff] %v5055_v60  ;;  %v1927_v51 = vstv %s3798_s13  ;;  %v1966_v60 = vstv %s3800_s28  ;;  %s209_s13 = sld [smem:[#allocation3]]  ;;  %s3721_s28 = sld [smem:[#allocation3 + $0xc]] }
 0x1dc   : > { %1882 = vrot.lane.b32.xlu1 %v1879_v22, %s4104_s8  ;;  %1865 = vrot.lane.b32.xlu0 %v1859_v12, %s4097_s24  ;;  %v1908_v12 = vmul.f32 %v5064_v11, %v1907_v59  ;;  %v5075_v22 = vld [vmem:[%s4266_s29 + $0x40] sm:$0xff]  ;;  %v1967_v41 = vmul.f32 %v5064_v11, %v1966_v60 }
 0x1dd   : > { %v1930_v63 = vmul.f32 %v5075_v22, %v1927_v51 }
 0x1de   : > { %v5066_v54 = vpop.permute.xlu1 %1433  ;;  %v5068_v10 = vpop.permute.xlu0 %1431  ;;  %v1973_v23 = vrot.slane %v1967_v41, 1 }
 0x1df   : > { %6614 = vst [vmem:[#allocation120_spill] sm:$0xff] %v5066_v54  ;;  %6615 = vst [vmem:[#allocation121_spill] sm:$0xff] %v5068_v10  ;;  %v1928_v54 = vmul.f32 %v5064_v11, %v1927_v51  ;;  %v1910_v10 = vmul.f32 %v5075_v22, %v1907_v59  ;;  %v1929_v59 = vmul.f32 %v5061_v20, %v1927_v51 }
 0x1e0   : > { %1886 = vrot.lane.b32.xlu1 %v1880_v19, %s4104_s8  ;;  %1884 = vrot.lane.b32.xlu0 %v1881_v48, %s4104_s8  ;;  %v1968_v19 = vmul.f32 %v5061_v20, %v1966_v60  ;;  %v1969_v48 = vmul.f32 %v5075_v22, %v1966_v60 }
 0x1e2   : > { %v5077_v34 = vpop.permute.xlu1 %1456  ;;  %v5079_v40 = vpop.permute.xlu0 %1435 }
 0x1e3   : > { %6616 = vst [vmem:[#allocation122_spill] sm:$0xff] %v5077_v34  ;;  %6617 = vst [vmem:[#allocation123_spill] sm:$0xff] %v5079_v40  ;;  %v1991_v40 = vstv %s3801_s27  ;;  %s3809_s27 = sld [smem:[#allocation3 + $0x36]] }
 0x1e4   : > { %1916 = vrot.lane.b32.xlu1 %v1909_v43, %s4097_s24  ;;  %1914 = vrot.lane.b32.xlu0 %v1908_v12, %s4097_s24  ;;  %v1974_v43 = vrot.slane %v1968_v19, 1  ;;  %v1976_v12 = vrot.slane %v1969_v48, 1  ;;  %v1992_v2 = vmul.f32 %v5064_v11, %v1991_v40  ;;  %v1993_v60 = vmul.f32 %v5061_v20, %v1991_v40 }
 0x1e5   : > { %v1994_v41 = vmul.f32 %v5075_v22, %v1991_v40  ;;  %v2035_v48 = vstv %s3803_s6  ;;  %s5175_s6 = sld [smem:[#allocation2]] }
 0x1e6   : > { %v5088_v33 = vpop.permute.xlu1 %1460  ;;  %v5090_v34 = vpop.permute.xlu0 %1458  ;;  %v1975_v51 = vsel %vm265_vm0, %v1973_v23, %v1974_v43  ;;  %v1999_v19 = vrot.slane %v1993_v60, 1  ;;  %v2060_v60 = vstv %s3804_s12  ;;  %s5188_s12 = sld [smem:[#allocation3 + $0x3a]] }
 0x1e7   : > { %6618 = vst [vmem:[#allocation124_spill] sm:$0xff] %v5088_v33  ;;  %6619 = vst [vmem:[#allocation125_spill] sm:$0xff] %v5090_v34  ;;  %v2001_v23 = vrot.slane %v1994_v41, 1 }
 0x1e8   : > { %1934 = vrot.lane.b32.xlu1 %v1928_v54, %s4098_s30  ;;  %1918 = vrot.lane.b32.xlu0 %v1910_v10, %s4097_s24  ;;  %v1977_v54 = vsel %vm265_vm0, %v1974_v43, %v1976_v12  ;;  %v1998_v10 = vrot.slane %v1992_v2, 1 }
 0x1ea   : > { %v5098_v30 = vpop.permute.xlu1 %1483  ;;  %v5100_v33 = vpop.permute.xlu0 %1481  ;;  %v2000_v2 = vsel %vm265_vm0, %v1998_v10, %v1999_v19  ;;  %v2062_v10 = vmul.f32 %v5061_v20, %v2060_v60 }
 0x1eb   : > { %6620 = vst [vmem:[#allocation126_spill] sm:$0xff] %v5098_v30  ;;  %6621 = vst [vmem:[#allocation127_spill] sm:$0xff] %v5100_v33  ;;  %v2036_v33 = vmul.f32 %v5064_v11, %v2035_v48 }
 0x1ec   : > { %1938 = vrot.lane.b32.xlu1 %v1930_v63, %s4098_s30  ;;  %1936 = vrot.lane.b32.xlu0 %v1929_v59, %s4098_s30  ;;  %v2037_v63 = vmul.f32 %v5061_v20, %v2035_v48  ;;  %v2038_v59 = vmul.f32 %v5075_v22, %v2035_v48  ;;  %v2061_v48 = vmul.f32 %v5064_v11, %v2060_v60 }
 0x1ee   : > { %v5107_v34 = vpop.permute.xlu1 %1506  ;;  %v5109_v0 = vpop.permute.xlu0 %1485 }
 0x1ef   : > { %6622 = vst [vmem:[#allocation128_spill] sm:$0xff] %v5107_v34  ;;  %6623 = vst [vmem:[#allocation129_spill] sm:$0xff] %v5109_v0  ;;  %v2042_v34 = vrot.slane %v2036_v33, 2  ;;  %v2002_v0 = vsel %vm265_vm0, %v1999_v19, %v2001_v23  ;;  %v2068_v33 = vrot.slane %v2062_v10, 2  ;;  %v2063_v19 = vmul.f32 %v5075_v22, %v2060_v60 }
 0x1f0   : > { %1980 = vrot.lane.b32.xlu1 %v1977_v54, %s4097_s24  ;;  %1978 = vrot.lane.b32.xlu0 %v1975_v51, %s4097_s24  ;;  %v2043_v54 = vrot.slane %v2037_v63, 2  ;;  %v2045_v51 = vrot.slane %v2038_v59, 2  ;;  %v2067_v63 = vrot.slane %v2061_v48, 2  ;;  %v2085_v59 = vstv %s3805_s20  ;;  %s5207_s20 = sld [smem:[#allocation3 + $0x18]] }
 0x1f2   : > { %v5117_v40 = vpop.permute.xlu1 %1510  ;;  %v5119_v43 = vpop.permute.xlu0 %1508 }
 0x1f3   : > { %6624 = vst [vmem:[#allocation130_spill] sm:$0xff] %v5117_v40  ;;  %6625 = vst [vmem:[#allocation131_spill] sm:$0xff] %v5119_v43 }
 0x1f4   : > { %2003 = vrot.lane.b32.xlu1 %v2000_v2, %s4098_s30  ;;  %1982 = vrot.lane.b32.xlu0 %v1976_v12, %s4097_s24  ;;  %v2046_v2 = vsel %vm335_vm1, %v2043_v54, %v2045_v51  ;;  %v2044_v12 = vsel %vm335_vm1, %v2042_v34, %v2043_v54  ;;  %v2069_v34 = vsel %vm335_vm1, %v2067_v63, %v2068_v33  ;;  %v2070_v54 = vrot.slane %v2063_v19, 2 }
 0x1f6   : > { %v5126_v41 = vpop.permute.xlu1 %1533  ;;  %v5128_v30 = vpop.permute.xlu0 %1531 }
 0x1f7   : > { %6626 = vst [vmem:[#allocation132_spill] sm:$0xff] %v5126_v41  ;;  %6627 = vst [vmem:[#allocation133_spill] sm:$0xff] %v5128_v30  ;;  %v2185_v41 = vstv %s3809_s27  ;;  %s3816_s27 = sld [smem:[#allocation3 + $0x52]] }
 0x1f8   : > { %2007 = vrot.lane.b32.xlu1 %v2001_v23, %s4098_s30  ;;  %2005 = vrot.lane.b32.xlu0 %v2002_v0, %s4098_s30  ;;  %v2086_v0 = vmul.f32 %v5064_v11, %v2085_v59  ;;  %v2087_v23 = vmul.f32 %v5061_v20, %v2085_v59 }
 0x1fa   : > { %v5135_v40 = vpop.permute.xlu1 %1556  ;;  %v5137_v43 = vpop.permute.xlu0 %1535  ;;  %v2092_v10 = vrot.slane %v2086_v0, 7 }
 0x1fb   : > { %6628 = vst [vmem:[#allocation134_spill] sm:$0xff] %v5135_v40  ;;  %6629 = vst [vmem:[#allocation135_spill] sm:$0xff] %v5137_v43  ;;  %v2110_v40 = vstv %s3806_s4  ;;  %v2088_v43 = vmul.f32 %v5075_v22, %v2085_v59  ;;  %s5219_s4 = sld [smem:[#allocation3 + $0x3e]] }
 0x1fc   : > { %2049 = vrot.lane.b32.xlu1 %v2046_v2, %s4097_s24  ;;  %2047 = vrot.lane.b32.xlu0 %v2044_v12, %s4097_s24  ;;  %v2093_v2 = vrot.slane %v2087_v23, 7  ;;  %v2071_v12 = vsel %vm335_vm1, %v2068_v33, %v2070_v54  ;;  %v2112_v23 = vmul.f32 %v5061_v20, %v2110_v40  ;;  %v2113_v33 = vmul.f32 %v5075_v22, %v2110_v40 }
 0x1fd   : > { %v2095_v0 = vrot.slane %v2088_v43, 7 }
 0x1fe   : > { %v5144_v48 = vpop.permute.xlu1 %1560  ;;  %v5146_v60 = vpop.permute.xlu0 %1558  ;;  %v2094_v19 = vsel %vm405_vm2, %v2092_v10, %v2093_v2 }
 0x1ff   : > { %6630 = vst [vmem:[#allocation136_spill] sm:$0xff] %v5144_v48  ;;  %6631 = vst [vmem:[#allocation137_spill] sm:$0xff] %v5146_v60  ;;  %v2160_v48 = vstv %s3808_s11  ;;  %s5266_s11 = sld [smem:[#allocation3 + $0x46]] }
 0x200   : > { %2072 = vrot.lane.b32.xlu1 %v2069_v34, %s4098_s30  ;;  %2051 = vrot.lane.b32.xlu0 %v2045_v51, %s4097_s24  ;;  %v2111_v51 = vmul.f32 %v5064_v11, %v2110_v40  ;;  %v2135_v34 = vstv %s3807_s5  ;;  %v2120_v40 = vrot.slane %v2113_v33, 7  ;;  %s5238_s5 = sld [smem:[#allocation3 + $0x42]] }
 0x201   : > { %v2137_v43 = vmul.f32 %v5061_v20, %v2135_v34  ;;  %v2138_v33 = vmul.f32 %v5075_v22, %v2135_v34 }
 0x202   : > { %v5152_v30 = vpop.permute.xlu1 %1583  ;;  %v5154_v63 = vpop.permute.xlu0 %1581 }
 0x203   : > { %6632 = vst [vmem:[#allocation138_spill] sm:$0xff] %v5152_v30  ;;  %6633 = vst [vmem:[#allocation139_spill] sm:$0xff] %v5154_v63  ;;  %v2096_v30 = vsel %vm405_vm2, %v2093_v2, %v2095_v0  ;;  %v2118_v63 = vrot.slane %v2112_v23, 7  ;;  %v2162_v23 = vmul.f32 %v5061_v20, %v2160_v48 }
 0x204   : > { %2076 = vrot.lane.b32.xlu1 %v2070_v54, %s4098_s30  ;;  %2074 = vrot.lane.b32.xlu0 %v2071_v12, %s4098_s30  ;;  %v2117_v54 = vrot.slane %v2111_v51, 7  ;;  %v2136_v12 = vmul.f32 %v5064_v11, %v2135_v34  ;;  %v2161_v51 = vmul.f32 %v5064_v11, %v2160_v48 }
 0x205   : > { %v2121_v2 = vsel %vm405_vm2, %v2118_v63, %v2120_v40 }
 0x206   : > { %v5162_v59 = vpop.permute.xlu1 %1606  ;;  %v5164_v60 = vpop.permute.xlu0 %1585  ;;  %v2119_v0 = vsel %vm405_vm2, %v2117_v54, %v2118_v63  ;;  %v2167_v34 = vrot.slane %v2161_v51, 1  ;;  %v205_v51 = vstv %s5175_s6  ;;  %s3817_s6 = sld [smem:[#allocation3 + $0x56]] }
 0x207   : > { %6634 = vst [vmem:[#allocation140_spill] sm:$0xff] %v5162_v59  ;;  %6635 = vst [vmem:[#allocation141_spill] sm:$0xff] %v5164_v60 }
 0x208   : > { %2099 = vrot.lane.b32.xlu1 %v2094_v19, %s4099_s10  ;;  %2097 = vrot.lane.b32.xlu0 %v2092_v10, %s4099_s10  ;;  %v2142_v10 = vrot.slane %v2136_v12, 7  ;;  %v2143_v19 = vrot.slane %v2137_v43, 7  ;;  %v258_v12 = vstv %s3721_s28  ;;  %v5191_v43 = vld [vmem:[%s4266_s29 + $0x8] sm:$0xff]  ;;  %s3815_s28 = sld [smem:[#allocation3 + $0x4e]] }
 0x209   : > { %v260_v42 = vmul.f32 %v5191_v43, %v258_v12  ;;  %v259_v29 = vmul.f32 %v3965_v52, %v258_v12 }
 0x20a   : > { %v5171_v59 = vpop.permute.xlu1 %1610  ;;  %v5173_v60 = vpop.permute.xlu0 %1608  ;;  %v2144_v63 = vsel %vm405_vm2, %v2142_v10, %v2143_v19 }
 0x20b   : > { %6636 = vst [vmem:[#allocation142_spill] sm:$0xff] %v5171_v59  ;;  %6637 = vst [vmem:[#allocation143_spill] sm:$0xff] %v5173_v60  ;;  %v267_v7 = vrot.slane %v260_v42, 1 }
 0x20c   : > { %2122 = vrot.lane.b32.xlu1 %v2117_v54, %s4097_s24  ;;  %2101 = vrot.lane.b32.xlu0 %v2096_v30, %s4099_s10  ;;  %v210_v30 = vstv %s209_s13  ;;  %v2168_v54 = vrot.slane %v2162_v23, 1  ;;  %v2186_v23 = vmul.f32 %v5064_v11, %v2185_v41  ;;  %s3814_s13 = sld [smem:[#allocation3 + $0x4a]] }
 0x20d   : > { %v212_v40 = vmul.f32 %v5191_v43, %v210_v30  ;;  %v211_v1 = vmul.f32 %v3965_v52, %v210_v30 }
 0x20e   : > { %v5184_v59 = vpop.permute.xlu1 %1633  ;;  %v5186_v60 = vpop.permute.xlu0 %1631 }
 0x20f   : > { %6638 = vst [vmem:[#allocation144_spill] sm:$0xff] %v5184_v59  ;;  %6639 = vst [vmem:[#allocation145_spill] sm:$0xff] %v5186_v60  ;;  %v2145_v59 = vrot.slane %v2138_v33, 7  ;;  %v2163_v60 = vmul.f32 %v5075_v22, %v2160_v48  ;;  %v2187_v48 = vmul.f32 %v5061_v20, %v2185_v41  ;;  %v215_v33 = vadd.f32 %v212_v40, %v205_v51 }
 0x210   : > { %2126 = vrot.lane.b32.xlu1 %v2121_v2, %s4097_s24  ;;  %2124 = vrot.lane.b32.xlu0 %v2119_v0, %s4097_s24  ;;  %v3966_v2 = vld [vmem:[%s4266_s29 + $0x10] sm:$0xff]  ;;  %v5214_v0 = vmul.f32 %v5075_v22, %v2185_v41  ;;  %v214_v4 = vadd.f32 %v211_v1, %v205_v51 }
 0x211   : > { %v5205_v3 = vmul.f32 %v3966_v2, %v258_v12  ;;  %v2170_v35 = vrot.slane %v2163_v60, 1  ;;  %v213_v17 = vmul.f32 %v3966_v2, %v210_v30  ;;  %v2193_v41 = vrot.slane %v2187_v48, 1 }
 0x212   : > { %v5198_v21 = vpop.permute.xlu1 %1656  ;;  %v5200_v53 = vpop.permute.xlu0 %1635  ;;  %v2195_v60 = vrot.slane %v5214_v0, 1  ;;  %v266_v30 = vrot.slane %v259_v29, 1  ;;  %v234_v48 = vadd.f32 %v4442_v62, %v214_v4 }
 0x213   : > { %6640 = vst [vmem:[#allocation146_spill] sm:$0xff] %v5198_v21  ;;  %6641 = vst [vmem:[#allocation147_spill] sm:$0xff] %v5200_v53  ;;  %v2169_v53 = vsel %vm265_vm0, %v2167_v34, %v2168_v54  ;;  %v2146_v21 = vsel %vm405_vm2, %v2143_v19, %v2145_v59  ;;  %v6495_v18 = vrot.slane %v5205_v3, 1  ;;  %v2192_v59 = vrot.slane %v2186_v23, 1 }
 0x214   : > { %2149 = vrot.lane.b32.xlu1 %v2144_v63, %s4100_s23  ;;  %2147 = vrot.lane.b32.xlu0 %v2142_v10, %s4100_s23  ;;  %v2210_v10 = vstv %s5188_s12  ;;  %v235_v19 = vadd.f32 %v4451_v9, %v215_v33  ;;  %v2171_v12 = vsel %vm265_vm0, %v2168_v54, %v2170_v35  ;;  %v328_v54 = vstv %s5207_s20  ;;  %s5369_s12 = sld [smem:[#allocation3 + $0x5a]]  ;;  %s5394_s20 = sld [smem:[#allocation3 + $0x5e]] }
 0x215   : > { %v2211_v40 = vmul.f32 %v5064_v11, %v2210_v10  ;;  %v2212_v1 = vmul.f32 %v5061_v20, %v2210_v10  ;;  %v270_v34 = vsel %vm265_vm0, %v267_v7, %v6495_v18  ;;  %v2196_v29 = vsel %vm265_vm0, %v2193_v41, %v2195_v60 }
 0x216   : > { %v5221_v28 = vpop.permute.xlu1 %1660  ;;  %v5223_v63 = vpop.permute.xlu0 %1658  ;;  %v255_v9 = vadd.f32 %v4461_v16, %v235_v19  ;;  %v2194_v0 = vsel %vm265_vm0, %v2192_v59, %v2193_v41  ;;  %v268_v18 = vsel %vm265_vm0, %v266_v30, %v267_v7  ;;  %v330_v16 = vmul.f32 %v5191_v43, %v328_v54 }
 0x217   : > { %v2217_v23 = vrot.slane %v2211_v40, 1  ;;  %v2218_v33 = vrot.slane %v2212_v1, 1  ;;  %v331_v59 = vmul.f32 %v3966_v2, %v328_v54  ;;  %v2260_v40 = vstv %s5238_s5  ;;  %s5440_s5 = sld [smem:[#allocation3 + $0x66]] }
 0x218   : > { %2172 = vrot.lane.b32.xlu1 %v2169_v53, %s4099_s10  ;;  %2151 = vrot.lane.b32.xlu0 %v2146_v21, %s4100_s23  ;;  %v216_v21 = vadd.f32 %v213_v17, %v205_v51  ;;  %v2213_v17 = vmul.f32 %v5075_v22, %v2210_v10  ;;  %v2235_v51 = vstv %s5219_s4  ;;  %v275_v41 = vadd.f32 %v270_v34, %v255_v9  ;;  %s3820_s4 = sld [smem:[#allocation3 + $0x62]] }
 0x219   : > { %v2237_v7 = vmul.f32 %v5061_v20, %v2235_v51  ;;  %v2236_v43 = vmul.f32 %v5064_v11, %v2235_v51  ;;  %v2219_v10 = vsel %vm265_vm0, %v2217_v23, %v2218_v33  ;;  %v339_v34 = vrot.slane %v331_v59, 2 }
 0x21a   : > { %v5234_v42 = vpop.permute.xlu1 %1683  ;;  %v5236_v53 = vpop.permute.xlu0 %1681  ;;  %v236_v4 = vadd.f32 %v4440_v61, %v216_v21  ;;  %v337_v21 = vrot.slane %v330_v16, 2  ;;  %v300_v9 = vadd.f32 %v4468_v24, %v275_v41  ;;  %v2261_v23 = vmul.f32 %v5064_v11, %v2260_v40 }
 0x21b   : > { %6642 = vst [vmem:[#allocation148_spill] sm:$0xff] %v5236_v53  ;;  %v329_v53 = vmul.f32 %v3965_v52, %v328_v54  ;;  %v2238_v52 = vmul.f32 %v5075_v22, %v2235_v51  ;;  %v2243_v54 = vrot.slane %v2237_v7, 3  ;;  %v2263_v59 = vmul.f32 %v5075_v22, %v2260_v40 }
 0x21c   : > { %2176 = vrot.lane.b32.xlu1 %v2170_v35, %s4099_s10  ;;  %2174 = vrot.lane.b32.xlu0 %v2171_v12, %s4099_s10  ;;  %v254_v35 = vadd.f32 %v4449_v8, %v234_v48  ;;  %v2220_v12 = vrot.slane %v2213_v17, 1  ;;  %v256_v61 = vadd.f32 %v4459_v15, %v236_v4  ;;  %v325_v24 = vadd.f32 %v4488_v39, %v300_v9 }
 0x21d   : > { %v336_v30 = vrot.slane %v329_v53, 2  ;;  %v2245_v48 = vrot.slane %v2238_v52, 3  ;;  %v6643_v53 = vrot.slane %v5205_v3, 1  ;;  %v2285_v7 = vstv %s5266_s11  ;;  %s3822_s11 = sld [smem:[#allocation3 + $0x6a]] }
 0x21e   : > { %v5254_v19 = vpop.permute.xlu1 %1702  ;;  %v5256_v62 = vpop.permute.xlu0 %1685  ;;  %v274_v1 = vadd.f32 %v268_v18, %v254_v35  ;;  %v2262_v18 = vmul.f32 %v5061_v20, %v2260_v40  ;;  %v2267_v35 = vrot.slane %v2261_v23, 3 }
 0x21f   : > { %v276_v17 = vadd.f32 %v6643_v53, %v256_v61  ;;  %v338_v16 = vsel %vm335_vm1, %v336_v30, %v337_v21  ;;  %v2246_v3 = vsel %vm556_vm3, %v2243_v54, %v2245_v48  ;;  %v2288_v61 = vmul.f32 %v5075_v22, %v2285_v7 }
 0x220   : > { %2199 = vrot.lane.b32.xlu1 %v2196_v29, %s4097_s24  ;;  %2197 = vrot.lane.b32.xlu0 %v2194_v0, %s4097_s24  ;;  %v2242_v29 = vrot.slane %v2236_v43, 3  ;;  %v299_v15 = vadd.f32 %v4470_v25, %v274_v1  ;;  %v2221_v0 = vsel %vm265_vm0, %v2218_v33, %v2220_v12  ;;  %v340_v33 = vsel %vm335_vm1, %v337_v21, %v339_v34 }
 0x221   : > { %v301_v4 = vadd.f32 %v4479_v32, %v276_v17  ;;  %v2268_v41 = vrot.slane %v2262_v18, 3  ;;  %v345_v52 = vadd.f32 %v340_v33, %v325_v24  ;;  %v2270_v30 = vrot.slane %v2263_v59, 3 }
 0x222   : > { %v5269_v8 = vpop.permute.xlu1 %1706  ;;  %v5271_v2 = vpop.permute.xlu0 %1704  ;;  %v324_v25 = vadd.f32 %v4477_v31, %v299_v15  ;;  %v2244_v39 = vsel %vm556_vm3, %v2242_v29, %v2243_v54  ;;  %v2295_v18 = vrot.slane %v2288_v61, 3  ;;  %v2310_v17 = vstv %s3814_s13  ;;  %s5493_s13 = sld [smem:[#allocation3 + $0x6e]] }
 0x223   : > { %v326_v31 = vadd.f32 %v4486_v38, %v301_v4  ;;  %v2269_v1 = vsel %vm556_vm3, %v2267_v35, %v2268_v41  ;;  %v2286_v38 = vmul.f32 %v5064_v11, %v2285_v7  ;;  %v370_v9 = vadd.f32 %v4493_v44, %v345_v52 }
 0x224   : > { %2222 = vrot.lane.b32.xlu1 %v2219_v10, %s4100_s23  ;;  %2201 = vrot.lane.b32.xlu0 %v2195_v60, %s4097_s24  ;;  %v344_v10 = vadd.f32 %v338_v16, %v324_v25  ;;  %v2271_v44 = vsel %vm556_vm3, %v2268_v41, %v2270_v30  ;;  %v2311_v25 = vmul.f32 %v5064_v11, %v2310_v17 }
 0x225   : > { %v346_v21 = vadd.f32 %v339_v34, %v326_v31  ;;  %v395_v23 = vadd.f32 %v4512_v58, %v370_v9  ;;  %v2292_v53 = vrot.slane %v2286_v38, 3  ;;  %v2312_v33 = vmul.f32 %v5061_v20, %v2310_v17 }
 0x226   : > { %v5284_v51 = vpop.permute.xlu1 %1725  ;;  %v5286_v60 = vpop.permute.xlu0 %1723  ;;  %v369_v40 = vadd.f32 %v4495_v45, %v344_v10  ;;  %v2313_v4 = vmul.f32 %v5075_v22, %v2310_v17  ;;  %v2317_v59 = vrot.slane %v2311_v25, 6  ;;  %v2360_v9 = vstv %s3816_s27  ;;  %v6649_v17 = vld [vmem:[#allocation17_spill] sm:$0xff]  ;;  %s5520_s27 = sld [smem:[#allocation3 + $0x72]] }
 0x227   : > { %v2318_v52 = vrot.slane %v2312_v33, 6  ;;  %v2363_v25 = vmul.f32 %v5075_v22, %v2360_v9 }
 0x228   : > { %2226 = vrot.lane.b32.xlu1 %v2220_v12, %s4100_s23  ;;  %2224 = vrot.lane.b32.xlu0 %v2221_v0, %s4100_s23  ;;  %v2287_v12 = vmul.f32 %v5061_v20, %v2285_v7  ;;  %v394_v15 = vadd.f32 %v4502_v49, %v369_v40  ;;  %v371_v0 = vadd.f32 %v4504_v50, %v346_v21  ;;  %v2320_v10 = vrot.slane %v2313_v4, 6  ;;  %v6644_v40 = vld [vmem:[#allocation13_spill] sm:$0xff] }
 0x229   : > { %v421_v50 = vadd.f32 %v4519_v5, %v395_v23 }
 0x22a   : > { %v5299_v43 = vpop.permute.xlu1 %1744  ;;  %v5301_v32 = vpop.permute.xlu0 %1727  ;;  %v2293_v45 = vrot.slane %v2287_v12, 3  ;;  %v420_v34 = vadd.f32 %v4521_v6, %v394_v15  ;;  %v396_v24 = vadd.f32 %v4510_v57, %v371_v0  ;;  %v6646_v0 = vld [vmem:[#allocation12_spill] sm:$0xff] }
 0x22c   : > { %2249 = vrot.lane.b32.xlu1 %v2246_v3, %s4099_s10  ;;  %2247 = vrot.lane.b32.xlu0 %v2244_v39, %s4099_s10  ;;  %v445_v58 = vadd.f32 %v4527_v13, %v420_v34  ;;  %v2296_v6 = vsel %vm556_vm3, %v2293_v45, %v2295_v18  ;;  %v2294_v57 = vsel %vm556_vm3, %v2292_v53, %v2293_v45  ;;  %v2335_v3 = vstv %s3815_s28  ;;  %v6647_v34 = vld [vmem:[#allocation14_spill] sm:$0xff]  ;;  %s5513_s28 = sld [smem:[#allocation3 + $0x1]] }
 0x22d   : > { %v446_v39 = vadd.f32 %v4539_v27, %v421_v50  ;;  %v2336_v7 = vmul.f32 %v5064_v11, %v2335_v3  ;;  %v2337_v31 = vmul.f32 %v5061_v20, %v2335_v3  ;;  %v2338_v15 = vmul.f32 %v5075_v22, %v2335_v3  ;;  %v6650_v3 = vld [vmem:[#allocation18_spill] sm:$0xff] }
 0x22e   : > { %v5311_v54 = vpop.permute.xlu1 %1748  ;;  %v5313_v29 = vpop.permute.xlu0 %1746  ;;  %v470_v35 = vadd.f32 %v4548_v37, %v445_v58  ;;  %v2361_v58 = vmul.f32 %v5064_v11, %v2360_v9 }
 0x22f   : > { %v2343_v21 = vrot.slane %v2337_v31, 6 }
 0x230   : > { %2272 = vrot.lane.b32.xlu1 %v2269_v1, %s4097_s24  ;;  %2251 = vrot.lane.b32.xlu0 %v2245_v48, %s4099_s10  ;;  %v422_v48 = vadd.f32 %v4529_v14, %v396_v24  ;;  %v495_v27 = vadd.f32 %v4555_v46, %v470_v35  ;;  %v2321_v46 = vsel %vm632_vm4, %v2318_v52, %v2320_v10  ;;  %v6653_v10 = vld [vmem:[#allocation20_spill] sm:$0xff] }
 0x232   : > { %v5323_v16 = vpop.permute.xlu1 %1771  ;;  %v5325_v49 = vpop.permute.xlu0 %1769  ;;  %v447_v5 = vadd.f32 %v4537_v26, %v422_v48  ;;  %v471_v26 = vadd.f32 %v4546_v36, %v446_v39  ;;  %v520_v1 = vadd.f32 %v6644_v40, %v495_v27  ;;  %v2342_v36 = vrot.slane %v2336_v7, 6  ;;  %v6651_v39 = vld [vmem:[#allocation19_spill] sm:$0xff] }
 0x233   : > { %v2345_v48 = vrot.slane %v2338_v15, 6  ;;  %v2367_v7 = vrot.slane %v2361_v58, 6  ;;  %v2370_v40 = vrot.slane %v2363_v25, 6  ;;  %v6656_v15 = vld [vmem:[#allocation25_spill] sm:$0xff]  ;;  %v6658_v58 = vld [vmem:[#allocation24_spill] sm:$0xff] }
 0x234   : > { %2276 = vrot.lane.b32.xlu1 %v2270_v30, %s4097_s24  ;;  %2274 = vrot.lane.b32.xlu0 %v2271_v44, %s4097_s24  ;;  %v472_v41 = vadd.f32 %v4557_v47, %v447_v5  ;;  %v496_v61 = vadd.f32 %v4566_v56, %v471_v26  ;;  %v6645_v30 = vld [vmem:[#allocation15_spill] sm:$0xff]  ;;  %v545_v44 = vadd.f32 %v6647_v34, %v520_v1  ;;  %v6654_v1 = vld [vmem:[#allocation22_spill] sm:$0xff] }
 0x235   : > { %v2344_v50 = vsel %vm632_vm4, %v2342_v36, %v2343_v21 }
 0x236   : > { %v5338_v13 = vpop.permute.xlu1 %1794  ;;  %v5340_v14 = vpop.permute.xlu0 %1773  ;;  %v497_v37 = vadd.f32 %v4564_v55, %v472_v41  ;;  %v2319_v55 = vsel %vm632_vm4, %v2317_v59, %v2318_v52  ;;  %v521_v23 = vadd.f32 %v6646_v0, %v496_v61  ;;  %v571_v35 = vadd.f32 %v6651_v39, %v545_v44  ;;  %v6652_v41 = vld [vmem:[#allocation21_spill] sm:$0xff] }
 0x238   : > { %2299 = vrot.lane.b32.xlu1 %v2296_v6, %s4100_s23  ;;  %2297 = vrot.lane.b32.xlu0 %v2294_v57, %s4100_s23  ;;  %v522_v38 = vadd.f32 %v6645_v30, %v497_v37  ;;  %v546_v24 = vadd.f32 %v6649_v17, %v521_v23  ;;  %v2362_v6 = vmul.f32 %v5061_v20, %v2360_v9  ;;  %v2385_v57 = vstv %s3817_s6  ;;  %v6657_v23 = vld [vmem:[#allocation27_spill] sm:$0xff]  ;;  %s5533_s6 = sld [smem:[#allocation3 + $0xd]] }
 0x239   : > { %v2387_v31 = vmul.f32 %v5061_v20, %v2385_v57  ;;  %v2388_v26 = vmul.f32 %v5075_v22, %v2385_v57  ;;  %v2386_v52 = vmul.f32 %v5064_v11, %v2385_v57  ;;  %v596_v27 = vadd.f32 %v6653_v10, %v571_v35  ;;  %v6659_v57 = vld [vmem:[#allocation26_spill] sm:$0xff]  ;;  %v6661_v35 = vld [vmem:[#allocation29_spill] sm:$0xff] }
 0x23a   : > { %v5352_v12 = vpop.permute.xlu1 %1798  ;;  %v5354_v47 = vpop.permute.xlu0 %1796  ;;  %v572_v5 = vadd.f32 %v6650_v3, %v546_v24  ;;  %v2346_v37 = vsel %vm632_vm4, %v2343_v21, %v2345_v48  ;;  %v2368_v61 = vrot.slane %v2362_v6, 6  ;;  %v2435_v10 = vstv %s5394_s20  ;;  %s5566_s20 = sld [smem:[#allocation3 + $0x7a]] }
 0x23b   : > { %v621_v0 = vadd.f32 %v6656_v15, %v596_v27  ;;  %v2393_v21 = vrot.slane %v2387_v31, 1  ;;  %v2395_v44 = vrot.slane %v2388_v26, 1  ;;  %v2437_v15 = vmul.f32 %v5061_v20, %v2435_v10 }
 0x23c   : > { %2322 = vrot.lane.b32.xlu1 %v2317_v59, %s4101_s7  ;;  %2301 = vrot.lane.b32.xlu0 %v2295_v18, %s4100_s23  ;;  %v6648_v18 = vld [vmem:[#allocation16_spill] sm:$0xff]  ;;  %v2369_v17 = vsel %vm632_vm4, %v2367_v7, %v2368_v61 }
 0x23d   : > { %v547_v53 = vadd.f32 %v6648_v18, %v522_v38  ;;  %v2392_v18 = vrot.slane %v2386_v52, 1  ;;  %v647_v3 = vadd.f32 %v6659_v57, %v621_v0  ;;  %v2438_v0 = vmul.f32 %v5075_v22, %v2435_v10 }
 0x23e   : > { %v5365_v56 = vpop.permute.xlu1 %1821  ;;  %v5367_v45 = vpop.permute.xlu0 %1819  ;;  %v2460_v57 = vstv %s3820_s4  ;;  %s5599_s4 = sld [smem:[#allocation3 + $0x19]] }
 0x23f   : > { %v573_v59 = vadd.f32 %v6652_v41, %v547_v53  ;;  %v2371_v53 = vsel %vm632_vm4, %v2368_v61, %v2370_v40  ;;  %v6662_v61 = vld [vmem:[#allocation30_spill] sm:$0xff] }
 0x240   : > { %2326 = vrot.lane.b32.xlu1 %v2321_v46, %s4101_s7  ;;  %2324 = vrot.lane.b32.xlu0 %v2319_v55, %s4101_s7  ;;  %v2410_v46 = vstv %s5369_s12  ;;  %v6655_v55 = vld [vmem:[#allocation23_spill] sm:$0xff]  ;;  %s5542_s12 = sld [smem:[#allocation3 + $0x76]] }
 0x241   : > { %v598_v30 = vadd.f32 %v6654_v1, %v573_v59  ;;  %v597_v9 = vadd.f32 %v6655_v55, %v572_v5  ;;  %v2411_v24 = vmul.f32 %v5064_v11, %v2410_v46  ;;  %v6660_v5 = vld [vmem:[#allocation28_spill] sm:$0xff]  ;;  %v2396_v59 = vsel %vm265_vm0, %v2393_v21, %v2395_v44  ;;  %v6663_v1 = vld [vmem:[#allocation31_spill] sm:$0xff]  ;;  %v6664_v55 = vld [vmem:[#allocation33_spill] sm:$0xff] }
 0x242   : > { %v5380_v33 = vpop.permute.xlu1 %1840  ;;  %v5382_v4 = vpop.permute.xlu0 %1823  ;;  %v2413_v52 = vmul.f32 %v5075_v22, %v2410_v46 }
 0x243   : > { %v623_v34 = vadd.f32 %v6657_v23, %v598_v30  ;;  %v622_v48 = vadd.f32 %v6658_v58, %v597_v9  ;;  %v2417_v31 = vrot.slane %v2411_v24, 1  ;;  %v672_v30 = vadd.f32 %v6663_v1, %v647_v3  ;;  %v6665_v23 = vld [vmem:[#allocation32_spill] sm:$0xff]  ;;  %v6667_v24 = vld [vmem:[#allocation34_spill] sm:$0xff] }
 0x244   : > { %2349 = vrot.lane.b32.xlu1 %v2344_v50, %s4097_s24  ;;  %2347 = vrot.lane.b32.xlu0 %v2342_v36, %s4097_s24  ;;  %v2412_v50 = vmul.f32 %v5061_v20, %v2410_v46  ;;  %v2436_v46 = vmul.f32 %v5064_v11, %v2435_v10  ;;  %v6668_v3 = vld [vmem:[#allocation36_spill] sm:$0xff]  ;;  %v6671_v10 = vld [vmem:[#allocation38_spill] sm:$0xff]  ;;  %v2461_v1 = vmul.f32 %v5064_v11, %v2460_v57 }
 0x245   : > { %v649_v39 = vadd.f32 %v6660_v5, %v623_v34  ;;  %v648_v41 = vadd.f32 %v6661_v35, %v622_v48  ;;  %v697_v34 = vadd.f32 %v6665_v23, %v672_v30  ;;  %v2462_v30 = vmul.f32 %v5061_v20, %v2460_v57 }
 0x246   : > { %v5397_v38 = vpop.permute.xlu1 %1844  ;;  %v5399_v36 = vpop.permute.xlu0 %1842  ;;  %v2418_v26 = vrot.slane %v2412_v50, 1 }
 0x247   : > { %v673_v40 = vadd.f32 %v6662_v61, %v648_v41  ;;  %v674_v9 = vadd.f32 %v6664_v55, %v649_v39  ;;  %v6669_v39 = vld [vmem:[#allocation37_spill] sm:$0xff]  ;;  %v6670_v41 = vld [vmem:[#allocation39_spill] sm:$0xff]  ;;  %v6672_v55 = vld [vmem:[#allocation40_spill] sm:$0xff] }
 0x248   : > { %2372 = vrot.lane.b32.xlu1 %v2367_v7, %s4102_s9  ;;  %2351 = vrot.lane.b32.xlu0 %v2346_v37, %s4097_s24  ;;  %v2394_v7 = vsel %vm265_vm0, %v2392_v18, %v2393_v21  ;;  %v6666_v21 = vld [vmem:[#allocation35_spill] sm:$0xff]  ;;  %v722_v35 = vadd.f32 %v6669_v39, %v697_v34  ;;  %v2485_v39 = vstv %s5440_s5  ;;  %s5607_s5 = sld [smem:[#allocation3 + $0x7e]] }
 0x249   : > { %v698_v18 = vadd.f32 %v6666_v21, %v673_v40  ;;  %v699_v50 = vadd.f32 %v6667_v24, %v674_v9  ;;  %v6676_v21 = vld [vmem:[#allocation45_spill] sm:$0xff]  ;;  %v2467_v24 = vrot.slane %v2461_v1, 4 }
 0x24a   : > { %v5412_v6 = vpop.permute.xlu1 %1863  ;;  %v5414_v25 = vpop.permute.xlu0 %1861  ;;  %v747_v61 = vadd.f32 %v6671_v10, %v722_v35  ;;  %v6677_v35 = vld [vmem:[#allocation44_spill] sm:$0xff]  ;;  %v6680_v10 = vld [vmem:[#allocation42_spill] sm:$0xff] }
 0x24b   : > { %v723_v5 = vadd.f32 %v6668_v3, %v698_v18  ;;  %v2463_v3 = vmul.f32 %v5075_v22, %v2460_v57  ;;  %v5482_v57 = vmul.f32 %v5075_v22, %v2485_v39 }
 0x24c   : > { %2376 = vrot.lane.b32.xlu1 %v2371_v53, %s4102_s9  ;;  %2374 = vrot.lane.b32.xlu0 %v2369_v17, %s4102_s9  ;;  %v2419_v53 = vsel %vm265_vm0, %v2417_v31, %v2418_v26  ;;  %v2420_v17 = vrot.slane %v2413_v52, 1  ;;  %v2445_v31 = vrot.slane %v2438_v0, 1  ;;  %v2442_v52 = vrot.slane %v2436_v46, 1  ;;  %v6675_v0 = vld [vmem:[#allocation43_spill] sm:$0xff] }
 0x24d   : > { %v772_v46 = vadd.f32 %v6675_v0, %v747_v61  ;;  %v6684_v0 = vld [vmem:[#allocation50_spill] sm:$0xff] }
 0x24e   : > { %v5425_v27 = vpop.permute.xlu1 %1882  ;;  %v5427_v37 = vpop.permute.xlu0 %1865  ;;  %v2421_v40 = vsel %vm265_vm0, %v2418_v26, %v2420_v17 }
 0x250   : > { %2399 = vrot.lane.b32.xlu1 %v2396_v59, %s4101_s7  ;;  %2397 = vrot.lane.b32.xlu0 %v2394_v7, %s4101_s7  ;;  %v724_v59 = vadd.f32 %v6670_v41, %v699_v50  ;;  %v2443_v7 = vrot.slane %v2437_v15, 1  ;;  %v2468_v50 = vrot.slane %v2462_v30, 4  ;;  %v798_v41 = vadd.f32 %v6677_v35, %v772_v46 }
 0x252   : > { %v5443_v58 = vpop.permute.xlu1 %1886  ;;  %v5445_v48 = vpop.permute.xlu0 %1884  ;;  %v749_v9 = vadd.f32 %v6672_v55, %v724_v59  ;;  %v2446_v26 = vsel %vm265_vm0, %v2443_v7, %v2445_v31  ;;  %v2469_v30 = vsel %vm783_vm5, %v2467_v24, %v2468_v50 }
 0x254   : > { %2422 = vrot.lane.b32.xlu1 %v2419_v53, %s4097_s24  ;;  %2401 = vrot.lane.b32.xlu0 %v2395_v44, %s4101_s7  ;;  %v6674_v44 = vld [vmem:[#allocation41_spill] sm:$0xff]  ;;  %v774_v18 = vadd.f32 %v6676_v21, %v749_v9  ;;  %v2444_v53 = vsel %vm265_vm0, %v2442_v52, %v2443_v7  ;;  %v2487_v7 = vmul.f32 %v5061_v20, %v2485_v39  ;;  %v6683_v52 = vld [vmem:[#allocation47_spill] sm:$0xff] }
 0x255   : > { %v748_v15 = vadd.f32 %v6674_v44, %v723_v5  ;;  %v2470_v44 = vrot.slane %v2463_v3, 4  ;;  %v6685_v21 = vld [vmem:[#allocation51_spill] sm:$0xff] }
 0x256   : > { %v5457_v23 = vpop.permute.xlu1 %1916  ;;  %v5459_v34 = vpop.permute.xlu0 %1914  ;;  %v2493_v3 = vrot.slane %v2487_v7, 4  ;;  %v6696_v7 = vld [vmem:[#allocation58_spill] sm:$0xff] }
 0x257   : > { %6673 = vst [vmem:[#allocation13_spill] sm:$0xff] %v5459_v34  ;;  %v773_v61 = vadd.f32 %v6680_v10, %v748_v15  ;;  %v2486_v15 = vmul.f32 %v5064_v11, %v2485_v39  ;;  %v2495_v39 = vrot.slane %v5482_v57, 4  ;;  %v6697_v57 = vld [vmem:[#allocation61_spill] sm:$0xff] }
 0x258   : > { %2426 = vrot.lane.b32.xlu1 %v2420_v17, %s4097_s24  ;;  %2424 = vrot.lane.b32.xlu0 %v2421_v40, %s4097_s24  ;;  %v6681_v17 = vld [vmem:[#allocation46_spill] sm:$0xff]  ;;  %v6682_v40 = vld [vmem:[#allocation49_spill] sm:$0xff] }
 0x259   : > { %v800_v55 = vadd.f32 %v6681_v17, %v774_v18  ;;  %v823_v9 = vadd.f32 %v6682_v40, %v798_v41  ;;  %v799_v1 = vadd.f32 %v6683_v52, %v773_v61  ;;  %v6688_v41 = vld [vmem:[#allocation48_spill] sm:$0xff]  ;;  %v6690_v40 = vld [vmem:[#allocation55_spill] sm:$0xff] }
 0x25a   : > { %v5471_v5 = vpop.permute.xlu1 %1934  ;;  %v5473_v59 = vpop.permute.xlu0 %1918  ;;  %v6689_v17 = vld [vmem:[#allocation52_spill] sm:$0xff] }
 0x25b   : > { %6678 = vst [vmem:[#allocation15_spill] sm:$0xff] %v5471_v5  ;;  %6679 = vst [vmem:[#allocation12_spill] sm:$0xff] %v5473_v59  ;;  %v848_v46 = vadd.f32 %v6684_v0, %v823_v9  ;;  %v825_v18 = vadd.f32 %v6685_v21, %v800_v55  ;;  %v824_v10 = vadd.f32 %v6688_v41, %v799_v1  ;;  %v2492_v9 = vrot.slane %v2486_v15, 4  ;;  %v6691_v21 = vld [vmem:[#allocation56_spill] sm:$0xff]  ;;  %v6692_v41 = vld [vmem:[#allocation57_spill] sm:$0xff] }
 0x25c   : > { %2449 = vrot.lane.b32.xlu1 %v2446_v26, %s4102_s9  ;;  %2447 = vrot.lane.b32.xlu0 %v2444_v53, %s4102_s9  ;;  %v2510_v53 = vstv %s3822_s11  ;;  %v2471_v55 = vsel %vm783_vm5, %v2468_v50, %v2470_v44  ;;  %v2496_v15 = vsel %vm783_vm5, %v2493_v3, %v2495_v39  ;;  %s5627_s11 = sld [smem:[#allocation3 + $0x82]] }
 0x25d   : > { %v850_v61 = vadd.f32 %v6689_v17, %v825_v18  ;;  %v870_v24 = vadd.f32 %v6690_v40, %v848_v46  ;;  %v2511_v52 = vmul.f32 %v5064_v11, %v2510_v53  ;;  %v2512_v0 = vmul.f32 %v5061_v20, %v2510_v53 }
 0x25e   : > { %v5489_v35 = vpop.permute.xlu1 %1938  ;;  %v5491_v26 = vpop.permute.xlu0 %1936 }
 0x25f   : > { %6686 = vst [vmem:[#allocation14_spill] sm:$0xff] %v5489_v35  ;;  %6687 = vst [vmem:[#allocation16_spill] sm:$0xff] %v5491_v26  ;;  %v891_v1 = vadd.f32 %v6691_v21, %v870_v24  ;;  %v872_v18 = vadd.f32 %v6692_v41, %v850_v61  ;;  %v2494_v61 = vsel %vm783_vm5, %v2492_v9, %v2493_v3  ;;  %v2517_v24 = vrot.slane %v2511_v52, 4  ;;  %v6704_v3 = vld [vmem:[#allocation64_spill] sm:$0xff]  ;;  %v6705_v52 = vld [vmem:[#allocation67_spill] sm:$0xff] }
 0x260   : > { %2472 = vrot.lane.b32.xlu1 %v2469_v30, %s4101_s7  ;;  %2451 = vrot.lane.b32.xlu0 %v2445_v31, %s4102_s9  ;;  %v6695_v30 = vld [vmem:[#allocation53_spill] sm:$0xff]  ;;  %v2518_v21 = vrot.slane %v2512_v0, 4  ;;  %v2513_v41 = vmul.f32 %v5075_v22, %v2510_v53 }
 0x261   : > { %v849_v31 = vadd.f32 %v6695_v30, %v824_v10  ;;  %v893_v40 = vadd.f32 %v6696_v7, %v872_v18  ;;  %v912_v50 = vadd.f32 %v6697_v57, %v891_v1  ;;  %v6698_v10 = vld [vmem:[#allocation54_spill] sm:$0xff]  ;;  %v6700_v7 = vld [vmem:[#allocation63_spill] sm:$0xff] }
 0x262   : > { %v5506_v17 = vpop.permute.xlu1 %1980  ;;  %v5508_v46 = vpop.permute.xlu0 %1978  ;;  %v6699_v30 = vld [vmem:[#allocation62_spill] sm:$0xff]  ;;  %v2519_v22 = vsel %vm783_vm5, %v2517_v24, %v2518_v21  ;;  %v2520_v53 = vrot.slane %v2513_v41, 4  ;;  %v6711_v24 = vld [vmem:[#allocation65_spill] sm:$0xff] }
 0x263   : > { %6693 = vst [vmem:[#allocation17_spill] sm:$0xff] %v5506_v17  ;;  %6694 = vst [vmem:[#allocation18_spill] sm:$0xff] %v5508_v46  ;;  %v871_v18 = vadd.f32 %v6698_v10, %v849_v31  ;;  %v937_v1 = vadd.f32 %v6699_v30, %v912_v50  ;;  %v914_v57 = vadd.f32 %v6700_v7, %v893_v40  ;;  %v6703_v17 = vld [vmem:[#allocation59_spill] sm:$0xff]  ;;  %v6707_v10 = vld [vmem:[#allocation68_spill] sm:$0xff] }
 0x264   : > { %2476 = vrot.lane.b32.xlu1 %v2470_v44, %s4101_s7  ;;  %2474 = vrot.lane.b32.xlu0 %v2471_v55, %s4101_s7  ;;  %v2535_v55 = vstv %s5493_s13  ;;  %v6708_v30 = vld [vmem:[#allocation69_spill] sm:$0xff]  ;;  %v6712_v7 = vld [vmem:[#allocation70_spill] sm:$0xff]  ;;  %s5660_s13 = sld [smem:[#allocation3 + $0x86]] }
 0x265   : > { %v892_v35 = vadd.f32 %v6703_v17, %v871_v18  ;;  %v939_v9 = vadd.f32 %v6704_v3, %v914_v57  ;;  %v962_v0 = vadd.f32 %v6705_v52, %v937_v1  ;;  %v2536_v31 = vmul.f32 %v5064_v11, %v2535_v55  ;;  %v6706_v17 = vld [vmem:[#allocation60_spill] sm:$0xff] }
 0x266   : > { %v5525_v46 = vpop.permute.xlu1 %2003  ;;  %v5527_v44 = vpop.permute.xlu0 %1982  ;;  %v5540_v40 = vmul.f32 %v5061_v20, %v2535_v55  ;;  %v6713_v20 = vld [vmem:[#allocation73_spill] sm:$0xff]  ;;  %v1058_v55 = vstv %s5513_s28  ;;  %v2556_v52 = vstv %s5520_s27  ;;  %s5684_s28 = sld [smem:[#allocation3 + $0x8a]]  ;;  %s5704_s27 = sld [smem:[#allocation3 + $0x8e]] }
 0x267   : > { %6701 = vst [vmem:[#allocation19_spill] sm:$0xff] %v5525_v46  ;;  %6702 = vst [vmem:[#allocation21_spill] sm:$0xff] %v5527_v44  ;;  %v913_v50 = vadd.f32 %v6706_v17, %v892_v35  ;;  %v987_v18 = vadd.f32 %v6707_v10, %v962_v0  ;;  %v964_v1 = vadd.f32 %v6708_v30, %v939_v9  ;;  %v2540_v3 = vrot.slane %v2536_v31, 5  ;;  %v6714_v0 = vld [vmem:[#allocation66_spill] sm:$0xff]  ;;  %v3971_v44 = vld [vmem:[%s4266_s29 + $0x20] sm:$0xff] }
 0x268   : > { %2499 = vrot.lane.b32.xlu1 %v2496_v15, %s4097_s24  ;;  %2497 = vrot.lane.b32.xlu0 %v2494_v61, %s4097_s24  ;;  %v2521_v35 = vsel %vm783_vm5, %v2518_v21, %v2520_v53  ;;  %v2541_v9 = vrot.slane %v5540_v40, 5  ;;  %v5570_v21 = vld [vmem:[%s4266_s29 + $0x18] sm:$0xff] }
 0x269   : > { %v938_v41 = vadd.f32 %v6711_v24, %v913_v50  ;;  %v989_v11 = vadd.f32 %v6712_v7, %v964_v1  ;;  %v1008_v57 = vadd.f32 %v6713_v20, %v987_v18  ;;  %v6715_v50 = vld [vmem:[#allocation75_spill] sm:$0xff]  ;;  %v1059_v31 = vmul.f32 %v5570_v21, %v1058_v55  ;;  %v6720_v24 = vld [vmem:[#allocation76_spill] sm:$0xff] }
 0x26a   : > { %v5547_v15 = vpop.permute.xlu1 %2007  ;;  %v5549_v61 = vpop.permute.xlu0 %2005  ;;  %v6719_v40 = vld [vmem:[#allocation71_spill] sm:$0xff]  ;;  %v1106_v7 = vstv %s5533_s6  ;;  %s3836_s6 = sld [smem:[#allocation3 + $0x7]] }
 0x26b   : > { %6709 = vst [vmem:[#allocation20_spill] sm:$0xff] %v5547_v15  ;;  %6710 = vst [vmem:[#allocation22_spill] sm:$0xff] %v5549_v61  ;;  %v963_v17 = vadd.f32 %v6714_v0, %v938_v41  ;;  %v1010_v10 = vadd.f32 %v6715_v50, %v989_v11  ;;  %v5579_v11 = vld [vmem:[%s4266_s29 + $0x30] sm:$0xff]  ;;  %v2542_v50 = vsel %vm857_vm6, %v2540_v3, %v2541_v9 }
 0x26c   : > { %2522 = vrot.lane.b32.xlu1 %v2519_v22, %s4102_s9  ;;  %2501 = vrot.lane.b32.xlu0 %v2495_v39, %s4097_s24  ;;  %v6718_v39 = vld [vmem:[#allocation74_spill] sm:$0xff]  ;;  %v2557_v20 = vmul.f32 %v5579_v11, %v2556_v52  ;;  %v1108_v46 = vmul.f32 %v3971_v44, %v1106_v7 }
 0x26d   : > { %v1029_v22 = vadd.f32 %v6718_v39, %v1008_v57  ;;  %v988_v1 = vadd.f32 %v6719_v40, %v963_v17  ;;  %v1031_v41 = vadd.f32 %v6720_v24, %v1010_v10  ;;  %v6721_v57 = vld [vmem:[#allocation79_spill] sm:$0xff]  ;;  %v2577_v40 = vstv %s5542_s12  ;;  %v6722_v10 = vld [vmem:[#allocation72_spill] sm:$0xff]  ;;  %s3839_s12 = sld [smem:[#allocation3 + $0x13]] }
 0x26e   : > { %v5562_v30 = vpop.permute.xlu1 %2049  ;;  %v5564_v18 = vpop.permute.xlu0 %2047  ;;  %v5585_v39 = vld [vmem:[%s4266_s29 + $0x38] sm:$0xff] }
 0x26f   : > { %6716 = vst [vmem:[#allocation23_spill] sm:$0xff] %v5562_v30  ;;  %6717 = vst [vmem:[#allocation25_spill] sm:$0xff] %v5564_v18  ;;  %v1050_v0 = vadd.f32 %v6721_v57, %v1029_v22  ;;  %v2558_v17 = vmul.f32 %v5585_v39, %v2556_v52  ;;  %v1009_v24 = vadd.f32 %v6722_v10, %v988_v1  ;;  %v3970_v30 = vld [vmem:[%s4266_s29 + $0x28] sm:$0xff]  ;;  %v2561_v52 = vrot.slane %v2557_v20, 5 }
 0x270   : > { %2526 = vrot.lane.b32.xlu1 %v2520_v53, %s4102_s9  ;;  %2524 = vrot.lane.b32.xlu0 %v2521_v35, %s4102_s9  ;;  %v1061_v18 = vmul.f32 %v3970_v30, %v1058_v55  ;;  %v6723_v53 = vld [vmem:[#allocation81_spill] sm:$0xff]  ;;  %v1107_v22 = vmul.f32 %v5570_v21, %v1106_v7  ;;  %v2578_v1 = vmul.f32 %v5579_v11, %v2577_v40  ;;  %v1114_v20 = vrot.slane %v1108_v46, 1 }
 0x271   : > { %v1052_v15 = vadd.f32 %v6723_v53, %v1031_v41  ;;  %v6726_v57 = vld [vmem:[#allocation77_spill] sm:$0xff]  ;;  %v5605_v41 = vmul.f32 %v5585_v39, %v2577_v40  ;;  %v1060_v10 = vmul.f32 %v3971_v44, %v1058_v55  ;;  %v1062_v53 = vadd.f32 %v1059_v31, %v1050_v0  ;;  %v6730_v0 = vld [vmem:[#allocation80_spill] sm:$0xff]  ;;  %v6731_v40 = vld [vmem:[#allocation82_spill] sm:$0xff] }
 0x272   : > { %v5592_v35 = vpop.permute.xlu1 %2072  ;;  %v5594_v61 = vpop.permute.xlu0 %2051  ;;  %v1030_v59 = vadd.f32 %v6726_v57, %v1009_v24  ;;  %v1109_v5 = vmul.f32 %v3970_v30, %v1106_v7  ;;  %v1113_v34 = vrot.slane %v1107_v22, 1  ;;  %v2582_v55 = vrot.slane %v2578_v1, 5 }
 0x273   : > { %6724 = vst [vmem:[#allocation27_spill] sm:$0xff] %v5592_v35  ;;  %6725 = vst [vmem:[#allocation24_spill] sm:$0xff] %v5594_v61  ;;  %v2562_v61 = vrot.slane %v2558_v17, 5  ;;  %v6727_v35 = vld [vmem:[#allocation78_spill] sm:$0xff]  ;;  %v1064_v57 = vadd.f32 %v1061_v18, %v1052_v15  ;;  %v2583_v31 = vrot.slane %v5605_v41, 5  ;;  %v1082_v17 = vadd.f32 %v6730_v0, %v1062_v53  ;;  %v6734_v41 = vld [vmem:[#allocation85_spill] sm:$0xff] }
 0x274   : > { %2545 = vrot.lane.b32.xlu1 %v2542_v50, %s4103_s21  ;;  %2543 = vrot.lane.b32.xlu0 %v2540_v3, %s4103_s21  ;;  %v1051_v24 = vadd.f32 %v6727_v35, %v1030_v59  ;;  %v2598_v3 = vstv %s5566_s20  ;;  %v1116_v35 = vrot.slane %v1109_v5, 1  ;;  %v1115_v1 = vsel %vm265_vm0, %v1113_v34, %v1114_v20  ;;  %v6735_v53 = vld [vmem:[#allocation83_spill] sm:$0xff]  ;;  %s3837_s20 = sld [smem:[#allocation3 + $0xb]] }
 0x275   : > { %v2563_v59 = vsel %vm857_vm6, %v2561_v52, %v2562_v61  ;;  %v2599_v15 = vmul.f32 %v5579_v11, %v2598_v3  ;;  %v2600_v18 = vmul.f32 %v5585_v39, %v2598_v3  ;;  %v1084_v46 = vadd.f32 %v6731_v40, %v1064_v57  ;;  %v5638_v40 = vld [vmem:[%s4266_s29 + $0x40] sm:$0xff] }
 0x276   : > { %v5610_v26 = vpop.permute.xlu1 %2076  ;;  %v5612_v50 = vpop.permute.xlu0 %2074  ;;  %v1063_v7 = vadd.f32 %v1060_v10, %v1051_v24  ;;  %v1175_v10 = vstv %s5599_s4  ;;  %v2584_v5 = vsel %vm857_vm6, %v2582_v55, %v2583_v31  ;;  %v2623_v34 = vstv %s5607_s5  ;;  %s3840_s4 = sld [smem:[#allocation3 + $0x17]] }
 0x277   : > { %6728 = vst [vmem:[#allocation26_spill] sm:$0xff] %v5610_v26  ;;  %6729 = vst [vmem:[#allocation28_spill] sm:$0xff] %v5612_v50  ;;  %v6736_v50 = vld [vmem:[#allocation87_spill] sm:$0xff]  ;;  %v2605_v24 = vrot.slane %v2599_v15, 1  ;;  %v2606_v57 = vrot.slane %v2600_v18, 1  ;;  %v1176_v15 = vmul.f32 %v5570_v21, %v1175_v10  ;;  %s5810_s5 = sld [smem:[#allocation3 + $0x1f]] }
 0x278   : > { %2564 = vrot.lane.b32.xlu1 %v2561_v52, %s4097_s24  ;;  %2547 = vrot.lane.b32.xlu0 %v2541_v9, %s4103_s21  ;;  %v1102_v52 = vadd.f32 %v6734_v41, %v1082_v17  ;;  %v1083_v0 = vadd.f32 %v6735_v53, %v1063_v7  ;;  %v1104_v26 = vadd.f32 %v6736_v50, %v1084_v46  ;;  %v6737_v41 = vld [vmem:[#allocation84_spill] sm:$0xff] }
 0x279   : > { %v1117_v17 = vsel %vm265_vm0, %v1114_v20, %v1116_v35  ;;  %v1178_v46 = vmul.f32 %v3970_v30, %v1175_v10  ;;  %v2626_v20 = vmul.f32 %v5638_v40, %v2623_v34  ;;  %v2648_v30 = vstv %s5627_s11  ;;  %s5844_s11 = sld [smem:[#allocation3 + $0x23]] }
 0x27a   : > { %v5623_v22 = vpop.permute.xlu1 %2099  ;;  %v5625_v9 = vpop.permute.xlu0 %2097  ;;  %v1103_v7 = vadd.f32 %v6737_v41, %v1083_v0  ;;  %v1123_v18 = vadd.f32 %v1116_v35, %v1104_v26  ;;  %v2607_v0 = vsel %vm265_vm0, %v2605_v24, %v2606_v57  ;;  %v6741_v26 = vld [vmem:[#allocation86_spill] sm:$0xff] }
 0x27b   : > { %6732 = vst [vmem:[#allocation29_spill] sm:$0xff] %v5623_v22  ;;  %6733 = vst [vmem:[#allocation30_spill] sm:$0xff] %v5625_v9  ;;  %v2601_v22 = vmul.f32 %v5638_v40, %v2598_v3  ;;  %v2625_v3 = vmul.f32 %v5585_v39, %v2623_v34  ;;  %v1185_v35 = vrot.slane %v1178_v46, 2  ;;  %v6743_v9 = vld [vmem:[#allocation89_spill] sm:$0xff] }
 0x27c   : > { %2568 = vrot.lane.b32.xlu1 %v2562_v61, %s4097_s24  ;;  %2566 = vrot.lane.b32.xlu0 %v2563_v59, %s4097_s24  ;;  %v1121_v61 = vadd.f32 %v1115_v1, %v1102_v52  ;;  %v1177_v59 = vmul.f32 %v3971_v44, %v1175_v10  ;;  %v1182_v52 = vrot.slane %v1176_v15, 2  ;;  %v6742_v10 = vld [vmem:[#allocation88_spill] sm:$0xff]  ;;  %v6745_v15 = vld [vmem:[#allocation91_spill] sm:$0xff] }
 0x27d   : > { %v2608_v41 = vrot.slane %v2601_v22, 1  ;;  %v2631_v22 = vrot.slane %v2625_v3, 1 }
 0x27e   : > { %v5644_v53 = vpop.permute.xlu1 %2122  ;;  %v5646_v50 = vpop.permute.xlu0 %2101  ;;  %v1146_v21 = vadd.f32 %v6741_v26, %v1121_v61  ;;  %v2650_v61 = vmul.f32 %v5585_v39, %v2648_v30 }
 0x27f   : > { %6738 = vst [vmem:[#allocation31_spill] sm:$0xff] %v5644_v53  ;;  %6739 = vst [vmem:[#allocation33_spill] sm:$0xff] %v5646_v50  ;;  %v2624_v50 = vmul.f32 %v5579_v11, %v2623_v34  ;;  %v1122_v53 = vadd.f32 %v1117_v17, %v1103_v7  ;;  %v2633_v34 = vrot.slane %v2626_v20, 1  ;;  %v2609_v17 = vsel %vm265_vm0, %v2606_v57, %v2608_v41 }
 0x280   : > { %2587 = vrot.lane.b32.xlu1 %v2584_v5, %s4104_s8  ;;  %2585 = vrot.lane.b32.xlu0 %v2582_v55, %s4104_s8  ;;  %v1183_v55 = vrot.slane %v1177_v59, 2  ;;  %v1148_v5 = vadd.f32 %v6742_v10, %v1123_v18  ;;  %v6744_v59 = vld [vmem:[#allocation90_spill] sm:$0xff]  ;;  %v1171_v26 = vadd.f32 %v6745_v15, %v1146_v21  ;;  %v6746_v18 = vld [vmem:[#allocation93_spill] sm:$0xff]  ;;  %v2651_v21 = vmul.f32 %v5638_v40, %v2648_v30 }
 0x281   : > { %v1147_v24 = vadd.f32 %v6743_v9, %v1122_v53  ;;  %v2630_v7 = vrot.slane %v2624_v50, 1  ;;  %v2634_v50 = vsel %vm265_vm0, %v2631_v22, %v2633_v34 }
 0x282   : > { %v5655_v1 = vpop.permute.xlu1 %2126  ;;  %v5657_v44 = vpop.permute.xlu0 %2124  ;;  %v1173_v10 = vadd.f32 %v6746_v18, %v1148_v5  ;;  %v1184_v57 = vsel %vm335_vm1, %v1182_v52, %v1183_v55  ;;  %v6751_v52 = vld [vmem:[#allocation95_spill] sm:$0xff]  ;;  %v6754_v18 = vld [vmem:[#allocation96_spill] sm:$0xff] }
 0x283   : > { %6740 = vst [vmem:[#allocation32_spill] sm:$0xff] %v5657_v44  ;;  %v2649_v44 = vmul.f32 %v5579_v11, %v2648_v30  ;;  %v1172_v46 = vadd.f32 %v6744_v59, %v1147_v24  ;;  %v2632_v3 = vsel %vm265_vm0, %v2630_v7, %v2631_v22  ;;  %v1190_v24 = vadd.f32 %v1184_v57, %v1171_v26 }
 0x284   : > { %2610 = vrot.lane.b32.xlu1 %v2607_v0, %s4103_s21  ;;  %2589 = vrot.lane.b32.xlu0 %v2583_v31, %s4104_s8  ;;  %v1186_v31 = vsel %vm335_vm1, %v1183_v55, %v1185_v35  ;;  %v2656_v0 = vrot.slane %v2650_v61, 1  ;;  %v1192_v59 = vadd.f32 %v1185_v35, %v1173_v10  ;;  %v2658_v22 = vrot.slane %v2651_v21, 1  ;;  %v6752_v35 = vld [vmem:[#allocation92_spill] sm:$0xff] }
 0x285   : > { %v2655_v20 = vrot.slane %v2649_v44, 1  ;;  %v1191_v5 = vadd.f32 %v1186_v31, %v1172_v46  ;;  %v1215_v61 = vadd.f32 %v6752_v35, %v1190_v24  ;;  %v6753_v46 = vld [vmem:[#allocation94_spill] sm:$0xff] }
 0x286   : > { %v5673_v9 = vpop.permute.xlu1 %2149  ;;  %v5675_v53 = vpop.permute.xlu0 %2147  ;;  %v1217_v26 = vadd.f32 %v6753_v46, %v1192_v59  ;;  %v2659_v24 = vsel %vm265_vm0, %v2656_v0, %v2658_v22  ;;  %v6760_v35 = vld [vmem:[#allocation98_spill] sm:$0xff] }
 0x287   : > { %6747 = vst [vmem:[#allocation35_spill] sm:$0xff] %v5673_v9  ;;  %6748 = vst [vmem:[#allocation34_spill] sm:$0xff] %v5675_v53  ;;  %v2657_v44 = vsel %vm265_vm0, %v2655_v20, %v2656_v0  ;;  %v6758_v20 = vld [vmem:[#allocation99_spill] sm:$0xff] }
 0x288   : > { %2614 = vrot.lane.b32.xlu1 %v2608_v41, %s4103_s21  ;;  %2612 = vrot.lane.b32.xlu0 %v2609_v17, %s4103_s21  ;;  %v2673_v41 = vstv %s5660_s13  ;;  %v1216_v17 = vadd.f32 %v6751_v52, %v1191_v5  ;;  %v1242_v21 = vadd.f32 %v6758_v20, %v1217_v26  ;;  %v6759_v5 = vld [vmem:[#allocation101_spill] sm:$0xff]  ;;  %v6764_v26 = vld [vmem:[#allocation102_spill] sm:$0xff]  ;;  %v6816_v9 = vld [vmem:[#allocation143_spill] sm:$0xff]  ;;  %s5868_s13 = sld [smem:[#allocation3 + $0x27]] }
 0x289   : > { %v2674_v30 = vmul.f32 %v5585_v39, %v2673_v41  ;;  %v2675_v7 = vmul.f32 %v5638_v40, %v2673_v41  ;;  %v6766_v20 = vld [vmem:[#allocation105_spill] sm:$0xff] }
 0x28a   : > { %v5686_v15 = vpop.permute.xlu1 %2172  ;;  %v5688_v55 = vpop.permute.xlu0 %2151  ;;  %v1241_v10 = vadd.f32 %v6754_v18, %v1216_v17  ;;  %v2694_v17 = vstv %s5684_s28  ;;  %v6761_v18 = vld [vmem:[#allocation100_spill] sm:$0xff]  ;;  %s5891_s28 = sld [smem:[#allocation3 + $0x2]] }
 0x28b   : > { %6749 = vst [vmem:[#allocation36_spill] sm:$0xff] %v5686_v15  ;;  %6750 = vst [vmem:[#allocation37_spill] sm:$0xff] %v5688_v55  ;;  %v2678_v59 = vrot.slane %v2674_v30, 5  ;;  %v2679_v41 = vrot.slane %v2675_v7, 5  ;;  %v2695_v0 = vmul.f32 %v5585_v39, %v2694_v17  ;;  %v6767_v30 = vld [vmem:[#allocation107_spill] sm:$0xff]  ;;  %v2832_v15 = vstv %s3840_s4  ;;  %s5951_s4 = sld [smem:[#allocation3 + $0x1a]] }
 0x28c   : > { %2637 = vrot.lane.b32.xlu1 %v2634_v50, %s4097_s24  ;;  %2635 = vrot.lane.b32.xlu0 %v2632_v3, %s4097_s24  ;;  %v6757_v50 = vld [vmem:[#allocation97_spill] sm:$0xff]  ;;  %v1266_v52 = vadd.f32 %v6759_v5, %v1241_v10  ;;  %v6768_v5 = vld [vmem:[#allocation104_spill] sm:$0xff] }
 0x28d   : > { %v1240_v3 = vadd.f32 %v6757_v50, %v1215_v61  ;;  %v6765_v50 = vld [vmem:[#allocation103_spill] sm:$0xff] }
 0x28e   : > { %v5700_v31 = vpop.permute.xlu1 %2176  ;;  %v5702_v57 = vpop.permute.xlu0 %2174  ;;  %v1291_v10 = vadd.f32 %v6764_v26, %v1266_v52 }
 0x28f   : > { %6755 = vst [vmem:[#allocation39_spill] sm:$0xff] %v5700_v31  ;;  %6756 = vst [vmem:[#allocation38_spill] sm:$0xff] %v5702_v57  ;;  %v1265_v46 = vadd.f32 %v6760_v35, %v1240_v3  ;;  %v1267_v57 = vadd.f32 %v6761_v18, %v1242_v21  ;;  %v2680_v3 = vsel %vm857_vm6, %v2678_v59, %v2679_v41  ;;  %v6769_v18 = vld [vmem:[#allocation106_spill] sm:$0xff] }
 0x290   : > { %2660 = vrot.lane.b32.xlu1 %v2657_v44, %s4104_s8  ;;  %2639 = vrot.lane.b32.xlu0 %v2633_v34, %s4097_s24  ;;  %v1316_v7 = vadd.f32 %v6767_v30, %v1291_v10  ;;  %v2696_v21 = vmul.f32 %v5638_v40, %v2694_v17  ;;  %v2699_v17 = vrot.slane %v2695_v0, 5  ;;  %v6775_v10 = vld [vmem:[#allocation113_spill] sm:$0xff] }
 0x291   : > { %v1290_v44 = vadd.f32 %v6765_v50, %v1265_v46  ;;  %v1292_v34 = vadd.f32 %v6766_v20, %v1267_v57  ;;  %v2715_v57 = vstv %s5704_s27  ;;  %s5897_s27 = sld [smem:[#allocation3 + $0x2b]] }
 0x292   : > { %v5715_v31 = vpop.permute.xlu1 %2199  ;;  %v5717_v61 = vpop.permute.xlu0 %2197  ;;  %v2700_v30 = vrot.slane %v2696_v21, 5  ;;  %v6783_v21 = vld [vmem:[#allocation119_spill] sm:$0xff] }
 0x293   : > { %6762 = vst [vmem:[#allocation40_spill] sm:$0xff] %v5715_v31  ;;  %6763 = vst [vmem:[#allocation41_spill] sm:$0xff] %v5717_v61  ;;  %v1315_v35 = vadd.f32 %v6768_v5, %v1290_v44  ;;  %v1317_v52 = vadd.f32 %v6769_v18, %v1292_v34  ;;  %v6774_v31 = vld [vmem:[#allocation111_spill] sm:$0xff]  ;;  %v2716_v34 = vmul.f32 %v5585_v39, %v2715_v57  ;;  %v6776_v18 = vld [vmem:[#allocation110_spill] sm:$0xff] }
 0x294   : > { %2664 = vrot.lane.b32.xlu1 %v2658_v22, %s4104_s8  ;;  %2662 = vrot.lane.b32.xlu0 %v2659_v24, %s4104_s8  ;;  %v6772_v22 = vld [vmem:[#allocation108_spill] sm:$0xff]  ;;  %v6773_v24 = vld [vmem:[#allocation109_spill] sm:$0xff]  ;;  %v2717_v5 = vmul.f32 %v5638_v40, %v2715_v57 }
 0x295   : > { %v1341_v50 = vadd.f32 %v6772_v22, %v1316_v7  ;;  %v1340_v20 = vadd.f32 %v6773_v24, %v1315_v35  ;;  %v1342_v61 = vadd.f32 %v6774_v31, %v1317_v52  ;;  %v6777_v7 = vld [vmem:[#allocation112_spill] sm:$0xff]  ;;  %v6782_v24 = vld [vmem:[#allocation117_spill] sm:$0xff] }
 0x296   : > { %v5730_v26 = vpop.permute.xlu1 %2222  ;;  %v5732_v46 = vpop.permute.xlu0 %2201 }
 0x297   : > { %6770 = vst [vmem:[#allocation43_spill] sm:$0xff] %v5730_v26  ;;  %6771 = vst [vmem:[#allocation45_spill] sm:$0xff] %v5732_v46  ;;  %v1366_v44 = vadd.f32 %v6775_v10, %v1341_v50  ;;  %v1365_v46 = vadd.f32 %v6776_v18, %v1340_v20  ;;  %v1367_v22 = vadd.f32 %v6777_v7, %v1342_v61  ;;  %v2720_v61 = vrot.slane %v2716_v34, 5  ;;  %v6784_v18 = vld [vmem:[#allocation116_spill] sm:$0xff] }
 0x298   : > { %2683 = vrot.lane.b32.xlu1 %v2680_v3, %s4103_s21  ;;  %2681 = vrot.lane.b32.xlu0 %v2678_v59, %s4103_s21  ;;  %v6780_v3 = vld [vmem:[#allocation114_spill] sm:$0xff]  ;;  %v6781_v59 = vld [vmem:[#allocation115_spill] sm:$0xff]  ;;  %v2701_v20 = vsel %vm857_vm6, %v2699_v17, %v2700_v30  ;;  %v2721_v10 = vrot.slane %v2717_v5, 5  ;;  %v6791_v5 = vld [vmem:[#allocation125_spill] sm:$0xff] }
 0x299   : > { %v1391_v52 = vadd.f32 %v6780_v3, %v1366_v44  ;;  %v1390_v0 = vadd.f32 %v6781_v59, %v1365_v46  ;;  %v1392_v50 = vadd.f32 %v6782_v24, %v1367_v22  ;;  %v6787_v46 = vld [vmem:[#allocation118_spill] sm:$0xff]  ;;  %v6788_v3 = vld [vmem:[#allocation120_spill] sm:$0xff]  ;;  %v6789_v24 = vld [vmem:[#allocation121_spill] sm:$0xff] }
 0x29a   : > { %v5745_v35 = vpop.permute.xlu1 %2226  ;;  %v5747_v31 = vpop.permute.xlu0 %2224 }
 0x29b   : > { %6778 = vst [vmem:[#allocation44_spill] sm:$0xff] %v5745_v35  ;;  %6779 = vst [vmem:[#allocation42_spill] sm:$0xff] %v5747_v31  ;;  %v1416_v57 = vadd.f32 %v6783_v21, %v1391_v52  ;;  %v1415_v7 = vadd.f32 %v6784_v18, %v1390_v0  ;;  %v1417_v22 = vadd.f32 %v6787_v46, %v1392_v50  ;;  %v5770_v21 = vld [vmem:[%s4266_s29 + $0x48] sm:$0xff]  ;;  %v2748_v18 = vstv %s3836_s6  ;;  %v6792_v50 = vld [vmem:[#allocation122_spill] sm:$0xff]  ;;  %s5900_s6 = sld [smem:[#allocation3 + $0xe]] }
 0x29c   : > { %2702 = vrot.lane.b32.xlu1 %v2699_v17, %s4097_s24  ;;  %2685 = vrot.lane.b32.xlu0 %v2679_v41, %s4103_s21  ;;  %v6790_v17 = vld [vmem:[#allocation123_spill] sm:$0xff]  ;;  %v2722_v0 = vsel %vm857_vm6, %v2720_v61, %v2721_v10  ;;  %v6805_v35 = vld [vmem:[#allocation133_spill] sm:$0xff] }
 0x29d   : > { %v1441_v59 = vadd.f32 %v6788_v3, %v1416_v57  ;;  %v1440_v41 = vadd.f32 %v6789_v24, %v1415_v7  ;;  %v1442_v34 = vadd.f32 %v6790_v17, %v1417_v22  ;;  %v6796_v3 = vld [vmem:[#allocation126_spill] sm:$0xff]  ;;  %v6797_v24 = vld [vmem:[#allocation127_spill] sm:$0xff]  ;;  %v2749_v17 = vmul.f32 %v5770_v21, %v2748_v18 }
 0x29e   : > { %v5757_v31 = vpop.permute.xlu1 %2249  ;;  %v5759_v44 = vpop.permute.xlu0 %2247 }
 0x29f   : > { %6785 = vst [vmem:[#allocation46_spill] sm:$0xff] %v5757_v31  ;;  %6786 = vst [vmem:[#allocation49_spill] sm:$0xff] %v5759_v44  ;;  %v1466_v52 = vadd.f32 %v6791_v5, %v1441_v59  ;;  %v1465_v57 = vadd.f32 %v6792_v50, %v1440_v41  ;;  %v6798_v5 = vld [vmem:[#allocation129_spill] sm:$0xff]  ;;  %v6799_v44 = vld [vmem:[#allocation131_spill] sm:$0xff] }
 0x2a0   : > { %2706 = vrot.lane.b32.xlu1 %v2700_v30, %s4097_s24  ;;  %2704 = vrot.lane.b32.xlu0 %v2701_v20, %s4097_s24  ;;  %v6795_v30 = vld [vmem:[#allocation124_spill] sm:$0xff]  ;;  %v5786_v50 = vld [vmem:[%s4266_s29 + $0x58] sm:$0xff] }
 0x2a1   : > { %v1467_v20 = vadd.f32 %v6795_v30, %v1442_v34  ;;  %v1491_v22 = vadd.f32 %v6796_v3, %v1466_v52  ;;  %v1490_v59 = vadd.f32 %v6797_v24, %v1465_v57  ;;  %v6800_v34 = vld [vmem:[#allocation128_spill] sm:$0xff]  ;;  %v6803_v3 = vld [vmem:[#allocation130_spill] sm:$0xff] }
 0x2a2   : > { %v5773_v46 = vpop.permute.xlu1 %2272  ;;  %v5775_v7 = vpop.permute.xlu0 %2251  ;;  %v6804_v24 = vld [vmem:[#allocation132_spill] sm:$0xff] }
 0x2a3   : > { %6793 = vst [vmem:[#allocation47_spill] sm:$0xff] %v5773_v46  ;;  %6794 = vst [vmem:[#allocation50_spill] sm:$0xff] %v5775_v7  ;;  %v1492_v31 = vadd.f32 %v6798_v5, %v1467_v20  ;;  %v1516_v41 = vadd.f32 %v6799_v44, %v1491_v22  ;;  %v5789_v46 = vld [vmem:[%s4266_s29 + $0x50] sm:$0xff]  ;;  %v1515_v30 = vadd.f32 %v6800_v34, %v1490_v59  ;;  %v6806_v59 = vld [vmem:[#allocation135_spill] sm:$0xff]  ;;  %v2768_v34 = vstv %s3837_s20  ;;  %s5941_s20 = sld [smem:[#allocation3 + $0x33]] }
 0x2a4   : > { %2725 = vrot.lane.b32.xlu1 %v2722_v0, %s4104_s8  ;;  %2723 = vrot.lane.b32.xlu0 %v2720_v61, %s4104_s8  ;;  %v2807_v0 = vstv %s3839_s12  ;;  %v2751_v44 = vmul.f32 %v5786_v50, %v2748_v18  ;;  %v2750_v22 = vmul.f32 %v5789_v46, %v2748_v18  ;;  %v2770_v18 = vmul.f32 %v5789_v46, %v2768_v34  ;;  %s5921_s12 = sld [smem:[#allocation3 + $0x2f]] }
 0x2a5   : > { %v1517_v61 = vadd.f32 %v6803_v3, %v1492_v31  ;;  %v1541_v7 = vadd.f32 %v6804_v24, %v1516_v41  ;;  %v1540_v20 = vadd.f32 %v6805_v35, %v1515_v30  ;;  %v6809_v35 = vld [vmem:[#allocation134_spill] sm:$0xff]  ;;  %v6811_v3 = vld [vmem:[#allocation137_spill] sm:$0xff] }
 0x2a6   : > { %v5792_v52 = vpop.permute.xlu1 %2276  ;;  %v5794_v57 = vpop.permute.xlu0 %2274 }
 0x2a7   : > { %6801 = vst [vmem:[#allocation51_spill] sm:$0xff] %v5792_v52  ;;  %6802 = vst [vmem:[#allocation48_spill] sm:$0xff] %v5794_v57  ;;  %v1542_v5 = vadd.f32 %v6806_v59, %v1517_v61  ;;  %v2808_v57 = vmul.f32 %v5770_v21, %v2807_v0  ;;  %v2809_v52 = vmul.f32 %v5789_v46, %v2807_v0 }
 0x2a8   : > { %2755 = vrot.lane.b32.xlu1 %v2749_v17, %s4097_s24  ;;  %2727 = vrot.lane.b32.xlu0 %v2721_v10, %s4104_s8  ;;  %v1565_v17 = vadd.f32 %v6809_v35, %v1540_v20  ;;  %v6810_v10 = vld [vmem:[#allocation136_spill] sm:$0xff]  ;;  %v1566_v24 = vadd.f32 %v6811_v3, %v1541_v7  ;;  %v2769_v61 = vmul.f32 %v5770_v21, %v2768_v34  ;;  %v6813_v20 = vld [vmem:[#allocation138_spill] sm:$0xff] }
 0x2a9   : > { %v1567_v30 = vadd.f32 %v6810_v10, %v1542_v5  ;;  %v2810_v59 = vmul.f32 %v5786_v50, %v2807_v0  ;;  %v2814_v26 = vrot.slane %v2808_v57, 1  ;;  %v2815_v55 = vrot.slane %v2809_v52, 1 }
 0x2aa   : > { %v5806_v31 = vpop.permute.xlu1 %2299  ;;  %v5808_v41 = vpop.permute.xlu0 %2297  ;;  %v1591_v35 = vadd.f32 %v6813_v20, %v1566_v24  ;;  %v2771_v52 = vmul.f32 %v5786_v50, %v2768_v34  ;;  %v2834_v0 = vmul.f32 %v5789_v46, %v2832_v15  ;;  %v2833_v20 = vmul.f32 %v5770_v21, %v2832_v15 }
 0x2ab   : > { %6807 = vst [vmem:[#allocation52_spill] sm:$0xff] %v5806_v31  ;;  %6808 = vst [vmem:[#allocation55_spill] sm:$0xff] %v5808_v41  ;;  %v6812_v31 = vld [vmem:[#allocation139_spill] sm:$0xff]  ;;  %v2817_v57 = vrot.slane %v2810_v59, 1  ;;  %v2816_v24 = vsel %vm265_vm0, %v2814_v26, %v2815_v55  ;;  %v2876_v34 = vstv %s5810_s5  ;;  %v6822_v59 = vld [vmem:[#allocation146_spill] sm:$0xff]  ;;  %s5967_s5 = sld [smem:[#allocation3 + $0x37]] }
 0x2ac   : > { %2759 = vrot.lane.b32.xlu1 %v2751_v44, %s4097_s24  ;;  %2757 = vrot.lane.b32.xlu0 %v2750_v22, %s4097_s24  ;;  %v1590_v41 = vadd.f32 %v6812_v31, %v1565_v17  ;;  %v6814_v44 = vld [vmem:[#allocation140_spill] sm:$0xff]  ;;  %v6815_v22 = vld [vmem:[#allocation141_spill] sm:$0xff]  ;;  %v1616_v53 = vadd.f32 %v6816_v9, %v1591_v35 }
 0x2ad   : > { %v1592_v3 = vadd.f32 %v6815_v22, %v1567_v30  ;;  %v6817_v31 = vld [vmem:[#allocation145_spill] sm:$0xff]  ;;  %v6818_v30 = vld [vmem:[#allocation142_spill] sm:$0xff]  ;;  %v6819_v9 = vld [vmem:[#allocation144_spill] sm:$0xff] }
 0x2ae   : > { %v5822_v5 = vpop.permute.xlu1 %2322  ;;  %v5824_v7 = vpop.permute.xlu0 %2301  ;;  %v1615_v10 = vadd.f32 %v6814_v44, %v1590_v41  ;;  %v2835_v41 = vmul.f32 %v5786_v50, %v2832_v15  ;;  %v1641_v35 = vadd.f32 %v6819_v9, %v1616_v53  ;;  %v2818_v15 = vsel %vm265_vm0, %v2815_v55, %v2817_v57 }
 0x2af   : > { %v1617_v44 = vadd.f32 %v6818_v30, %v1592_v3  ;;  %v2840_v53 = vrot.slane %v2834_v0, 1  ;;  %v2839_v30 = vrot.slane %v2833_v20, 1  ;;  %v2877_v9 = vmul.f32 %v5770_v21, %v2876_v34 }
 0x2b0   : > { %2777 = vrot.lane.b32.xlu1 %v2770_v18, %s4098_s30  ;;  %2775 = vrot.lane.b32.xlu0 %v2769_v61, %s4098_s30  ;;  %v1640_v17 = vadd.f32 %v6817_v31, %v1615_v10  ;;  %v6823_v10 = vld [vmem:[#allocation147_spill] sm:$0xff]  ;;  %v1666_v26 = vadd.f32 %v5223_v63, %v1641_v35  ;;  %v2842_v3 = vrot.slane %v2835_v41, 1  ;;  %v2879_v0 = vmul.f32 %v5786_v50, %v2876_v34 }
 0x2b1   : > { %v1642_v31 = vadd.f32 %v6823_v10, %v1617_v44  ;;  %v2883_v41 = vrot.slane %v2877_v9, 2 }
 0x2b2   : > { %v5839_v18 = vpop.permute.xlu1 %2326  ;;  %v5841_v61 = vpop.permute.xlu0 %2324  ;;  %v1665_v22 = vadd.f32 %v6822_v59, %v1640_v17  ;;  %v1691_v17 = vadd.f32 %v5234_v42, %v1666_v26  ;;  %v2841_v42 = vsel %vm265_vm0, %v2839_v30, %v2840_v53 }
 0x2b3   : > { %6820 = vst [vmem:[#allocation56_spill] sm:$0xff] %v5839_v18  ;;  %6821 = vst [vmem:[#allocation57_spill] sm:$0xff] %v5841_v61  ;;  %v2878_v61 = vmul.f32 %v5789_v46, %v2876_v34  ;;  %v1667_v18 = vadd.f32 %v5221_v28, %v1642_v31  ;;  %v2843_v28 = vsel %vm265_vm0, %v2840_v53, %v2842_v3 }
 0x2b4   : > { %2819 = vrot.lane.b32.xlu1 %v2816_v24, %s4097_s24  ;;  %2779 = vrot.lane.b32.xlu0 %v2771_v52, %s4098_s30  ;;  %v6824_v24 = vld [vmem:[#allocation148_spill] sm:$0xff]  ;;  %v1712_v52 = vadd.f32 %v5271_v2, %v1691_v17 }
 0x2b5   : > { %v1690_v35 = vadd.f32 %v6824_v24, %v1665_v22  ;;  %v1692_v55 = vadd.f32 %v5256_v62, %v1667_v18  ;;  %v2884_v20 = vrot.slane %v2878_v61, 2  ;;  %v2901_v22 = vstv %s5844_s11  ;;  %s6022_s11 = sld [smem:[#allocation3 + $0x3f]] }
 0x2b6   : > { %v5856_v44 = vpop.permute.xlu1 %2349  ;;  %v5858_v63 = vpop.permute.xlu0 %2347  ;;  %v1733_v2 = vadd.f32 %v5284_v51, %v1712_v52  ;;  %v2903_v51 = vmul.f32 %v5789_v46, %v2901_v22  ;;  %v5886_v61 = vmul.f32 %v5786_v50, %v2901_v22  ;;  %v2902_v26 = vmul.f32 %v5770_v21, %v2901_v22 }
 0x2b7   : > { %v1711_v59 = vadd.f32 %v5254_v19, %v1690_v35  ;;  %v1713_v62 = vadd.f32 %v5269_v8, %v1692_v55  ;;  %v2886_v19 = vrot.slane %v2879_v0, 2  ;;  %v2885_v8 = vsel %vm335_vm1, %v2883_v41, %v2884_v20 }
 0x2b8   : > { %2823 = vrot.lane.b32.xlu1 %v2817_v57, %s4097_s24  ;;  %2821 = vrot.lane.b32.xlu0 %v2818_v15, %s4097_s24  ;;  %v1754_v31 = vadd.f32 %v5313_v29, %v1733_v2  ;;  %v2911_v17 = vrot.slane %v5886_v61, 2  ;;  %v2908_v24 = vrot.slane %v2902_v26, 2  ;;  %v2926_v35 = vstv %s5868_s13  ;;  %s6046_s13 = sld [smem:[#allocation3 + $0x43]] }
 0x2b9   : > { %v1732_v34 = vadd.f32 %v5286_v60, %v1711_v59  ;;  %v1734_v10 = vadd.f32 %v5301_v32, %v1713_v62  ;;  %v2928_v0 = vmul.f32 %v5789_v46, %v2926_v35  ;;  %v2951_v2 = vstv %s5897_s27  ;;  %s6105_s27 = sld [smem:[#allocation3 + $0x4b]] }
 0x2ba   : > { %v5873_v18 = vpop.permute.xlu1 %2372  ;;  %v5875_v57 = vpop.permute.xlu0 %2351  ;;  %v1779_v32 = vadd.f32 %v5323_v16, %v1754_v31  ;;  %v2909_v16 = vrot.slane %v2903_v51, 2  ;;  %v2953_v51 = vmul.f32 %v5789_v46, %v2951_v2 }
 0x2bb   : > { %v1753_v60 = vadd.f32 %v5299_v43, %v1732_v34  ;;  %v1755_v53 = vadd.f32 %v5311_v54, %v1734_v10  ;;  %v2887_v43 = vsel %vm335_vm1, %v2884_v20, %v2886_v19  ;;  %v1899_v20 = vstv %s5891_s28  ;;  %s6068_s28 = sld [smem:[#allocation3 + $0x47]] }
 0x2bc   : > { %2846 = vrot.lane.b32.xlu1 %v2843_v28, %s4098_s30  ;;  %2844 = vrot.lane.b32.xlu0 %v2841_v42, %s4098_s30  ;;  %v1804_v9 = vadd.f32 %v5354_v47, %v1779_v32  ;;  %v2929_v28 = vmul.f32 %v5786_v50, %v2926_v35  ;;  %v2912_v42 = vsel %vm335_vm1, %v2909_v16, %v2911_v17  ;;  %v1947_v10 = vstv %s5900_s6  ;;  %s6131_s6 = sld [smem:[#allocation3 + $0x4f]] }
 0x2bd   : > { %v1778_v30 = vadd.f32 %v5325_v49, %v1753_v60  ;;  %v1780_v47 = vadd.f32 %v5340_v14, %v1755_v53  ;;  %v2934_v31 = vrot.slane %v2928_v0, 7  ;;  %v5949_v61 = vmul.f32 %v5638_v40, %v1947_v10 }
 0x2be   : > { %v5893_v29 = vpop.permute.xlu1 %2376  ;;  %v5895_v15 = vpop.permute.xlu0 %2374  ;;  %v1829_v52 = vadd.f32 %v5365_v56, %v1804_v9  ;;  %v2910_v56 = vsel %vm335_vm1, %v2908_v24, %v2909_v16  ;;  %v2954_v9 = vmul.f32 %v5786_v50, %v2951_v2 }
 0x2bf   : > { %v1803_v49 = vadd.f32 %v5338_v13, %v1778_v30  ;;  %v1805_v41 = vadd.f32 %v5352_v12, %v1780_v47  ;;  %v2976_v30 = vstv %s5921_s12  ;;  %s6166_s12 = sld [smem:[#allocation3 + $0x57]] }
 0x2c0   : > { %2888 = vrot.lane.b32.xlu1 %v2885_v8, %s4097_s24  ;;  %2848 = vrot.lane.b32.xlu0 %v2842_v3, %s4098_s30  ;;  %v2927_v3 = vmul.f32 %v5770_v21, %v2926_v35  ;;  %v1850_v14 = vadd.f32 %v5399_v36, %v1829_v52  ;;  %v2959_v35 = vrot.slane %v2953_v51, 7 }
 0x2c1   : > { %v1828_v13 = vadd.f32 %v5367_v45, %v1803_v49  ;;  %v1901_v45 = vmul.f32 %v5585_v39, %v1899_v20  ;;  %v1830_v36 = vadd.f32 %v5382_v4, %v1805_v41  ;;  %v1948_v49 = vmul.f32 %v5579_v11, %v1947_v10 }
 0x2c2   : > { %v5909_v55 = vpop.permute.xlu1 %2399  ;;  %v5911_v54 = vpop.permute.xlu0 %2397  ;;  %v1871_v34 = vadd.f32 %v5412_v6, %v1850_v14  ;;  %v2933_v12 = vrot.slane %v2927_v3, 7  ;;  %v2952_v6 = vmul.f32 %v5770_v21, %v2951_v2  ;;  %v2977_v3 = vmul.f32 %v5770_v21, %v2976_v30 }
 0x2c3   : > { %v1849_v22 = vadd.f32 %v5380_v33, %v1828_v13  ;;  %v1851_v4 = vadd.f32 %v5397_v38, %v1830_v36  ;;  %v2978_v13 = vmul.f32 %v5789_v46, %v2976_v30  ;;  %v2979_v41 = vmul.f32 %v5786_v50, %v2976_v30  ;;  %v6825_v36 = vld [vmem:[#allocation13_spill] sm:$0xff] }
 0x2c4   : > { %2892 = vrot.lane.b32.xlu1 %v2886_v19, %s4097_s24  ;;  %2890 = vrot.lane.b32.xlu0 %v2887_v43, %s4097_s24  ;;  %v2936_v19 = vrot.slane %v2929_v28, 7  ;;  %v1892_v33 = vadd.f32 %v5445_v48, %v1871_v34  ;;  %v1949_v48 = vmul.f32 %v5585_v39, %v1947_v10  ;;  %v2935_v16 = vsel %vm405_vm2, %v2933_v12, %v2934_v31 }
 0x2c5   : > { %v1870_v8 = vadd.f32 %v5414_v25, %v1849_v22  ;;  %v1900_v25 = vmul.f32 %v5579_v11, %v1899_v20  ;;  %v1872_v53 = vadd.f32 %v5427_v37, %v1851_v4  ;;  %v2958_v24 = vrot.slane %v2952_v6, 7 }
 0x2c6   : > { %v5929_v59 = vpop.permute.xlu1 %2422  ;;  %v5931_v62 = vpop.permute.xlu0 %2401  ;;  %v2937_v38 = vsel %vm405_vm2, %v2934_v31, %v2936_v19  ;;  %v1904_v43 = vadd.f32 %v1901_v45, %v1892_v33  ;;  %v1955_v0 = vrot.slane %v1949_v48, 1  ;;  %v2961_v28 = vrot.slane %v2954_v9, 7  ;;  %v6826_v31 = vld [vmem:[#allocation16_spill] sm:$0xff] }
 0x2c7   : > { %v1891_v32 = vadd.f32 %v5425_v27, %v1870_v8  ;;  %v1902_v27 = vmul.f32 %v5638_v40, %v1899_v20  ;;  %v1893_v37 = vadd.f32 %v5443_v58, %v1872_v53  ;;  %v3001_v58 = vstv %s5941_s20  ;;  %s6204_s20 = sld [smem:[#allocation3 + $0x5b]] }
 0x2c8   : > { %2915 = vrot.lane.b32.xlu1 %v2912_v42, %s4098_s30  ;;  %2913 = vrot.lane.b32.xlu0 %v2910_v56, %s4098_s30  ;;  %v1924_v42 = vadd.f32 %v5457_v23, %v1904_v43  ;;  %v2960_v56 = vsel %vm405_vm2, %v2958_v24, %v2959_v35  ;;  %v1954_v2 = vrot.slane %v1948_v49, 1  ;;  %v2016_v34 = vstv %s5951_s4  ;;  %s6229_s4 = sld [smem:[#allocation3 + $0x5f]] }
 0x2c9   : > { %v1903_v14 = vadd.f32 %v1900_v25, %v1891_v32  ;;  %v1905_v20 = vadd.f32 %v1902_v27, %v1893_v37  ;;  %v2983_v8 = vrot.slane %v2977_v3, 7  ;;  %v3003_v23 = vmul.f32 %v5789_v46, %v3001_v58  ;;  %v6828_v32 = vld [vmem:[#allocation12_spill] sm:$0xff]  ;;  %v6829_v27 = vld [vmem:[#allocation14_spill] sm:$0xff] }
 0x2ca   : > { %v5953_v26 = vpop.permute.xlu1 %2426  ;;  %v5955_v60 = vpop.permute.xlu0 %2424  ;;  %v1944_v19 = vadd.f32 %v6826_v31, %v1924_v42  ;;  %v2962_v33 = vsel %vm405_vm2, %v2959_v35, %v2961_v28  ;;  %v2984_v6 = vrot.slane %v2978_v13, 7  ;;  %v5998_v51 = vmul.f32 %v5786_v50, %v3001_v58 }
 0x2cb   : > { %v3002_v4 = vmul.f32 %v5770_v21, %v3001_v58  ;;  %v1925_v48 = vadd.f32 %v6828_v32, %v1905_v20  ;;  %v2986_v53 = vrot.slane %v2979_v41, 7  ;;  %v1956_v30 = vsel %vm265_vm0, %v1954_v2, %v1955_v0 }
 0x2cc   : > { %2938 = vrot.lane.b32.xlu1 %v2933_v12, %s4099_s10  ;;  %2917 = vrot.lane.b32.xlu0 %v2911_v17, %s4098_s30  ;;  %v1957_v17 = vrot.slane %v5949_v61, 1  ;;  %v1923_v12 = vadd.f32 %v6825_v36, %v1903_v14  ;;  %v6827_v61 = vld [vmem:[#allocation15_spill] sm:$0xff]  ;;  %s6004_s30 = sld [smem:[#allocation3 + $0x3b]]  ;;  %v2017_v9 = vmul.f32 %v5579_v11, %v2016_v34  ;;  %v2018_v43 = vmul.f32 %v5585_v39, %v2016_v34  ;;  %v6831_v36 = vld [vmem:[#allocation18_spill] sm:$0xff] }
 0x2cd   : > { %v1945_v37 = vadd.f32 %v6829_v27, %v1925_v48  ;;  %v3009_v3 = vrot.slane %v3003_v23, 1  ;;  %v3008_v28 = vrot.slane %v3002_v4, 1  ;;  %v2987_v13 = vsel %vm405_vm2, %v2984_v6, %v2986_v53  ;;  %v6833_v4 = vld [vmem:[#allocation21_spill] sm:$0xff] }
 0x2ce   : > { %v5973_v47 = vpop.permute.xlu1 %2449  ;;  %v5975_v52 = vpop.permute.xlu0 %2447  ;;  %v1958_v22 = vsel %vm265_vm0, %v1955_v0, %v1957_v17  ;;  %v1943_v25 = vadd.f32 %v6827_v61, %v1923_v12  ;;  %v3011_v0 = vrot.slane %v5998_v51, 1  ;;  %v2985_v58 = vsel %vm405_vm2, %v2983_v8, %v2984_v6  ;;  %v6832_v6 = vld [vmem:[#allocation19_spill] sm:$0xff]  ;;  %v6834_v61 = vld [vmem:[#allocation22_spill] sm:$0xff] }
 0x2cf   : > { %v1963_v49 = vadd.f32 %v1958_v22, %v1944_v19  ;;  %v2023_v14 = vrot.slane %v2017_v9, 2  ;;  %v2024_v42 = vrot.slane %v2018_v43, 2  ;;  %v1964_v2 = vadd.f32 %v1957_v17, %v1945_v37  ;;  %v6830_v22 = vld [vmem:[#allocation17_spill] sm:$0xff]  ;;  %v6835_v9 = vld [vmem:[#allocation20_spill] sm:$0xff] }
 0x2d0   : > { %2942 = vrot.lane.b32.xlu1 %v2937_v38, %s4099_s10  ;;  %2940 = vrot.lane.b32.xlu0 %v2935_v16, %s4099_s10  ;;  %v3026_v38 = vstv %s5967_s5  ;;  %v2019_v16 = vmul.f32 %v5638_v40, %v2016_v34  ;;  %v1962_v40 = vadd.f32 %v1956_v30, %v1943_v25  ;;  %v3012_v19 = vsel %vm265_vm0, %v3009_v3, %v3011_v0  ;;  %s6246_s5 = sld [smem:[#allocation3 + $0x3]] }
 0x2d1   : > { %v3027_v11 = vmul.f32 %v5770_v21, %v3026_v38  ;;  %v3028_v39 = vmul.f32 %v5789_v46, %v3026_v38  ;;  %v1988_v34 = vadd.f32 %v6830_v22, %v1963_v49  ;;  %v3029_v31 = vmul.f32 %v5786_v50, %v3026_v38 }
 0x2d2   : > { %v5987_v45 = vpop.permute.xlu1 %2472  ;;  %v5989_v10 = vpop.permute.xlu0 %2451  ;;  %v1987_v12 = vadd.f32 %v6831_v36, %v1962_v40  ;;  %v1989_v17 = vadd.f32 %v6833_v4, %v1964_v2  ;;  %v3051_v32 = vstv %s6004_s30  ;;  %v2025_v48 = vsel %vm335_vm1, %v2023_v14, %v2024_v42  ;;  %v6836_v14 = vld [vmem:[#allocation25_spill] sm:$0xff]  ;;  %s6252_s30 = sld [smem:[#allocation3 + $0x63]] }
 0x2d3   : > { %v3033_v23 = vrot.slane %v3027_v11, 1  ;;  %v2013_v25 = vadd.f32 %v6834_v61, %v1988_v34  ;;  %v3053_v37 = vmul.f32 %v5789_v46, %v3051_v32  ;;  %v3054_v49 = vmul.f32 %v5786_v50, %v3051_v32  ;;  %v6841_v61 = vld [vmem:[#allocation28_spill] sm:$0xff] }
 0x2d4   : > { %2965 = vrot.lane.b32.xlu1 %v2960_v56, %s4097_s24  ;;  %2963 = vrot.lane.b32.xlu0 %v2958_v24, %s4097_s24  ;;  %v2026_v56 = vrot.slane %v2019_v16, 2  ;;  %v2012_v51 = vadd.f32 %v6832_v6, %v1987_v12  ;;  %v2014_v43 = vadd.f32 %v6835_v9, %v1989_v17  ;;  %v3036_v16 = vrot.slane %v3029_v31, 1  ;;  %v6837_v31 = vld [vmem:[#allocation23_spill] sm:$0xff] }
 0x2d5   : > { %v3052_v11 = vmul.f32 %v5770_v21, %v3051_v32  ;;  %v3059_v22 = vrot.slane %v3053_v37, 1  ;;  %v3061_v34 = vrot.slane %v3054_v49, 1  ;;  %v6842_v32 = vld [vmem:[#allocation30_spill] sm:$0xff]  ;;  %v6843_v49 = vld [vmem:[#allocation29_spill] sm:$0xff] }
 0x2d6   : > { %v6010_v24 = vpop.permute.xlu1 %2476  ;;  %v6012_v35 = vpop.permute.xlu0 %2474  ;;  %v2027_v53 = vsel %vm335_vm1, %v2024_v42, %v2026_v56 }
 0x2d7   : > { %v3062_v9 = vsel %vm265_vm0, %v3059_v22, %v3061_v34 }
 0x2d8   : > { %2988 = vrot.lane.b32.xlu1 %v2983_v8, %s4100_s23  ;;  %2967 = vrot.lane.b32.xlu0 %v2962_v33, %s4097_s24  ;;  %v3010_v8 = vsel %vm265_vm0, %v3008_v28, %v3009_v3  ;;  %v3034_v33 = vrot.slane %v3028_v39, 1  ;;  %v2031_v3 = vadd.f32 %v2025_v48, %v2012_v51  ;;  %v2032_v28 = vadd.f32 %v2027_v53, %v2013_v25 }
 0x2d9   : > { %v3076_v39 = vstv %s6022_s11  ;;  %v3058_v51 = vrot.slane %v3052_v11, 1  ;;  %v3101_v53 = vstv %s6046_s13  ;;  %s6265_s11 = sld [smem:[#allocation3 + $0xf]] }
 0x2da   : > { %v6024_v41 = vpop.permute.xlu1 %2499  ;;  %v6026_v20 = vpop.permute.xlu0 %2497  ;;  %v3035_v27 = vsel %vm265_vm0, %v3033_v23, %v3034_v33  ;;  %v2056_v42 = vadd.f32 %v6836_v14, %v2031_v3  ;;  %v3037_v2 = vsel %vm265_vm0, %v3034_v33, %v3036_v16  ;;  %v3077_v36 = vmul.f32 %v5770_v21, %v3076_v39  ;;  %s6281_s13 = sld [smem:[#allocation3 + $0x67]] }
 0x2db   : > { %v3078_v12 = vmul.f32 %v5789_v46, %v3076_v39  ;;  %v3079_v37 = vmul.f32 %v5786_v50, %v3076_v39  ;;  %v6847_v39 = vld [vmem:[#allocation34_spill] sm:$0xff] }
 0x2dc   : > { %2992 = vrot.lane.b32.xlu1 %v2987_v13, %s4100_s23  ;;  %2990 = vrot.lane.b32.xlu0 %v2985_v58, %s4100_s23  ;;  %v2033_v58 = vadd.f32 %v2026_v56, %v2014_v43  ;;  %v6839_v56 = vld [vmem:[#allocation24_spill] sm:$0xff]  ;;  %v3083_v43 = vrot.slane %v3077_v36, 3 }
 0x2de   : > { %v6041_v38 = vpop.permute.xlu1 %2522  ;;  %v6043_v30 = vpop.permute.xlu0 %2501  ;;  %v2058_v6 = vadd.f32 %v6839_v56, %v2033_v58  ;;  %v6845_v58 = vld [vmem:[#allocation33_spill] sm:$0xff]  ;;  %v3086_v56 = vrot.slane %v3079_v37, 3 }
 0x2e0   : > { %3015 = vrot.lane.b32.xlu1 %v3012_v19, %s4099_s10  ;;  %3013 = vrot.lane.b32.xlu0 %v3010_v8, %s4099_s10  ;;  %v2057_v19 = vadd.f32 %v6837_v31, %v2032_v28  ;;  %v6838_v8 = vld [vmem:[#allocation27_spill] sm:$0xff] }
 0x2e1   : > { %v2081_v23 = vadd.f32 %v6838_v8, %v2056_v42  ;;  %v6844_v28 = vld [vmem:[#allocation31_spill] sm:$0xff]  ;;  %v3060_v42 = vsel %vm265_vm0, %v3058_v51, %v3059_v22 }
 0x2e2   : > { %v6055_v40 = vpop.permute.xlu1 %2526  ;;  %v6057_v13 = vpop.permute.xlu0 %2524  ;;  %v2082_v25 = vadd.f32 %v6841_v61, %v2057_v19  ;;  %v6848_v51 = vld [vmem:[#allocation35_spill] sm:$0xff]  ;;  %v6850_v61 = vld [vmem:[#allocation37_spill] sm:$0xff] }
 0x2e3   : > { %v2106_v48 = vadd.f32 %v6842_v32, %v2081_v23  ;;  %v6095_v23 = vmul.f32 %v5786_v50, %v3101_v53  ;;  %v3126_v32 = vstv %s6068_s28  ;;  %s6301_s28 = sld [smem:[#allocation3 + $0x1b]] }
 0x2e4   : > { %3038 = vrot.lane.b32.xlu1 %v3035_v27, %s4097_s24  ;;  %3017 = vrot.lane.b32.xlu0 %v3011_v0, %s4099_s10  ;;  %v6840_v0 = vld [vmem:[#allocation26_spill] sm:$0xff]  ;;  %v3084_v27 = vrot.slane %v3078_v12, 3  ;;  %v2107_v3 = vadd.f32 %v6843_v49, %v2082_v25  ;;  %v6846_v12 = vld [vmem:[#allocation32_spill] sm:$0xff] }
 0x2e5   : > { %v2083_v17 = vadd.f32 %v6840_v0, %v2058_v6  ;;  %v2131_v11 = vadd.f32 %v6844_v28, %v2106_v48  ;;  %v3102_v6 = vmul.f32 %v5770_v21, %v3101_v53 }
 0x2e6   : > { %v6070_v33 = vpop.permute.xlu1 %2545  ;;  %v6072_v4 = vpop.permute.xlu0 %2543  ;;  %v2132_v19 = vadd.f32 %v6846_v12, %v2107_v3  ;;  %v3085_v22 = vsel %vm556_vm3, %v3083_v43, %v3084_v27  ;;  %v6851_v3 = vld [vmem:[#allocation39_spill] sm:$0xff]  ;;  %v6852_v43 = vld [vmem:[#allocation38_spill] sm:$0xff]  ;;  %v6854_v12 = vld [vmem:[#allocation40_spill] sm:$0xff] }
 0x2e7   : > { %v2108_v14 = vadd.f32 %v6845_v58, %v2083_v17  ;;  %v2156_v8 = vadd.f32 %v6847_v39, %v2131_v11  ;;  %v6849_v17 = vld [vmem:[#allocation36_spill] sm:$0xff]  ;;  %v6853_v11 = vld [vmem:[#allocation41_spill] sm:$0xff]  ;;  %v3111_v58 = vrot.slane %v6095_v23, 3 }
 0x2e8   : > { %3042 = vrot.lane.b32.xlu1 %v3036_v16, %s4097_s24  ;;  %3040 = vrot.lane.b32.xlu0 %v3037_v2, %s4097_s24  ;;  %v3103_v2 = vmul.f32 %v5789_v46, %v3101_v53  ;;  %v2157_v0 = vadd.f32 %v6848_v51, %v2132_v19 }
 0x2e9   : > { %v2133_v36 = vadd.f32 %v5655_v1, %v2108_v14  ;;  %v2181_v1 = vadd.f32 %v6849_v17, %v2156_v8  ;;  %v3108_v14 = vrot.slane %v3102_v6, 3  ;;  %v6856_v8 = vld [vmem:[#allocation45_spill] sm:$0xff]  ;;  %v6858_v6 = vld [vmem:[#allocation42_spill] sm:$0xff] }
 0x2ea   : > { %v6086_v31 = vpop.permute.xlu1 %2564  ;;  %v6088_v16 = vpop.permute.xlu0 %2547  ;;  %v2182_v37 = vadd.f32 %v6852_v43, %v2157_v0  ;;  %v3087_v0 = vsel %vm556_vm3, %v3084_v27, %v3086_v56 }
 0x2eb   : > { %v2158_v25 = vadd.f32 %v6850_v61, %v2133_v36  ;;  %v2206_v53 = vadd.f32 %v6853_v11, %v2181_v1  ;;  %v3128_v36 = vmul.f32 %v5789_v46, %v3126_v32  ;;  %v6859_v61 = vld [vmem:[#allocation49_spill] sm:$0xff]  ;;  %v6860_v11 = vld [vmem:[#allocation46_spill] sm:$0xff] }
 0x2ec   : > { %3065 = vrot.lane.b32.xlu1 %v3062_v9, %s4100_s23  ;;  %3063 = vrot.lane.b32.xlu0 %v3060_v42, %s4100_s23  ;;  %v3109_v9 = vrot.slane %v3103_v2, 3  ;;  %v3127_v42 = vmul.f32 %v5770_v21, %v3126_v32  ;;  %v2207_v19 = vadd.f32 %v6854_v12, %v2182_v37  ;;  %v6855_v2 = vld [vmem:[#allocation43_spill] sm:$0xff]  ;;  %v3129_v37 = vmul.f32 %v5786_v50, %v3126_v32 }
 0x2ed   : > { %v2183_v28 = vadd.f32 %v6851_v3, %v2158_v25  ;;  %v2231_v39 = vadd.f32 %v6855_v2, %v2206_v53  ;;  %v3134_v43 = vrot.slane %v3128_v36, 3  ;;  %v6861_v12 = vld [vmem:[#allocation47_spill] sm:$0xff]  ;;  %v6862_v2 = vld [vmem:[#allocation50_spill] sm:$0xff] }
 0x2ee   : > { %v6107_v48 = vpop.permute.xlu1 %2568  ;;  %v6109_v49 = vpop.permute.xlu0 %2566  ;;  %v2232_v1 = vadd.f32 %v6858_v6, %v2207_v19  ;;  %v3112_v3 = vsel %vm556_vm3, %v3109_v9, %v3111_v58  ;;  %v3110_v27 = vsel %vm556_vm3, %v3108_v14, %v3109_v9  ;;  %v6865_v9 = vld [vmem:[#allocation55_spill] sm:$0xff] }
 0x2ef   : > { %v2208_v51 = vadd.f32 %v6856_v8, %v2183_v28  ;;  %v2256_v25 = vadd.f32 %v6859_v61, %v2231_v39  ;;  %v3133_v28 = vrot.slane %v3127_v42, 3  ;;  %v3151_v8 = vstv %s6105_s27  ;;  %s6312_s27 = sld [smem:[#allocation3 + $0x6b]] }
 0x2f0   : > { %3088 = vrot.lane.b32.xlu1 %v3085_v22, %s4099_s10  ;;  %3067 = vrot.lane.b32.xlu0 %v3061_v34, %s4100_s23  ;;  %v6857_v22 = vld [vmem:[#allocation44_spill] sm:$0xff]  ;;  %v2257_v53 = vadd.f32 %v6860_v11, %v2232_v1  ;;  %v3152_v42 = vmul.f32 %v5770_v21, %v3151_v8  ;;  %v3153_v36 = vmul.f32 %v5789_v46, %v3151_v8 }
 0x2f1   : > { %v2233_v34 = vadd.f32 %v6857_v22, %v2208_v51  ;;  %v2281_v19 = vadd.f32 %v6861_v12, %v2256_v25  ;;  %v3135_v32 = vsel %vm556_vm3, %v3133_v28, %v3134_v43  ;;  %v6868_v28 = vld [vmem:[#allocation57_spill] sm:$0xff] }
 0x2f2   : > { %v6123_v17 = vpop.permute.xlu1 %2587  ;;  %v6125_v23 = vpop.permute.xlu0 %2585 }
 0x2f3   : > { %v2258_v39 = vadd.f32 %v6862_v2, %v2233_v34  ;;  %v2306_v14 = vadd.f32 %v6865_v9, %v2281_v19  ;;  %v6866_v34 = vld [vmem:[#allocation52_spill] sm:$0xff] }
 0x2f4   : > { %3092 = vrot.lane.b32.xlu1 %v3086_v56, %s4099_s10  ;;  %3090 = vrot.lane.b32.xlu0 %v3087_v0, %s4099_s10  ;;  %v6863_v56 = vld [vmem:[#allocation51_spill] sm:$0xff]  ;;  %v6864_v0 = vld [vmem:[#allocation48_spill] sm:$0xff]  ;;  %s6156_s10 = sld [smem:[#allocation3 + $0x53]] }
 0x2f5   : > { %v2283_v6 = vadd.f32 %v6863_v56, %v2258_v39  ;;  %v2282_v61 = vadd.f32 %v6864_v0, %v2257_v53  ;;  %v2331_v25 = vadd.f32 %v5822_v5, %v2306_v14  ;;  %v3136_v53 = vrot.slane %v3129_v37, 3 }
 0x2f6   : > { %v6141_v51 = vpop.permute.xlu1 %2610  ;;  %v6143_v22 = vpop.permute.xlu0 %2589  ;;  %v3176_v56 = vstv %s6131_s6  ;;  %v3158_v5 = vrot.slane %v3152_v42, 6  ;;  %v3154_v37 = vmul.f32 %v5786_v50, %v3151_v8  ;;  %s6349_s6 = sld [smem:[#allocation3 + $0x73]] }
 0x2f7   : > { %v2307_v1 = vadd.f32 %v6866_v34, %v2282_v61  ;;  %v2308_v11 = vadd.f32 %v5824_v7, %v2283_v6  ;;  %v2356_v39 = vadd.f32 %v5858_v63, %v2331_v25  ;;  %v3159_v7 = vrot.slane %v3153_v36, 6 }
 0x2f8   : > { %3115 = vrot.lane.b32.xlu1 %v3112_v3, %s4097_s24  ;;  %3113 = vrot.lane.b32.xlu0 %v3110_v27, %s4097_s24  ;;  %v6867_v27 = vld [vmem:[#allocation56_spill] sm:$0xff]  ;;  %v3137_v9 = vsel %vm556_vm3, %v3134_v43, %v3136_v53  ;;  %v3179_v43 = vmul.f32 %v5786_v50, %v3176_v56 }
 0x2f9   : > { %v2333_v19 = vadd.f32 %v6867_v27, %v2308_v11  ;;  %v2332_v2 = vadd.f32 %v6868_v28, %v2307_v1  ;;  %v2381_v0 = vadd.f32 %v5873_v18, %v2356_v39  ;;  %v3161_v18 = vrot.slane %v3154_v37, 6 }
 0x2fa   : > { %v6158_v12 = vpop.permute.xlu1 %2614  ;;  %v6160_v3 = vpop.permute.xlu0 %2612  ;;  %v3201_v34 = vstv %s6156_s10  ;;  %s3865_s10 = sld [smem:[#allocation3 + $0x7b]] }
 0x2fb   : > { %v2357_v6 = vadd.f32 %v5856_v44, %v2332_v2  ;;  %v2358_v61 = vadd.f32 %v5875_v57, %v2333_v19  ;;  %v2406_v8 = vadd.f32 %v5911_v54, %v2381_v0  ;;  %v3160_v44 = vsel %vm632_vm4, %v3158_v5, %v3159_v7 }
 0x2fc   : > { %3138 = vrot.lane.b32.xlu1 %v3135_v32, %s4100_s23  ;;  %3117 = vrot.lane.b32.xlu0 %v3111_v58, %s4097_s24  ;;  %v3177_v32 = vmul.f32 %v5770_v21, %v3176_v56  ;;  %v3178_v57 = vmul.f32 %v5789_v46, %v3176_v56  ;;  %v3226_v19 = vstv %s6166_s12  ;;  %v3202_v28 = vmul.f32 %v5770_v21, %v3201_v34  ;;  %s3866_s12 = sld [smem:[#allocation3 + $0x7f]] }
 0x2fd   : > { %v2383_v58 = vadd.f32 %v5893_v29, %v2358_v61  ;;  %v2382_v42 = vadd.f32 %v5895_v15, %v2357_v6  ;;  %v2431_v29 = vadd.f32 %v5929_v59, %v2406_v8  ;;  %v3204_v61 = vmul.f32 %v5786_v50, %v3201_v34 }
 0x2fe   : > { %v6175_v63 = vpop.permute.xlu1 %2637  ;;  %v6177_v14 = vpop.permute.xlu0 %2635  ;;  %v3183_v25 = vrot.slane %v3177_v32, 6  ;;  %v3184_v59 = vrot.slane %v3178_v57, 6  ;;  %v3208_v0 = vrot.slane %v3202_v28, 6  ;;  %v3251_v57 = vstv %s6204_s20  ;;  %s6394_s20 = sld [smem:[#allocation3 + $0x87]] }
 0x2ff   : > { %v2407_v36 = vadd.f32 %v5909_v55, %v2382_v42  ;;  %v2408_v15 = vadd.f32 %v5931_v62, %v2383_v58  ;;  %v2456_v27 = vadd.f32 %v5975_v52, %v2431_v29  ;;  %v3162_v55 = vsel %vm632_vm4, %v3159_v7, %v3161_v18 }
 0x300   : > { %3142 = vrot.lane.b32.xlu1 %v3136_v53, %s4100_s23  ;;  %3140 = vrot.lane.b32.xlu0 %v3137_v9, %s4100_s23  ;;  %v3186_v62 = vrot.slane %v3179_v43, 6  ;;  %v3203_v52 = vmul.f32 %v5789_v46, %v3201_v34  ;;  %v6216_v7 = vmul.f32 %v5789_v46, %v3226_v19 }
 0x301   : > { %v2433_v11 = vadd.f32 %v5953_v26, %v2408_v15  ;;  %v2432_v53 = vadd.f32 %v5955_v60, %v2407_v36  ;;  %v2481_v26 = vadd.f32 %v5987_v45, %v2456_v27 }
 0x302   : > { %v6192_v54 = vpop.permute.xlu1 %2660  ;;  %v6194_v1 = vpop.permute.xlu0 %2639  ;;  %v3187_v45 = vsel %vm632_vm4, %v3184_v59, %v3186_v62  ;;  %v3209_v32 = vrot.slane %v3203_v52, 6  ;;  %v3234_v8 = vrot.slane %v6216_v7, 1 }
 0x303   : > { %v2457_v2 = vadd.f32 %v5973_v47, %v2432_v53  ;;  %v2458_v60 = vadd.f32 %v5989_v10, %v2433_v11  ;;  %v2506_v47 = vadd.f32 %v6026_v20, %v2481_v26  ;;  %v3185_v10 = vsel %vm632_vm4, %v3183_v25, %v3184_v59 }
 0x304   : > { %3165 = vrot.lane.b32.xlu1 %v3160_v44, %s4101_s7  ;;  %3163 = vrot.lane.b32.xlu0 %v3158_v5, %s4101_s7  ;;  %v3227_v5 = vmul.f32 %v5770_v21, %v3226_v19  ;;  %v6258_v53 = vmul.f32 %v5786_v50, %v3251_v57 }
 0x305   : > { %v2483_v37 = vadd.f32 %v6010_v24, %v2458_v60  ;;  %v2482_v6 = vadd.f32 %v6012_v35, %v2457_v2  ;;  %v2531_v24 = vadd.f32 %v6041_v38, %v2506_v47  ;;  %v3211_v38 = vrot.slane %v3204_v61, 6 }
 0x306   : > { %v6210_v39 = vpop.permute.xlu1 %2664  ;;  %v6212_v56 = vpop.permute.xlu0 %2662  ;;  %v3233_v42 = vrot.slane %v3227_v5, 1  ;;  %v2740_v5 = vstv %s6246_s5  ;;  %s3870_s5 = sld [smem:[#allocation3 + $0x8f]] }
 0x307   : > { %v2507_v9 = vadd.f32 %v6024_v41, %v2482_v6  ;;  %v2508_v35 = vadd.f32 %v6043_v30, %v2483_v37  ;;  %v2552_v41 = vadd.f32 %v6072_v4, %v2531_v24  ;;  %v3229_v30 = vmul.f32 %v5786_v50, %v3226_v19 }
 0x308   : > { %3188 = vrot.lane.b32.xlu1 %v3183_v25, %s4097_s24  ;;  %3167 = vrot.lane.b32.xlu0 %v3162_v55, %s4101_s7  ;;  %v3235_v4 = vsel %vm265_vm0, %v3233_v42, %v3234_v8  ;;  %v3276_v19 = vstv %s6229_s4  ;;  %v2742_v24 = vmul.f32 %v5789_v46, %v2740_v5  ;;  %v2788_v42 = vstv %s6265_s11  ;;  %s6402_s4 = sld [smem:[#allocation3 + $0x8b]] }
 0x309   : > { %v2533_v44 = vadd.f32 %v6055_v40, %v2508_v35  ;;  %v2532_v18 = vadd.f32 %v6057_v13, %v2507_v9  ;;  %v2573_v36 = vadd.f32 %v6086_v31, %v2552_v41  ;;  %v3210_v40 = vsel %vm632_vm4, %v3208_v0, %v3209_v32 }
 0x30a   : > { %v6231_v20 = vpop.permute.xlu1 %2683  ;;  %v2682_v58 = vpop.permute.xlu0 %2681  ;;  %v3212_v31 = vsel %vm632_vm4, %v3209_v32, %v3211_v38  ;;  %v6275_v60 = vmul.f32 %v5789_v46, %v3276_v19  ;;  %v2741_v35 = vmul.f32 %v5770_v21, %v2740_v5  ;;  %v2743_v38 = vmul.f32 %v5786_v50, %v2740_v5 }
 0x30b   : > { %v2553_v43 = vadd.f32 %v6070_v33, %v2532_v18  ;;  %v2554_v29 = vadd.f32 %v6088_v16, %v2533_v44  ;;  %v2594_v11 = vadd.f32 %v6125_v23, %v2573_v36  ;;  %v3253_v33 = vmul.f32 %v5789_v46, %v3251_v57 }
 0x30c   : > { %3192 = vrot.lane.b32.xlu1 %v3187_v45, %s4097_s24  ;;  %3190 = vrot.lane.b32.xlu0 %v3185_v10, %s4097_s24  ;;  %v3236_v16 = vrot.slane %v3229_v30, 1  ;;  %v3301_v10 = vstv %s6252_s30  ;;  %v6308_v30 = vld [vmem:[%s4266_s29 + $0x48] sm:$0xff]  ;;  %s3879_s30 = sshll.u32 %s4152_s1, 8  ;;  %s4105_s1 = smov [#allocation8]  }
 0x30d   : > { %v2575_v34 = vadd.f32 %v6107_v48, %v2554_v29  ;;  %v2574_v25 = vadd.f32 %v6109_v49, %v2553_v43  ;;  %v3252_v48 = vmul.f32 %v5770_v21, %v3251_v57  ;;  %v2619_v23 = vadd.f32 %v6141_v51, %v2594_v11 }
 0x30e   : > { %v2703_v15 = vpop.permute.xlu1 %2702  ;;  %v2686_v13 = vpop.permute.xlu0 %2685  ;;  %v3259_v26 = vrot.slane %v3253_v33, 1  ;;  %v3237_v52 = vsel %vm265_vm0, %v3234_v8, %v3236_v16  ;;  %v3303_v8 = vmul.f32 %v5789_v46, %v3301_v10  ;;  %v3302_v46 = vmul.f32 %v6308_v30, %v3301_v10 }
 0x30f   : > { %v2595_v49 = vadd.f32 %v6123_v17, %v2574_v25  ;;  %v2596_v27 = vadd.f32 %v6143_v22, %v2575_v34  ;;  %v2644_v2 = vadd.f32 %v6177_v14, %v2619_v23  ;;  %v3261_v17 = vrot.slane %v6258_v53, 1 }
 0x310   : > { %3215 = vrot.lane.b32.xlu1 %v3210_v40, %s4102_s9  ;;  %3213 = vrot.lane.b32.xlu0 %v3208_v0, %s4102_s9  ;;  %v3258_v51 = vrot.slane %v3252_v48, 1  ;;  %v3277_v22 = vmul.f32 %v5770_v21, %v3276_v19  ;;  %v3284_v0 = vrot.slane %v6275_v60, 1  ;;  %v3326_v29 = vstv %s6281_s13 }
 0x311   : > { %v2621_v62 = vadd.f32 %v6158_v12, %v2596_v27  ;;  %v2620_v28 = vadd.f32 %v6160_v3, %v2595_v49  ;;  %v2669_v3 = vadd.f32 %v6192_v54, %v2644_v2  ;;  %v2789_v25 = vmul.f32 %v6308_v30, %v2788_v42 }
 0x312   : > { %v2707_v55 = vpop.permute.xlu1 %2706  ;;  %v2705_v59 = vpop.permute.xlu0 %2704  ;;  %v3260_v54 = vsel %vm265_vm0, %v3258_v51, %v3259_v26  ;;  %v3309_v33 = vrot.slane %v3303_v8, 4  ;;  %v3327_v53 = vmul.f32 %v6308_v30, %v3326_v29 }
 0x313   : > { %v2645_v12 = vadd.f32 %v6175_v63, %v2620_v28  ;;  %v2646_v14 = vadd.f32 %v6194_v1, %v2621_v62  ;;  %v2690_v45 = vadd.f32 %v2682_v58, %v2669_v3  ;;  %v3262_v63 = vsel %vm265_vm0, %v3259_v26, %v3261_v17 }
 0x314   : > { %3238 = vrot.lane.b32.xlu1 %v3235_v4, %s4101_s7  ;;  %3217 = vrot.lane.b32.xlu0 %v3212_v31, %s4102_s9  ;;  %v3283_v1 = vrot.slane %v3277_v22, 1  ;;  %v6319_v4 = vld [vmem:[%s4266_s29 + $0x58] sm:$0xff]  ;;  %v2795_v62 = vrot.slane %v2789_v25, 1  ;;  %v3333_v60 = vrot.slane %v3327_v53, 4 }
 0x315   : > { %v2671_v6 = vadd.f32 %v6210_v39, %v2646_v14  ;;  %v2670_v47 = vadd.f32 %v6212_v56, %v2645_v12  ;;  %v2711_v9 = vadd.f32 %v2703_v15, %v2690_v45  ;;  %v3279_v56 = vmul.f32 %v5786_v50, %v3276_v19 }
 0x316   : > { %v2726_v7 = vpop.permute.xlu1 %2725  ;;  %v2724_v37 = vpop.permute.xlu0 %2723  ;;  %v3285_v21 = vsel %vm265_vm0, %v3283_v1, %v3284_v0  ;;  %v2791_v34 = vmul.f32 %v6319_v4, %v2788_v42  ;;  %v3329_v3 = vmul.f32 %v6319_v4, %v3326_v29 }
 0x317   : > { %v2691_v61 = vadd.f32 %v6231_v20, %v2670_v47  ;;  %v2692_v39 = vadd.f32 %v2686_v13, %v2671_v6  ;;  %v2732_v41 = vadd.f32 %v2724_v37, %v2711_v9  ;;  %v6299_v20 = vmul.f32 %v5786_v50, %v3301_v10  ;;  %v6315_v13 = vld [vmem:[%s4266_s29 + $0x50] sm:$0xff]  ;;  %s6336_s29 = sld [smem:[#allocation3 + $0x6f]] }
 0x318   : > { %3242 = vrot.lane.b32.xlu1 %v3236_v16, %s4101_s7  ;;  %3240 = vrot.lane.b32.xlu0 %v3237_v52, %s4101_s7  ;;  %v3286_v36 = vrot.slane %v3279_v56, 1  ;;  %v2790_v50 = vmul.f32 %v6315_v13, %v2788_v42  ;;  %v3308_v16 = vrot.slane %v3302_v46, 4  ;;  %v3328_v48 = vmul.f32 %v6315_v13, %v3326_v29 }
 0x319   : > { %v2713_v44 = vadd.f32 %v2707_v55, %v2692_v39  ;;  %v2712_v18 = vadd.f32 %v2705_v59, %v2691_v61  ;;  %v2744_v11 = vadd.f32 %v2741_v35, %v2732_v41  ;;  %v3311_v31 = vrot.slane %v6299_v20, 4 }
 0x31a   : > { %v2756_v32 = vpop.permute.xlu1 %2755  ;;  %v2728_v58 = vpop.permute.xlu0 %2727  ;;  %v3287_v27 = vsel %vm265_vm0, %v3284_v0, %v3286_v36  ;;  %v2796_v19 = vrot.slane %v2790_v50, 1  ;;  %v2798_v55 = vrot.slane %v2791_v34, 1  ;;  %v3310_v22 = vsel %vm783_vm5, %v3308_v16, %v3309_v33 }
 0x31b   : > { %v2733_v57 = vadd.f32 %v2726_v7, %v2712_v18  ;;  %v2734_v43 = vadd.f32 %v2728_v58, %v2713_v44  ;;  %v2764_v2 = vadd.f32 %v2756_v32, %v2744_v11  ;;  %v3312_v51 = vsel %vm783_vm5, %v3309_v33, %v3311_v31 }
 0x31c   : > { %3265 = vrot.lane.b32.xlu1 %v3262_v63, %s4097_s24  ;;  %3263 = vrot.lane.b32.xlu0 %v3260_v54, %s4097_s24  ;;  %v3334_v12 = vrot.slane %v3328_v48, 4  ;;  %v3351_v7 = vstv %s6312_s27  ;;  %v2799_v37 = vsel %vm265_vm0, %v2796_v19, %v2798_v55  ;;  %v2797_v6 = vsel %vm265_vm0, %v2795_v62, %v2796_v19 }
 0x31d   : > { %v2745_v49 = vadd.f32 %v2742_v24, %v2733_v57  ;;  %v2746_v23 = vadd.f32 %v2743_v38, %v2734_v43  ;;  %v3336_v0 = vrot.slane %v3329_v3, 4  ;;  %v3353_v61 = vmul.f32 %v6315_v13, %v3351_v7 }
 0x31e   : > { %v2760_v40 = vpop.permute.xlu1 %2759  ;;  %v2758_v15 = vpop.permute.xlu0 %2757  ;;  %v3335_v1 = vsel %vm783_vm5, %v3333_v60, %v3334_v12  ;;  %v3354_v9 = vmul.f32 %v6319_v4, %v3351_v7  ;;  %v3352_v35 = vmul.f32 %v6308_v30, %v3351_v7  ;;  %v3376_v43 = vstv %s6336_s29  ;;  %s4025_s29 = sshll.u32 %s4105_s1, 4  ;;  %s4026_s29 = int_to_ptr.vmem [resolvable:$false] %s4025_s29 }
 0x31f   : > { %v2765_v26 = vadd.f32 %v2758_v15, %v2745_v49  ;;  %v2766_v14 = vadd.f32 %v2760_v40, %v2746_v23  ;;  %v3337_v20 = vsel %vm783_vm5, %v3334_v12, %v3336_v0  ;;  %v3359_v38 = vrot.slane %v3353_v61, 4 }
 0x320   : > { %3288 = vrot.lane.b32.xlu1 %v3285_v21, %s4102_s9  ;;  %3267 = vrot.lane.b32.xlu0 %v3261_v17, %s4097_s24  ;;  %v2857_v17 = vstv %s6301_s28  ;;  %v3361_v46 = vrot.slane %v3354_v9, 4  ;;  %v3358_v57 = vrot.slane %v3352_v35, 4  ;;  %v3377_v25 = vmul.f32 %v6308_v30, %v3376_v43  ;;  %s3613_s28 = scalar_lea.sflag [#allocation5], %s4262_s18 }
 0x321   : > { %v2858_v10 = vmul.f32 %v6308_v30, %v2857_v17  ;;  %v2859_v63 = vmul.f32 %v6315_v13, %v2857_v17  ;;  %v2860_v44 = vmul.f32 %v6319_v4, %v2857_v17  ;;  %v3378_v11 = vmul.f32 %v6315_v13, %v3376_v43 }
 0x322   : > { %v2778_v59 = vpop.permute.xlu1 %2777  ;;  %v2776_v28 = vpop.permute.xlu0 %2775  ;;  %v3360_v16 = vsel %vm783_vm5, %v3358_v57, %v3359_v38  ;;  %v3397_v23 = vstv %s6349_s6  ;;  %s4027_s6 = scalar_lea.vmem %s4026_s29, 512 }
 0x323   : > { %v2785_v52 = vadd.f32 %v2778_v59, %v2765_v26  ;;  %v2784_v5 = vadd.f32 %v2776_v28, %v2764_v2  ;;  %v2864_v42 = vrot.slane %v2858_v10, 2  ;;  %v2865_v8 = vrot.slane %v2859_v63, 2 }
 0x324   : > { %3292 = vrot.lane.b32.xlu1 %v3286_v36, %s4102_s9  ;;  %3290 = vrot.lane.b32.xlu0 %v3287_v27, %s4102_s9  ;;  %v2867_v15 = vrot.slane %v2860_v44, 2  ;;  %v3382_v59 = vrot.slane %v3378_v11, 5  ;;  %v3398_v2 = vmul.f32 %v6308_v30, %v3397_v23  ;;  %v3399_v26 = vmul.f32 %v6315_v13, %v3397_v23 }
 0x325   : > { %v2804_v39 = vadd.f32 %v2799_v37, %v2785_v52  ;;  %v2803_v56 = vadd.f32 %v2797_v6, %v2784_v5  ;;  %v2866_v40 = vsel %vm335_vm1, %v2864_v42, %v2865_v8  ;;  %v3439_v63 = vstv %s3865_s10 }
 0x326   : > { %v2820_v47 = vpop.permute.xlu1 %2819  ;;  %v2780_v45 = vpop.permute.xlu0 %2779  ;;  %v2868_v49 = vsel %vm335_vm1, %v2865_v8, %v2867_v15  ;;  %v3402_v3 = vrot.slane %v3398_v2, 5  ;;  %v3440_v35 = vmul.f32 %v6308_v30, %v3439_v63  ;;  %v3464_v42 = vstv %s3866_s12 }
 0x327   : > { %v2786_v54 = vadd.f32 %v2780_v45, %v2766_v14  ;;  %v2828_v21 = vadd.f32 %v2820_v47, %v2803_v56  ;;  %v3403_v14 = vrot.slane %v3399_v26, 5  ;;  %v3441_v56 = vmul.f32 %v6315_v13, %v3439_v63 }
 0x328   : > { %3315 = vrot.lane.b32.xlu1 %v3312_v51, %s4101_s7  ;;  %3313 = vrot.lane.b32.xlu0 %v3310_v22, %s4101_s7 }
 0x329   : > { %v2805_v24 = vadd.f32 %v2798_v55, %v2786_v54  ;;  %v3381_v55 = vrot.slane %v3377_v25, 5  ;;  %v3404_v10 = vsel %vm857_vm6, %v3402_v3, %v3403_v14 }
 0x32a   : > { %v2824_v32 = vpop.permute.xlu1 %2823  ;;  %v2822_v58 = vpop.permute.xlu0 %2821 }
 0x32b   : > { %v2830_v18 = vadd.f32 %v2824_v32, %v2805_v24  ;;  %v2829_v41 = vadd.f32 %v2822_v58, %v2804_v39  ;;  %v3383_v12 = vsel %vm857_vm6, %v3381_v55, %v3382_v59  ;;  %v3442_v24 = vmul.f32 %v6319_v4, %v3439_v63 }
 0x32c   : > { %3338 = vrot.lane.b32.xlu1 %v3335_v1, %s4097_s24  ;;  %3317 = vrot.lane.b32.xlu0 %v3311_v31, %s4101_s7  ;;  %v3362_v31 = vsel %vm783_vm5, %v3359_v38, %v3361_v46  ;;  %s6362_s7 = sld [smem:[#allocation3 + $0x77]]  ;;  %v3446_v38 = vrot.slane %v3440_v35, 1 }
 0x32e   : > { %v2847_v36 = vpop.permute.xlu1 %2846  ;;  %v2845_v29 = vpop.permute.xlu0 %2844 }
 0x32f   : > { %v2854_v50 = vadd.f32 %v2847_v36, %v2829_v41  ;;  %v2853_v34 = vadd.f32 %v2845_v29, %v2828_v21  ;;  %v3447_v41 = vrot.slane %v3441_v56, 1  ;;  %v3465_v21 = vmul.f32 %v6308_v30, %v3464_v42 }
 0x330   : > { %3342 = vrot.lane.b32.xlu1 %v3336_v0, %s4097_s24  ;;  %3340 = vrot.lane.b32.xlu0 %v3337_v20, %s4097_s24  ;;  %v3449_v20 = vrot.slane %v3442_v24, 1 }
 0x331   : > { %v2872_v33 = vadd.f32 %v2866_v40, %v2853_v34  ;;  %v2873_v28 = vadd.f32 %v2868_v49, %v2854_v50  ;;  %v3467_v40 = vmul.f32 %v6319_v4, %v3464_v42  ;;  %v3448_v50 = vsel %vm265_vm0, %v3446_v38, %v3447_v41 }
 0x332   : > { %v2889_v53 = vpop.permute.xlu1 %2888  ;;  %v2849_v48 = vpop.permute.xlu0 %2848  ;;  %v3418_v52 = vstv %s6362_s7  ;;  %v3471_v34 = vrot.slane %v3465_v21, 1 }
 0x333   : > { %v2897_v27 = vadd.f32 %v2889_v53, %v2872_v33  ;;  %v2855_v19 = vadd.f32 %v2849_v48, %v2830_v18  ;;  %v3419_v47 = vmul.f32 %v6308_v30, %v3418_v52  ;;  %v3420_v45 = vmul.f32 %v6315_v13, %v3418_v52 }
 0x334   : > { %3365 = vrot.lane.b32.xlu1 %v3362_v31, %s4102_s9  ;;  %3363 = vrot.lane.b32.xlu0 %v3360_v16, %s4102_s9  ;;  %v3474_v48 = vrot.slane %v3467_v40, 1 }
 0x335   : > { %v2874_v62 = vadd.f32 %v2867_v15, %v2855_v19  ;;  %v3423_v9 = vrot.slane %v3419_v47, 5  ;;  %v3424_v39 = vrot.slane %v3420_v45, 5  ;;  %v3450_v15 = vsel %vm265_vm0, %v3447_v41, %v3449_v20 }
 0x336   : > { %v2893_v51 = vpop.permute.xlu1 %2892  ;;  %v2891_v17 = vpop.permute.xlu0 %2890  ;;  %v3535_v47 = vstv %s6402_s4 }
 0x337   : > { %v2899_v22 = vadd.f32 %v2893_v51, %v2874_v62  ;;  %v2898_v60 = vadd.f32 %v2891_v17, %v2873_v28  ;;  %v3425_v18 = vsel %vm857_vm6, %v3423_v9, %v3424_v39 }
 0x338   : > { %3384 = vrot.lane.b32.xlu1 %v3381_v55, %s4103_s21  ;;  %3367 = vrot.lane.b32.xlu0 %v3361_v46, %s4102_s9  ;;  %s3867_s9 = sld [smem:[#allocation3 + $0x83]]  ;;  %v3466_v46 = vmul.f32 %v6315_v13, %v3464_v42 }
 0x33a   : > { %v2916_v5 = vpop.permute.xlu1 %2915  ;;  %v2914_v7 = vpop.permute.xlu0 %2913  ;;  %v3472_v25 = vrot.slane %v3466_v46, 1 }
 0x33b   : > { %v2923_v37 = vadd.f32 %v2916_v5, %v2898_v60  ;;  %v2922_v6 = vadd.f32 %v2914_v7, %v2897_v27 }
 0x33c   : > { %3388 = vrot.lane.b32.xlu1 %v3382_v59, %s4103_s21  ;;  %3386 = vrot.lane.b32.xlu0 %v3383_v12, %s4103_s21  ;;  %v3473_v49 = vsel %vm265_vm0, %v3471_v34, %v3472_v25  ;;  %v3475_v2 = vsel %vm265_vm0, %v3472_v25, %v3474_v48 }
 0x33e   : > { %v2939_v54 = vpop.permute.xlu1 %2938  ;;  %v2918_v1 = vpop.permute.xlu0 %2917  ;;  %v3489_v31 = vstv %s3867_s9 }
 0x33f   : > { %v2947_v0 = vadd.f32 %v2939_v54, %v2922_v6  ;;  %v2924_v61 = vadd.f32 %v2918_v1, %v2899_v22  ;;  %v3491_v23 = vmul.f32 %v6315_v13, %v3489_v31  ;;  %v3492_v27 = vmul.f32 %v6319_v4, %v3489_v31 }
 0x340   : > { %3407 = vrot.lane.b32.xlu1 %v3404_v10, %s4097_s24  ;;  %3405 = vrot.lane.b32.xlu0 %v3402_v3, %s4097_s24  ;;  %v3490_v19 = vmul.f32 %v6308_v30, %v3489_v31  ;;  %v3514_v22 = vstv %s6394_s20  ;;  %v3536_v1 = vmul.f32 %v6315_v13, %v3535_v47 }
 0x341   : > { %v3497_v26 = vrot.slane %v3491_v23, 1  ;;  %v3499_v51 = vrot.slane %v3492_v27, 1  ;;  %v3516_v7 = vmul.f32 %v6319_v4, %v3514_v22 }
 0x342   : > { %v2943_v32 = vpop.permute.xlu1 %2942  ;;  %v2941_v58 = vpop.permute.xlu0 %2940  ;;  %v3496_v17 = vrot.slane %v3490_v19, 1  ;;  %v3540_v35 = vrot.slane %v3536_v1, 5 }
 0x343   : > { %v2949_v8 = vadd.f32 %v2943_v32, %v2924_v61  ;;  %v2948_v44 = vadd.f32 %v2941_v58, %v2923_v37  ;;  %v3500_v52 = vsel %vm265_vm0, %v3497_v26, %v3499_v51  ;;  %v3520_v54 = vrot.slane %v3516_v7, 5 }
 0x344   : > { %3426 = vrot.lane.b32.xlu1 %v3423_v9, %s4104_s8  ;;  %3409 = vrot.lane.b32.xlu0 %v3403_v14, %s4097_s24  ;;  %v3515_v14 = vmul.f32 %v6315_v13, %v3514_v22  ;;  %v3498_v5 = vsel %vm265_vm0, %v3496_v17, %v3497_v26  ;;  %v3556_v58 = vstv %s3870_s5 }
 0x345   : > { %v3557_v41 = vmul.f32 %v6315_v13, %v3556_v58  ;;  %v3558_v38 = vmul.f32 %v6319_v4, %v3556_v58 }
 0x346   : > { %v2966_v57 = vpop.permute.xlu1 %2965  ;;  %v2964_v43 = vpop.permute.xlu0 %2963  ;;  %v3519_v63 = vrot.slane %v3515_v14, 5 }
 0x347   : > { %v2973_v36 = vadd.f32 %v2966_v57, %v2948_v44  ;;  %v2972_v29 = vadd.f32 %v2964_v43, %v2947_v0  ;;  %v3537_v0 = vmul.f32 %v6319_v4, %v3535_v47 }
 0x348   : > { %3430 = vrot.lane.b32.xlu1 %v3424_v39, %s4104_s8  ;;  %3428 = vrot.lane.b32.xlu0 %v3425_v18, %s4104_s8  ;;  %v3521_v24 = vsel %vm857_vm6, %v3519_v63, %v3520_v54 }
 0x349   : > { %v3541_v32 = vrot.slane %v3537_v0, 5 }
 0x34a   : > { %v2989_v11 = vpop.permute.xlu1 %2988  ;;  %v2968_v33 = vpop.permute.xlu0 %2967 }
 0x34b   : > { %v2997_v16 = vadd.f32 %v2989_v11, %v2972_v29  ;;  %v2974_v53 = vadd.f32 %v2968_v33, %v2949_v8  ;;  %v3562_v29 = vrot.slane %v3558_v38, 5 }
 0x34c   : > { %3453 = vrot.lane.b32.xlu1 %v3450_v15, %s4103_s21  ;;  %3451 = vrot.lane.b32.xlu0 %v3448_v50, %s4103_s21 }
 0x34e   : > { %v2993_v55 = vpop.permute.xlu1 %2992  ;;  %v2991_v59 = vpop.permute.xlu0 %2990 }
 0x34f   : > { %v2999_v62 = vadd.f32 %v2993_v55, %v2974_v53  ;;  %v2998_v28 = vadd.f32 %v2991_v59, %v2973_v36  ;;  %v3561_v36 = vrot.slane %v3557_v41, 5 }
 0x350   : > { %3476 = vrot.lane.b32.xlu1 %v3473_v49, %s4097_s24  ;;  %3455 = vrot.lane.b32.xlu0 %v3449_v20, %s4103_s21  ;;  %v3542_v20 = vsel %vm857_vm6, %v3540_v35, %v3541_v32 }
 0x351   : > { %v3563_v13 = vsel %vm857_vm6, %v3561_v36, %v3562_v29 }
 0x352   : > { %v3016_v60 = vpop.permute.xlu1 %3015  ;;  %v3014_v12 = vpop.permute.xlu0 %3013 }
 0x353   : > { %v3023_v30 = vadd.f32 %v3016_v60, %v2998_v28  ;;  %v3022_v3 = vadd.f32 %v3014_v12, %v2997_v16 }
 0x354   : > { %3480 = vrot.lane.b32.xlu1 %v3474_v48, %s4097_s24  ;;  %3478 = vrot.lane.b32.xlu0 %v3475_v2, %s4097_s24 }
 0x356   : > { %v3039_v37 = vpop.permute.xlu1 %3038  ;;  %v3018_v6 = vpop.permute.xlu0 %3017 }
 0x357   : > { %v3047_v45 = vadd.f32 %v3039_v37, %v3022_v3  ;;  %v3024_v10 = vadd.f32 %v3018_v6, %v2999_v62 }
 0x358   : > { %3503 = vrot.lane.b32.xlu1 %v3500_v52, %s4104_s8  ;;  %3501 = vrot.lane.b32.xlu0 %v3498_v5, %s4104_s8 }
 0x35a   : > { %v3043_v61 = vpop.permute.xlu1 %3042  ;;  %v3041_v9 = vpop.permute.xlu0 %3040 }
 0x35b   : > { %v3049_v39 = vadd.f32 %v3043_v61, %v3024_v10  ;;  %v3048_v56 = vadd.f32 %v3041_v9, %v3023_v30 }
 0x35c   : > { %3522 = vrot.lane.b32.xlu1 %v3519_v63, %s4103_s21  ;;  %3505 = vrot.lane.b32.xlu0 %v3499_v51, %s4104_s8 }
 0x35e   : > { %v3066_v42 = vpop.permute.xlu1 %3065  ;;  %v3064_v8 = vpop.permute.xlu0 %3063 }
 0x35f   : > { %v3073_v44 = vadd.f32 %v3066_v42, %v3048_v56  ;;  %v3072_v18 = vadd.f32 %v3064_v8, %v3047_v45 }
 0x360   : > { %3526 = vrot.lane.b32.xlu1 %v3520_v54, %s4103_s21  ;;  %3524 = vrot.lane.b32.xlu0 %v3521_v24, %s4103_s21 }
 0x362   : > { %v3089_v21 = vpop.permute.xlu1 %3088  ;;  %v3068_v46 = vpop.permute.xlu0 %3067 }
 0x363   : > { %v3097_v57 = vadd.f32 %v3089_v21, %v3072_v18  ;;  %v3074_v43 = vadd.f32 %v3068_v46, %v3049_v39 }
 0x364   : > { %3545 = vrot.lane.b32.xlu1 %v3542_v20, %s4097_s24  ;;  %3543 = vrot.lane.b32.xlu0 %v3540_v35, %s4097_s24 }
 0x366   : > { %v3093_v40 = vpop.permute.xlu1 %3092  ;;  %v3091_v15 = vpop.permute.xlu0 %3090 }
 0x367   : > { %v3099_v50 = vadd.f32 %v3093_v40, %v3074_v43  ;;  %v3098_v34 = vadd.f32 %v3091_v15, %v3073_v44 }
 0x368   : > { %3564 = vrot.lane.b32.xlu1 %v3561_v36, %s4104_s8  ;;  %3547 = vrot.lane.b32.xlu0 %v3541_v32, %s4097_s24  ;;  %s3718_s24 = sshll.u32 %s4262_s18, 4 }
 0x369   : > { %s203_s21 = scalar_lea.vmem [#allocation8], %s3718_s24 }
 0x36a   : > { %v3116_v4 = vpop.permute.xlu1 %3115  ;;  %v3114_v25 = vpop.permute.xlu0 %3113 }
 0x36b   : > { %v3123_v11 = vadd.f32 %v3116_v4, %v3098_v34  ;;  %v3122_v33 = vadd.f32 %v3114_v25, %v3097_v57 }
 0x36c   : > { %3568 = vrot.lane.b32.xlu1 %v3562_v29, %s4104_s8  ;;  %3566 = vrot.lane.b32.xlu0 %v3563_v13, %s4104_s8  ;;  %s3626_s8 = sshll.u32 %s203_s21, 4  ;;  %s6439_s8 = int_to_ptr.vmem [resolvable:$true] %s3626_s8 }
 0x36d   : > { %s4021_s27 = scalar_lea.vmem %s6439_s8, 256  ;;  %p4028_p10 = scmp.lt.s32.totalorder %s6439_s8, %s4026_s29 }
 0x36e   : > { %v3139_v31 = vpop.permute.xlu1 %3138  ;;  %v3118_v16 = vpop.permute.xlu0 %3117  ;;  %p4022_p13 = scmp.ne.s32.totalorder %s6439_s8, %s4021_s27  ;;  %p4029_p1 = scmp.lt.s32.totalorder %s4027_s6, %s4021_s27 }
 0x36f   : > { %v3147_v53 = vadd.f32 %v3139_v31, %v3122_v33  ;;  %v3124_v48 = vadd.f32 %v3118_v16, %v3099_v50 }
 0x370   : > { %p4023_p8 = pnand %p4022_p13, %p6869_p3  ;;  %p4030_p4 = por %p4029_p1, %p4028_p10 }
 0x372   : > { %v3143_v49 = vpop.permute.xlu1 %3142  ;;  %v3141_v23 = vpop.permute.xlu0 %3140  ;;  %p4024_p9 = pneg %p4023_p8 }
 0x373   : > { %v3149_v27 = vadd.f32 %v3143_v49, %v3124_v48  ;;  %v3148_v19 = vadd.f32 %v3141_v23, %v3123_v11 }
 0x374   : > { %p4031_p11 = pnand %p4030_p4, %p4024_p9 }
 0x376   : > { %v3166_v55 = vpop.permute.xlu1 %3165  ;;  %v3164_v59 = vpop.permute.xlu0 %3163 }
 0x377   : > { %v3173_v62 = vadd.f32 %v3166_v55, %v3148_v19  ;;  %v3172_v28 = vadd.f32 %v3164_v59, %v3147_v53 }
 0x37a   : > { %v3189_v2 = vpop.permute.xlu1 %3188  ;;  %v3168_v26 = vpop.permute.xlu0 %3167 }
 0x37b   : > { %v3197_v51 = vadd.f32 %v3189_v2, %v3172_v28  ;;  %v3174_v17 = vadd.f32 %v3168_v26, %v3149_v27 }
 0x37e   : > { %v3193_v22 = vpop.permute.xlu1 %3192  ;;  %v3191_v60 = vpop.permute.xlu0 %3190 }
 0x37f   : > { %v3199_v12 = vadd.f32 %v3193_v22, %v3174_v17  ;;  %v3198_v30 = vadd.f32 %v3191_v60, %v3173_v62 }
 0x382   : > { %v3216_v3 = vpop.permute.xlu1 %3215  ;;  %v3214_v14 = vpop.permute.xlu0 %3213 }
 0x383   : > { %v3222_v46 = vadd.f32 %v3214_v14, %v3197_v51  ;;  %v3223_v29 = vadd.f32 %v3216_v3, %v3198_v30 }
 0x386   : > { %v3239_v52 = vpop.permute.xlu1 %3238  ;;  %v3218_v5 = vpop.permute.xlu0 %3217 }
 0x387   : > { %v3247_v36 = vadd.f32 %v3239_v52, %v3222_v46  ;;  %v3224_v40 = vadd.f32 %v3218_v5, %v3199_v12 }
 0x38a   : > { %v3243_v7 = vpop.permute.xlu1 %3242  ;;  %v3241_v37 = vpop.permute.xlu0 %3240 }
 0x38b   : > { %v3249_v13 = vadd.f32 %v3243_v7, %v3224_v40  ;;  %v3248_v4 = vadd.f32 %v3241_v37, %v3223_v29 }
 0x38e   : > { %v3266_v6 = vpop.permute.xlu1 %3265  ;;  %v3264_v47 = vpop.permute.xlu0 %3263 }
 0x38f   : > { %v3272_v15 = vadd.f32 %v3264_v47, %v3247_v36  ;;  %v3273_v11 = vadd.f32 %v3266_v6, %v3248_v4 }
 0x392   : > { %v3289_v45 = vpop.permute.xlu1 %3288  ;;  %v3268_v10 = vpop.permute.xlu0 %3267 }
 0x393   : > { %v3297_v25 = vadd.f32 %v3289_v45, %v3272_v15  ;;  %v3274_v33 = vadd.f32 %v3268_v10, %v3249_v13 }
 0x396   : > { %v3293_v63 = vpop.permute.xlu1 %3292  ;;  %v3291_v54 = vpop.permute.xlu0 %3290 }
 0x397   : > { %v3299_v48 = vadd.f32 %v3293_v63, %v3274_v33  ;;  %v3298_v49 = vadd.f32 %v3291_v54, %v3273_v11 }
 0x39a   : > { %v3316_v1 = vpop.permute.xlu1 %3315  ;;  %v3314_v0 = vpop.permute.xlu0 %3313 }
 0x39b   : > { %v3322_v31 = vadd.f32 %v3314_v0, %v3297_v25  ;;  %v3323_v27 = vadd.f32 %v3316_v1, %v3298_v49 }
 0x39e   : > { %v3339_v61 = vpop.permute.xlu1 %3338  ;;  %v3318_v9 = vpop.permute.xlu0 %3317 }
 0x39f   : > { %v3347_v23 = vadd.f32 %v3339_v61, %v3322_v31  ;;  %v3324_v19 = vadd.f32 %v3318_v9, %v3299_v48 }
 0x3a2   : > { %v3343_v39 = vpop.permute.xlu1 %3342  ;;  %v3341_v56 = vpop.permute.xlu0 %3340 }
 0x3a3   : > { %v3349_v28 = vadd.f32 %v3343_v39, %v3324_v19  ;;  %v3348_v2 = vadd.f32 %v3341_v56, %v3323_v27 }
 0x3a6   : > { %v3366_v24 = vpop.permute.xlu1 %3365  ;;  %v3364_v35 = vpop.permute.xlu0 %3363 }
 0x3a7   : > { %v3372_v55 = vadd.f32 %v3364_v35, %v3347_v23  ;;  %v3373_v51 = vadd.f32 %v3366_v24, %v3348_v2 }
 0x3aa   : > { %v3385_v32 = vpop.permute.xlu1 %3384  ;;  %v3368_v58 = vpop.permute.xlu0 %3367 }
 0x3ab   : > { %v3393_v26 = vadd.f32 %v3385_v32, %v3372_v55  ;;  %v3374_v17 = vadd.f32 %v3368_v58, %v3349_v28 }
 0x3ae   : > { %v3389_v42 = vpop.permute.xlu1 %3388  ;;  %v3387_v8 = vpop.permute.xlu0 %3386 }
 0x3af   : > { %v3395_v30 = vadd.f32 %v3389_v42, %v3374_v17  ;;  %v3394_v3 = vadd.f32 %v3387_v8, %v3373_v51 }
 0x3b2   : > { %v3408_v44 = vpop.permute.xlu1 %3407  ;;  %v3406_v18 = vpop.permute.xlu0 %3405 }
 0x3b3   : > { %v3414_v22 = vadd.f32 %v3406_v18, %v3393_v26  ;;  %v3415_v52 = vadd.f32 %v3408_v44, %v3394_v3 }
 0x3b6   : > { %v3427_v41 = vpop.permute.xlu1 %3426  ;;  %v3410_v20 = vpop.permute.xlu0 %3409 }
 0x3b7   : > { %v3435_v14 = vadd.f32 %v3427_v41, %v3414_v22  ;;  %v3416_v5 = vadd.f32 %v3410_v20, %v3395_v30 }
 0x3ba   : > { %v3431_v38 = vpop.permute.xlu1 %3430  ;;  %v3429_v21 = vpop.permute.xlu0 %3428 }
 0x3bb   : > { %v3437_v47 = vadd.f32 %v3431_v38, %v3416_v5  ;;  %v3436_v45 = vadd.f32 %v3429_v21, %v3415_v52 }
 0x3be   : > { %v3454_v57 = vpop.permute.xlu1 %3453  ;;  %v3452_v43 = vpop.permute.xlu0 %3451 }
 0x3bf   : > { %v3460_v7 = vadd.f32 %v3452_v43, %v3435_v14  ;;  %v3461_v63 = vadd.f32 %v3454_v57, %v3436_v45 }
 0x3c2   : > { %v3477_v50 = vpop.permute.xlu1 %3476  ;;  %v3456_v34 = vpop.permute.xlu0 %3455 }
 0x3c3   : > { %v3485_v10 = vadd.f32 %v3477_v50, %v3460_v7  ;;  %v3462_v54 = vadd.f32 %v3456_v34, %v3437_v47 }
 0x3c6   : > { %v3481_v16 = vpop.permute.xlu1 %3480  ;;  %v3479_v53 = vpop.permute.xlu0 %3478 }
 0x3c7   : > { %v3487_v9 = vadd.f32 %v3481_v16, %v3462_v54  ;;  %v3486_v39 = vadd.f32 %v3479_v53, %v3461_v63 }
 0x3ca   : > { %v3504_v59 = vpop.permute.xlu1 %3503  ;;  %v3502_v62 = vpop.permute.xlu0 %3501 }
 0x3cb   : > { %v3510_v1 = vadd.f32 %v3502_v62, %v3485_v10  ;;  %v3511_v24 = vadd.f32 %v3504_v59, %v3486_v39 }
 0x3ce   : > { %v3523_v60 = vpop.permute.xlu1 %3522  ;;  %v3506_v12 = vpop.permute.xlu0 %3505 }
 0x3cf   : > { %v3531_v56 = vadd.f32 %v3523_v60, %v3510_v1  ;;  %v3512_v35 = vadd.f32 %v3506_v12, %v3487_v9 }
 0x3d2   : > { %v3527_v37 = vpop.permute.xlu1 %3526  ;;  %v3525_v6 = vpop.permute.xlu0 %3524 }
 0x3d3   : > { %v3533_v8 = vadd.f32 %v3527_v37, %v3512_v35  ;;  %v3532_v44 = vadd.f32 %v3525_v6, %v3511_v24 }
 0x3d6   : > { %v3546_v0 = vpop.permute.xlu1 %3545  ;;  %v3544_v61 = vpop.permute.xlu0 %3543 }
 0x3d7   : > { %v3552_v32 = vadd.f32 %v3544_v61, %v3531_v56  ;;  %v3553_v41 = vadd.f32 %v3546_v0, %v3532_v44 }
 0x3da   : > { %v3565_v58 = vpop.permute.xlu1 %3564  ;;  %v3548_v42 = vpop.permute.xlu0 %3547 }
 0x3db   : > { %v3573_v18 = vadd.f32 %v3565_v58, %v3552_v32  ;;  %v3554_v38 = vadd.f32 %v3548_v42, %v3533_v8 }
 0x3dd   : > { %v3871_v20 = vmul.f32 -1.442695, %v3573_v18 }
 0x3de   : > { %v3569_v21 = vpop.permute.xlu1 %3568  ;;  %v3567_v46 = vpop.permute.xlu0 %3566 }
 0x3df   : > { %3952 = vpow2.f32 %v3871_v20  ;;  %v3575_v57 = vadd.f32 %v3569_v21, %v3554_v38  ;;  %v3574_v43 = vadd.f32 %v3567_v46, %v3553_v41 }
 0x3e1   : > { %v3873_v36 = vmul.f32 -1.442695, %v3575_v57  ;;  %v3872_v29 = vmul.f32 -1.442695, %v3574_v43 }
 0x3e3   : > { %3954 = vpow2.f32 %v3873_v36 }
 0x3e4   : > { %3956 = vpow2.f32 %v3872_v29 }
 0x3e9   : > { %v3953_v40 = vpop.eup %3952 }
 0x3ea   : > { %v3585_v15 = vadd.f32 1.0, %v3953_v40 }
 0x3ec   : > { %3958 = vrcp.f32 %v3585_v15 }
 0x3ed   : > { %v3955_v50 = vpop.eup %3954 }
 0x3ee   : > { %v3957_v34 = vpop.eup %3956  ;;  %v3587_v13 = vadd.f32 1.0, %v3955_v50 }
 0x3ef   : > { %v3586_v4 = vadd.f32 1.0, %v3957_v34 }
 0x3f0   : > { %3960 = vrcp.f32 %v3587_v13 }
 0x3f1   : > { %3962 = vrcp.f32 %v3586_v4 }
 0x3f6   : > { %v3959_v25 = vpop.eup %3958 }
 0x3f7   : > { %3597 = vrot.lane.b32.xlu0 %v3959_v25, %s4100_s23 }
 0x3fa   : > { %v3961_v11 = vpop.eup %3960 }
 0x3fb   : > { %v3963_v33 = vpop.eup %3962  ;;  %3601 = vrot.lane.b32.xlu0 %v3961_v11, %s4100_s23 }
 0x3fc   : > { %3599 = vrot.lane.b32.xlu1 %v3963_v33, %s4100_s23  ;;  %s6444_s23 = scalar_lea.hbm %s6491_s3, %s3879_s30 }
 0x469   : > { %v3598_v31 = vpop.permute.xlu0 %3597 }
 0x46a   : > { %3607 = vst.msk [vmem:[%s203_s21 - $0x3] sm:$0xf8] %vm3606_vm7, %v3598_v31 }
 0x46d   : > { %v3602_v16 = vpop.permute.xlu0 %3601 }
 0x46e   : > { %v3600_v53 = vpop.permute.xlu1 %3599  ;;  %3611 = vst.msk [vmem:[%s203_s21 + $0xd] sm:$0x7] %vm3610_vm8, %v3602_v16 }
 0x46f   : > { %3609 = vst.msk [vmem:[%s203_s21 + $0x5] sm:$0xff] %vm3608_vm9, %v3600_v53 }
 0x470   : > { %4034 = shalt.err (!%p4031_p11)
}
 0x471   : > { %s4035_s7 = scalar_lea.hbm %s6444_s23, 256  ;;  %s4039_s9 = scalar_lea.hbm %s6491_s3, 512 }
 0x472   : > { %p4036_p0 = scmp.ne.s32.totalorder %s6444_s23, %s4035_s7  ;;  %p4040_p5 = scmp.lt.u32.totalorder %s6444_s23, %s6491_s3 }
 0x473   : > { %p4041_p12 = scmp.lt.u32.totalorder %s4039_s9, %s4035_s7  ;;  %p4043_p13 = scmp.lt.u32.totalorder %s4035_s7, %s6444_s23 }
 0x474   : > { %p4037_p2 = pnand %p4036_p0, %p6869_p3 }
 0x475   : > { %p4042_p6 = por %p4041_p12, %p4040_p5 }
 0x476   : > { %p4038_p7 = pneg %p4037_p2 }
 0x477   : > { %p4044_p8 = por %p4043_p13, %p4042_p6 }
 0x479   : > { %p4045_p9 = pnand %p4044_p8, %p4038_p7 }
 0x47b   : > { %4048 = shalt.err (!%p4045_p9)
}
 0x47c   : > { %s4106_s5 = smov 128   ;;  %s4107_s24 = smov 8  }
 0x47d   : > { %3889 = dma.vmem_to_hbm [thread:$0]  (%p6869_p3), %s6439_s8, 256, %s6444_s23, %s3613_s28, %s4106_s5, %s4106_s5, %s4107_s24  }
 0x47e PF: > { %s3641_s21 = sand.u32 1, %s4079_s14   ;;  %p6870_p10 = scmp.ne.s32.totalorder %s6499_s26, 0 }
 0x47f   : > { %p6871_p1 = scmp.ge.s32.totalorder %s4091_s17, 2  ;;  %s3642_s30 = scalar_lea.sflag [#allocation5], %s3641_s21 }
 0x481   : > { %p3900_p4 = pnand %p6871_p1, %p6870_p10 }
 0x483   : > { %4074 = dma.done.wait (!%p3900_p4), %s3642_s30, 256  }
 0x484   : > { %4076 = vsyncadd (!%p3900_p4), %s3642_s30, 4294967040  ;;  %p18_p11 = scmp.ge.s32.totalorder %s4156_s19, 4   ;;  %s6872_s14 = smov %s4083_s15 }
 0x485   : > { %s6873_s15 = smov %s4087_s16  ;;  %s6874_s16 = smov %s4168_s22 }
 0x486   : > { %s6875_s17 = smov %s4156_s19  ;;  %20 = sbr.rel (!%p18_p11) target bundleno = 8 (0x8), region = 85 }
 0x48d   :  { %3647 = vsyncpa [#allocation4], 1 }
 0x48e   :  { %3649 = vsyncpa [#allocation4 + $0x1], 1 }
 0x48f   :  { %3650 = vsyncpa [#allocation5], 1 }
 0x490   :  { %3652 = vsyncpa [#allocation5 + $0x1], 1 }
 0x491   :  { %3653 = vsyncpa [#allocation6], 1 }
 0x492   :  { %3655 = vsyncpa [#allocation6 + $0x1], 1 }

</bundles_post_ra>
